<compile_context>
chip_gen: v7x
topology: tpu7x:2x2x1
jax: 0.10.0
libtpu: 0.0.40
codegen_flags: <defaults>
</compile_context>

<pallas_src>
import functools
import math

import jax
import jax.numpy as jnp
from jax.experimental import pallas as pl
from jax.experimental.pallas import tpu as pltpu

INF = 1000000.0
LN_EPS = 1e-5


# ----------------------------------------------------------------------------
# Kernel: one grid step = (batch element, query tile); heads unrolled statically.
# ----------------------------------------------------------------------------
def _rel_attn_kernel(
    q_ref, k_ref, v_ref,                      # activations (bf16)
    fm_ref, fmseg_ref, am_ref,                # masks (int8)
    eq1_ref, eq2_ref, ek1_ref, ek2_ref,       # positional encodings (bf16)
    wq_ref, wk_ref, wv_ref, rk_ref,           # per-head kernels [H, D, dh] (bf16)
    bk_ref, bv_ref, rw_ref, rr_ref, rs_ref,   # per-head biases  [H, 1, dh] (f32)
    se_ref,                                   # seg embed        [H, 2, dh] (f32)
    pw_ref, pb_ref, g_ref, b_ref,             # post proj + LayerNorm params
    out_ref,
    vec_scr,                                  # VMEM scratch [TQ, NH] f32
    *, n_head, d_head):
  f32 = jnp.float32
  bf16 = jnp.bfloat16
  # contract the last dim of both operands (a @ b.T without an explicit transpose)
  dn = (((1,), (1,)), ((), ()))

  qb = q_ref[0]                              # [TQ, D] bf16
  kb = k_ref[0]                              # [TK, D] bf16
  vb = v_ref[0]                              # [TK, D] bf16

  # ---- head-invariant mask math, hoisted out of the head loop (int8 -> f32 once)
  fm = fm_ref[0].astype(f32)                 # func_mask               [TQ, TK]
  fmseg = fmseg_ref[0].astype(f32)           # func_mask * seg_mat     [TQ, TK]
  neg = am_ref[0].astype(f32) * (-INF)       # additive attention-mask bias (f32)

  eq1 = eq1_ref[...].astype(f32)             # [TQ, D]
  eq2 = eq2_ref[...].astype(f32)
  ek1 = ek1_ref[...]                         # [TK, D] bf16 (matmul RHS)
  ek2 = ek2_ref[...]

  for h in range(n_head):
    # contiguous per-head weight blocks (no lane slicing).  `scale` is folded
    # into Wq and r_{w,r,s}_bias in the wrapper.
    q_h = jnp.dot(qb, wq_ref[h], preferred_element_type=f32)            # [TQ, dh]
    k_h = (jnp.dot(kb, wk_ref[h], preferred_element_type=f32)
           + bk_ref[h]).astype(bf16)                                    # [TK, dh]
    v_h = (jnp.dot(vb, wv_ref[h], preferred_element_type=f32)
           + bv_ref[h]).astype(bf16)                                    # [TK, dh]

    # content score
    content = jax.lax.dot_general((q_h + rw_ref[h]).astype(bf16), k_h, dn,
                                  preferred_element_type=f32)           # [TQ, TK]

    # factorized relative-position bias
    q_r = jax.lax.dot_general((q_h + rr_ref[h]).astype(bf16), rk_ref[h], dn,
                              preferred_element_type=f32)               # [TQ, D]
    bd = (jax.lax.dot_general((q_r * eq1).astype(bf16), ek1, dn,
                              preferred_element_type=f32)
          + jax.lax.dot_general((q_r * eq2).astype(bf16), ek2, dn,
                                preferred_element_type=f32))            # [TQ, TK]

    # segment bias: per-row scalars (diff, same)
    sb2 = jax.lax.dot_general(q_h + rs_ref[h], se_ref[h], dn,
                              preferred_element_type=f32)               # [TQ, 2]
    diff = sb2[:, 0:1]
    delta = sb2[:, 1:2] - diff

    # score assembly (f32): func_mask applied once to (bd + diff); segment
    # select as FMA via precomputed fm*seg; additive -INF attention mask.
    score = content + fm * (bd + diff) + fmseg * delta + neg            # [TQ, TK]

    # softmax in f32, reciprocal on the EUP
    score = score - jnp.max(score, axis=-1, keepdims=True)
    p = jnp.exp(score)
    prob = (p * pl.reciprocal(jnp.sum(p, axis=-1, keepdims=True), approx=True)
            ).astype(bf16)

    vec_scr[:, h * d_head:(h + 1) * d_head] = jnp.dot(
        prob, v_h, preferred_element_type=f32)                          # [TQ, dh]

  # fused output projection: one [TQ, NH] @ [NH, D] matmul
  attn_out = (jnp.dot(vec_scr[...].astype(bf16), pw_ref[...],
                      preferred_element_type=f32) + pb_ref[...])        # [TQ, D]

  # residual + LayerNorm (f32)
  x = qb.astype(f32) + attn_out
  mu = jnp.mean(x, axis=-1, keepdims=True)
  var = jnp.mean((x - mu) ** 2, axis=-1, keepdims=True)
  y = (x - mu) * jax.lax.rsqrt(var + LN_EPS)
  out_ref[0] = y * g_ref[...] + b_ref[...]


# ----------------------------------------------------------------------------
# Wrapper: packs parameters head-major, folds scales, casts to bf16/int8, and
# calls pallas_call with a (batch, query-tile) grid.
# ----------------------------------------------------------------------------
def rel_multihead_attention(q, k, v, pos_enc, seg_mat, func_mask, attn_mask,
                            params, *, n_head, d_head, block_q=None):
  B, Tq, D = q.shape
  Tk = k.shape[1]
  NH = n_head * d_head
  scale = 1.0 / math.sqrt(d_head)
  eq1, eq2, ek1, ek2 = pos_enc

  if block_q is None:
    block_q = Tq
  assert Tq % block_q == 0
  num_q_tiles = Tq // block_q

  f32, bf16, i8 = jnp.float32, jnp.bfloat16, jnp.int8

  # --- parameters: head-major, scale folded into Wq and r_*_bias -------------
  wq3 = (params["Wq"] * scale).transpose(1, 0, 2).astype(bf16)       # [H, D, dh]
  wk3 = params["Wk"].transpose(1, 0, 2).astype(bf16)                 # [H, D, dh]
  wv3 = params["Wv"].transpose(1, 0, 2).astype(bf16)                 # [H, D, dh]
  rk3 = params["r_kernel"].transpose(1, 0, 2).astype(bf16)           # [H, D, dh]
  bk3 = params["bk"].reshape(n_head, 1, d_head).astype(f32)
  bv3 = params["bv"].reshape(n_head, 1, d_head).astype(f32)
  rw3 = (params["r_w_bias"] * scale).reshape(n_head, 1, d_head).astype(f32)
  rr3 = (params["r_r_bias"] * scale).reshape(n_head, 1, d_head).astype(f32)
  rs3 = (params["r_s_bias"] * scale).reshape(n_head, 1, d_head).astype(f32)
  se3 = params["seg_embed"].transpose(1, 0, 2).astype(f32)           # [H, 2, dh]
  pw2 = params["post_w"].reshape(NH, D).astype(bf16)                 # [NH, D]
  pb2 = params["post_b"].reshape(1, D).astype(f32)
  g2 = params["gamma"].reshape(1, D).astype(f32)
  b2 = params["beta"].reshape(1, D).astype(f32)

  # --- masks: int8 transport; seg pre-multiplied by func_mask ---------------
  fm_i8 = func_mask.astype(i8)
  fmseg_i8 = (func_mask * seg_mat).astype(i8)
  am_i8 = attn_mask.astype(i8)

  # --- activations / pos-enc in bf16 ----------------------------------------
  qb = q.astype(bf16)
  kb = k.astype(bf16)
  vb = v.astype(bf16)
  eq1b, eq2b = eq1.astype(bf16), eq2.astype(bf16)
  ek1b, ek2b = ek1.astype(bf16), ek2.astype(bf16)

  def q_tile(s1, s2):            # batched, tiled along the query axis
    return pl.BlockSpec((1, s1, s2), lambda b, t: (b, t, 0))

  def b_full(s1, s2):            # batched, full along seq (keys / values)
    return pl.BlockSpec((1, s1, s2), lambda b, t: (b, 0, 0))

  def shared(*shape):            # constant operands (weights / enc_k)
    nd = len(shape)
    return pl.BlockSpec(shape, lambda b, t, _nd=nd: (0,) * _nd)

  in_specs = [
      q_tile(block_q, D),                                    # q
      b_full(Tk, D), b_full(Tk, D),                          # k, v
      q_tile(block_q, Tk), q_tile(block_q, Tk), q_tile(block_q, Tk),  # masks
      pl.BlockSpec((block_q, D), lambda b, t: (t, 0)),       # enc_q_1
      pl.BlockSpec((block_q, D), lambda b, t: (t, 0)),       # enc_q_2
      shared(Tk, D), shared(Tk, D),                          # enc_k_1, enc_k_2
      shared(n_head, D, d_head), shared(n_head, D, d_head),  # Wq, Wk
      shared(n_head, D, d_head), shared(n_head, D, d_head),  # Wv, r_kernel
      shared(n_head, 1, d_head), shared(n_head, 1, d_head),  # bk, bv
      shared(n_head, 1, d_head), shared(n_head, 1, d_head),  # r_w, r_r
      shared(n_head, 1, d_head),                             # r_s
      shared(n_head, 2, d_head),                             # seg_embed
      shared(NH, D), shared(1, D), shared(1, D), shared(1, D),  # post_w/b, gamma, beta
  ]

  kernel = functools.partial(_rel_attn_kernel, n_head=n_head, d_head=d_head)

  return pl.pallas_call(
      kernel,
      out_shape=jax.ShapeDtypeStruct((B, Tq, D), jnp.float32),
      grid=(B, num_q_tiles),
      in_specs=in_specs,
      out_specs=pl.BlockSpec((1, block_q, D), lambda b, t: (b, t, 0)),
      scratch_shapes=[pltpu.VMEM((block_q, NH), jnp.float32)],
      compiler_params=pltpu.CompilerParams(
          dimension_semantics=("parallel", "parallel"),
          vmem_limit_bytes=48 * 1024 * 1024),
  )(qb, kb, vb, fm_i8, fmseg_i8, am_i8, eq1b, eq2b, ek1b, ek2b,
    wq3, wk3, wv3, rk3, bk3, bv3, rw3, rr3, rs3, se3, pw2, pb2, g2, b2)


# ----------------------------------------------------------------------------
# Pure-JAX reference (mirrors the torch module, factorized attn_type, eval mode).
# ----------------------------------------------------------------------------
def ref_forward(q, k, v, pos_enc, seg_mat, func_mask, attn_mask, params,
                *, n_head, d_head):
  scale = 1.0 / math.sqrt(d_head)
  eq1, eq2, ek1, ek2 = pos_enc
  q_head = jnp.einsum("bid,dnh->binh", q, params["Wq"])
  k_head = jnp.einsum("bid,dnh->binh", k, params["Wk"]) + params["bk"]
  v_head = jnp.einsum("bid,dnh->binh", v, params["Wv"]) + params["bv"]
  q_head = q_head * scale

  content = jnp.einsum("bind,bjnd->bnij", q_head + params["r_w_bias"] * scale,
                       k_head)
  q_head_r = jnp.einsum("binh,dnh->bind", q_head + params["r_r_bias"] * scale,
                        params["r_kernel"])
  q_r1 = q_head_r * eq1[None, :, None, :]
  q_r2 = q_head_r * eq2[None, :, None, :]
  bd = (jnp.einsum("bind,jd->bnij", q_r1, ek1)
        + jnp.einsum("bind,jd->bnij", q_r2, ek2))
  bd = bd * func_mask[:, None, :, :]

  sb = jnp.einsum("bind,snd->bnis", q_head + params["r_s_bias"] * scale,
                  params["seg_embed"])
  diff, same = sb[..., 0:1], sb[..., 1:2]
  seg_bias = jnp.where(seg_mat[:, None, :, :] > 0.5, same, diff)
  seg_bias = seg_bias * func_mask[:, None, :, :]

  score = content + bd + seg_bias - INF * attn_mask[:, None, :, :]
  prob = jax.nn.softmax(score, axis=-1)
  vec = jnp.einsum("bnij,bjnd->bind", prob, v_head)
  out = jnp.einsum("bind,ndm->bim", vec, params["post_w"]) + params["post_b"]
  x = q + out
  mu = jnp.mean(x, axis=-1, keepdims=True)
  var = jnp.mean((x - mu) ** 2, axis=-1, keepdims=True)
  return (x - mu) / jnp.sqrt(var + LN_EPS) * params["gamma"] + params["beta"]


# ----------------------------------------------------------------------------
if __name__ == "__main__":
  B, T, d_model, n_head, d_head = 2, 64, 64, 4, 16
  block_q = 32

  key = jax.random.PRNGKey(0)
  ks = jax.random.split(key, 24)

  # round test data / params onto the bf16 grid so the kernel's bf16 casts are
  # lossless and the f32 reference uses identical effective values.
  def bq(x):
    return x.astype(jnp.bfloat16).astype(jnp.float32)

  def dense_std(fan_in, fan_out):
    return math.sqrt(1.0 / float(fan_in + fan_out))

  std_qkv = dense_std(d_model, n_head * d_head)
  std_post = dense_std(n_head * d_head, d_model)
  params = {
      "Wq": bq(jax.random.normal(ks[0], (d_model, n_head, d_head)) * std_qkv),
      "Wk": bq(jax.random.normal(ks[1], (d_model, n_head, d_head)) * std_qkv),
      "bk": bq(jax.random.normal(ks[2], (n_head, d_head)) * 0.02),
      "Wv": bq(jax.random.normal(ks[3], (d_model, n_head, d_head)) * std_qkv),
      "bv": bq(jax.random.normal(ks[4], (n_head, d_head)) * 0.02),
      "r_w_bias": bq(jax.random.uniform(ks[5], (n_head, d_head), maxval=0.1)),
      "r_r_bias": bq(jax.random.uniform(ks[6], (n_head, d_head), maxval=0.1)),
      "r_s_bias": bq(jax.random.uniform(ks[7], (n_head, d_head), maxval=0.1)),
      "r_kernel": bq(jax.random.uniform(ks[8], (d_model, n_head, d_head),
                                        maxval=0.1)),
      "seg_embed": bq(jax.random.uniform(ks[9], (2, n_head, d_head), maxval=0.1)),
      "post_w": bq(jax.random.normal(ks[10], (n_head, d_head, d_model)) * std_post),
      "post_b": bq(jax.random.normal(ks[11], (d_model,)) * 0.02),
      "gamma": bq(1.0 + 0.1 * jax.random.normal(ks[12], (d_model,))),
      "beta": bq(0.1 * jax.random.normal(ks[13], (d_model,))),
  }

  q = bq(jax.random.normal(ks[14], (B, T, d_model)))
  k = bq(jax.random.normal(ks[15], (B, T, d_model)))
  v = bq(jax.random.normal(ks[16], (B, T, d_model)))
  pos_enc = (bq(0.1 * jax.random.normal(ks[17], (T, d_model))),
             bq(0.1 * jax.random.normal(ks[18], (T, d_model))),
             bq(0.1 * jax.random.normal(ks[19], (T, d_model))),
             bq(0.1 * jax.random.normal(ks[20], (T, d_model))))
  seg_mat = (jax.random.uniform(ks[21], (B, T, T)) > 0.5).astype(jnp.float32)
  func_mask = (jax.random.uniform(ks[22], (B, T, T)) > 0.3).astype(jnp.float32)
  # causal attention mask (1 = masked) so every row has at least one valid key
  attn_mask = jnp.broadcast_to(
      (jnp.arange(T)[:, None] < jnp.arange(T)[None, :]).astype(jnp.float32),
      (B, T, T))

  out = rel_multihead_attention(q, k, v, pos_enc, seg_mat, func_mask, attn_mask,
                                params, n_head=n_head, d_head=d_head,
                                block_q=block_q)
  out = jax.block_until_ready(out)

  ref = ref_forward(q, k, v, pos_enc, seg_mat, func_mask, attn_mask, params,
                    n_head=n_head, d_head=d_head)
  assert out.shape == (B, T, d_model)
  max_diff = float(jnp.max(jnp.abs(out - ref)))
  assert jnp.allclose(out, ref, atol=0.1, rtol=0.1), max_diff
  print("KERNEL_OK")
</pallas_src>

<mosaic_0001>
module attributes {stable_mosaic.version = 11 : i64} {
  func.func @_rel_attn_kernel(%arg0: i32, %arg1: i32, %arg2: memref<1x32x64xbf16, #tpu.memory_space<vmem>>, %arg3: memref<1x64x64xbf16, #tpu.memory_space<vmem>>, %arg4: memref<1x64x64xbf16, #tpu.memory_space<vmem>>, %arg5: memref<1x32x64xi8, #tpu.memory_space<vmem>>, %arg6: memref<1x32x64xi8, #tpu.memory_space<vmem>>, %arg7: memref<1x32x64xi8, #tpu.memory_space<vmem>>, %arg8: memref<32x64xbf16, #tpu.memory_space<vmem>>, %arg9: memref<32x64xbf16, #tpu.memory_space<vmem>>, %arg10: memref<64x64xbf16, #tpu.memory_space<vmem>>, %arg11: memref<64x64xbf16, #tpu.memory_space<vmem>>, %arg12: memref<4x64x16xbf16, #tpu.memory_space<vmem>>, %arg13: memref<4x64x16xbf16, #tpu.memory_space<vmem>>, %arg14: memref<4x64x16xbf16, #tpu.memory_space<vmem>>, %arg15: memref<4x64x16xbf16, #tpu.memory_space<vmem>>, %arg16: memref<4x1x16xf32, #tpu.memory_space<vmem>>, %arg17: memref<4x1x16xf32, #tpu.memory_space<vmem>>, %arg18: memref<4x1x16xf32, #tpu.memory_space<vmem>>, %arg19: memref<4x1x16xf32, #tpu.memory_space<vmem>>, %arg20: memref<4x1x16xf32, #tpu.memory_space<vmem>>, %arg21: memref<4x2x16xf32, #tpu.memory_space<vmem>>, %arg22: memref<64x64xbf16, #tpu.memory_space<vmem>>, %arg23: memref<1x64xf32, #tpu.memory_space<vmem>>, %arg24: memref<1x64xf32, #tpu.memory_space<vmem>>, %arg25: memref<1x64xf32, #tpu.memory_space<vmem>>, %arg26: memref<1x32x64xf32, #tpu.memory_space<vmem>>, %arg27: memref<32x64xf32, #tpu.memory_space<vmem>>) attributes {dimension_semantics = [#tpu.dimension_semantics<parallel>, #tpu.dimension_semantics<parallel>], iteration_bounds = array<i64: 2, 2>, scalar_prefetch = 0 : i64, scratch_operands = 1 : i64, tpu.core_type = #tpu.core_type<tc>, window_params = [{transform_indices = @transform_0, window_bounds = array<i64: 1, 32, 64>}, {transform_indices = @transform_1, window_bounds = array<i64: 1, 64, 64>}, {transform_indices = @transform_2, window_bounds = array<i64: 1, 64, 64>}, {transform_indices = @transform_3, window_bounds = array<i64: 1, 32, 64>}, {transform_indices = @transform_4, window_bounds = array<i64: 1, 32, 64>}, {transform_indices = @transform_5, window_bounds = array<i64: 1, 32, 64>}, {transform_indices = @transform_6, window_bounds = array<i64: 32, 64>}, {transform_indices = @transform_7, window_bounds = array<i64: 32, 64>}, {pipeline_mode = #tpu.pipeline_mode<synchronous>, transform_indices = @transform_8, window_bounds = array<i64: 64, 64>}, {pipeline_mode = #tpu.pipeline_mode<synchronous>, transform_indices = @transform_9, window_bounds = array<i64: 64, 64>}, {pipeline_mode = #tpu.pipeline_mode<synchronous>, transform_indices = @transform_10, window_bounds = array<i64: 4, 64, 16>}, {pipeline_mode = #tpu.pipeline_mode<synchronous>, transform_indices = @transform_11, window_bounds = array<i64: 4, 64, 16>}, {pipeline_mode = #tpu.pipeline_mode<synchronous>, transform_indices = @transform_12, window_bounds = array<i64: 4, 64, 16>}, {pipeline_mode = #tpu.pipeline_mode<synchronous>, transform_indices = @transform_13, window_bounds = array<i64: 4, 64, 16>}, {pipeline_mode = #tpu.pipeline_mode<synchronous>, transform_indices = @transform_14, window_bounds = array<i64: 4, 1, 16>}, {pipeline_mode = #tpu.pipeline_mode<synchronous>, transform_indices = @transform_15, window_bounds = array<i64: 4, 1, 16>}, {pipeline_mode = #tpu.pipeline_mode<synchronous>, transform_indices = @transform_16, window_bounds = array<i64: 4, 1, 16>}, {pipeline_mode = #tpu.pipeline_mode<synchronous>, transform_indices = @transform_17, window_bounds = array<i64: 4, 1, 16>}, {pipeline_mode = #tpu.pipeline_mode<synchronous>, transform_indices = @transform_18, window_bounds = array<i64: 4, 1, 16>}, {pipeline_mode = #tpu.pipeline_mode<synchronous>, transform_indices = @transform_19, window_bounds = array<i64: 4, 2, 16>}, {pipeline_mode = #tpu.pipeline_mode<synchronous>, transform_indices = @transform_20, window_bounds = array<i64: 64, 64>}, {pipeline_mode = #tpu.pipeline_mode<synchronous>, transform_indices = @transform_21, window_bounds = array<i64: 1, 64>}, {pipeline_mode = #tpu.pipeline_mode<synchronous>, transform_indices = @transform_22, window_bounds = array<i64: 1, 64>}, {pipeline_mode = #tpu.pipeline_mode<synchronous>, transform_indices = @transform_23, window_bounds = array<i64: 1, 64>}, {transform_indices = @transform_24, window_bounds = array<i64: 1, 32, 64>}]} {
    %c0 = arith.constant 0 : index
    %c0_0 = arith.constant 0 : index
    %c0_1 = arith.constant 0 : index
    %0 = vector.load %arg2[%c0, %c0_0, %c0_1] : memref<1x32x64xbf16, #tpu.memory_space<vmem>>, vector<1x32x64xbf16>
    %1 = vector.shape_cast %0 : vector<1x32x64xbf16> to vector<32x64xbf16>
    %c0_2 = arith.constant 0 : index
    %c0_3 = arith.constant 0 : index
    %c0_4 = arith.constant 0 : index
    %2 = vector.load %arg3[%c0_2, %c0_3, %c0_4] : memref<1x64x64xbf16, #tpu.memory_space<vmem>>, vector<1x64x64xbf16>
    %3 = vector.shape_cast %2 : vector<1x64x64xbf16> to vector<64x64xbf16>
    %c0_5 = arith.constant 0 : index
    %c0_6 = arith.constant 0 : index
    %c0_7 = arith.constant 0 : index
    %4 = vector.load %arg4[%c0_5, %c0_6, %c0_7] : memref<1x64x64xbf16, #tpu.memory_space<vmem>>, vector<1x64x64xbf16>
    %5 = vector.shape_cast %4 : vector<1x64x64xbf16> to vector<64x64xbf16>
    %c0_8 = arith.constant 0 : index
    %c0_9 = arith.constant 0 : index
    %c0_10 = arith.constant 0 : index
    %6 = vector.load %arg5[%c0_8, %c0_9, %c0_10] : memref<1x32x64xi8, #tpu.memory_space<vmem>>, vector<1x32x64xi8>
    %7 = vector.shape_cast %6 : vector<1x32x64xi8> to vector<32x64xi8>
    %8 = arith.sitofp %7 : vector<32x64xi8> to vector<32x64xf32>
    %c0_11 = arith.constant 0 : index
    %c0_12 = arith.constant 0 : index
    %c0_13 = arith.constant 0 : index
    %9 = vector.load %arg6[%c0_11, %c0_12, %c0_13] : memref<1x32x64xi8, #tpu.memory_space<vmem>>, vector<1x32x64xi8>
    %10 = vector.shape_cast %9 : vector<1x32x64xi8> to vector<32x64xi8>
    %11 = arith.sitofp %10 : vector<32x64xi8> to vector<32x64xf32>
    %c0_14 = arith.constant 0 : index
    %c0_15 = arith.constant 0 : index
    %c0_16 = arith.constant 0 : index
    %12 = vector.load %arg7[%c0_14, %c0_15, %c0_16] : memref<1x32x64xi8, #tpu.memory_space<vmem>>, vector<1x32x64xi8>
    %13 = vector.shape_cast %12 : vector<1x32x64xi8> to vector<32x64xi8>
    %14 = arith.sitofp %13 : vector<32x64xi8> to vector<32x64xf32>
    %cst = arith.constant -1.000000e+06 : f32
    %15 = vector.broadcast %cst : f32 to vector<32x64xf32>
    %16 = arith.mulf %14, %15 : vector<32x64xf32>
    %c0_17 = arith.constant 0 : index
    %c0_18 = arith.constant 0 : index
    %17 = vector.load %arg8[%c0_17, %c0_18] : memref<32x64xbf16, #tpu.memory_space<vmem>>, vector<32x64xbf16>
    %18 = arith.extf %17 : vector<32x64xbf16> to vector<32x64xf32>
    %c0_19 = arith.constant 0 : index
    %c0_20 = arith.constant 0 : index
    %19 = vector.load %arg9[%c0_19, %c0_20] : memref<32x64xbf16, #tpu.memory_space<vmem>>, vector<32x64xbf16>
    %20 = arith.extf %19 : vector<32x64xbf16> to vector<32x64xf32>
    %c0_21 = arith.constant 0 : index
    %c0_22 = arith.constant 0 : index
    %21 = vector.load %arg10[%c0_21, %c0_22] : memref<64x64xbf16, #tpu.memory_space<vmem>>, vector<64x64xbf16>
    %c0_23 = arith.constant 0 : index
    %c0_24 = arith.constant 0 : index
    %22 = vector.load %arg11[%c0_23, %c0_24] : memref<64x64xbf16, #tpu.memory_space<vmem>>, vector<64x64xbf16>
    %c0_25 = arith.constant 0 : index
    %c0_26 = arith.constant 0 : index
    %c0_27 = arith.constant 0 : index
    %23 = vector.load %arg12[%c0_25, %c0_26, %c0_27] : memref<4x64x16xbf16, #tpu.memory_space<vmem>>, vector<1x64x16xbf16>
    %24 = vector.shape_cast %23 : vector<1x64x16xbf16> to vector<64x16xbf16>
    %cst_28 = arith.constant dense<0.000000e+00> : vector<32x16xf32>
    %25 = tpu.matmul %1, %24, %cst_28 {dimension_numbers = #tpu.dot_dimension_numbers<[1], [0], [0], [1], [0, 0, 1, 1], [], []>} : vector<32x64xbf16>, vector<64x16xbf16>, vector<32x16xf32> -> vector<32x16xf32>
    %c0_29 = arith.constant 0 : index
    %c0_30 = arith.constant 0 : index
    %c0_31 = arith.constant 0 : index
    %26 = vector.load %arg13[%c0_29, %c0_30, %c0_31] : memref<4x64x16xbf16, #tpu.memory_space<vmem>>, vector<1x64x16xbf16>
    %27 = vector.shape_cast %26 : vector<1x64x16xbf16> to vector<64x16xbf16>
    %cst_32 = arith.constant dense<0.000000e+00> : vector<64x16xf32>
    %28 = tpu.matmul %3, %27, %cst_32 {dimension_numbers = #tpu.dot_dimension_numbers<[1], [0], [0], [1], [0, 0, 1, 1], [], []>} : vector<64x64xbf16>, vector<64x16xbf16>, vector<64x16xf32> -> vector<64x16xf32>
    %c0_33 = arith.constant 0 : index
    %c0_34 = arith.constant 0 : index
    %c0_35 = arith.constant 0 : index
    %29 = vector.load %arg16[%c0_33, %c0_34, %c0_35] : memref<4x1x16xf32, #tpu.memory_space<vmem>>, vector<1x1x16xf32>
    %30 = vector.shape_cast %29 : vector<1x1x16xf32> to vector<1x16xf32>
    %31 = vector.broadcast %30 : vector<1x16xf32> to vector<64x16xf32>
    %32 = arith.addf %28, %31 : vector<64x16xf32>
    %33 = arith.truncf %32 : vector<64x16xf32> to vector<64x16xbf16>
    %c0_36 = arith.constant 0 : index
    %c0_37 = arith.constant 0 : index
    %c0_38 = arith.constant 0 : index
    %34 = vector.load %arg14[%c0_36, %c0_37, %c0_38] : memref<4x64x16xbf16, #tpu.memory_space<vmem>>, vector<1x64x16xbf16>
    %35 = vector.shape_cast %34 : vector<1x64x16xbf16> to vector<64x16xbf16>
    %cst_39 = arith.constant dense<0.000000e+00> : vector<64x16xf32>
    %36 = tpu.matmul %5, %35, %cst_39 {dimension_numbers = #tpu.dot_dimension_numbers<[1], [0], [0], [1], [0, 0, 1, 1], [], []>} : vector<64x64xbf16>, vector<64x16xbf16>, vector<64x16xf32> -> vector<64x16xf32>
    %c0_40 = arith.constant 0 : index
    %c0_41 = arith.constant 0 : index
    %c0_42 = arith.constant 0 : index
    %37 = vector.load %arg17[%c0_40, %c0_41, %c0_42] : memref<4x1x16xf32, #tpu.memory_space<vmem>>, vector<1x1x16xf32>
    %38 = vector.shape_cast %37 : vector<1x1x16xf32> to vector<1x16xf32>
    %39 = vector.broadcast %38 : vector<1x16xf32> to vector<64x16xf32>
    %40 = arith.addf %36, %39 : vector<64x16xf32>
    %41 = arith.truncf %40 : vector<64x16xf32> to vector<64x16xbf16>
    %c0_43 = arith.constant 0 : index
    %c0_44 = arith.constant 0 : index
    %c0_45 = arith.constant 0 : index
    %42 = vector.load %arg18[%c0_43, %c0_44, %c0_45] : memref<4x1x16xf32, #tpu.memory_space<vmem>>, vector<1x1x16xf32>
    %43 = vector.shape_cast %42 : vector<1x1x16xf32> to vector<1x16xf32>
    %44 = vector.broadcast %43 : vector<1x16xf32> to vector<32x16xf32>
    %45 = arith.addf %25, %44 : vector<32x16xf32>
    %46 = arith.truncf %45 : vector<32x16xf32> to vector<32x16xbf16>
    %cst_46 = arith.constant dense<0.000000e+00> : vector<32x64xf32>
    %47 = tpu.matmul %46, %33, %cst_46 {dimension_numbers = #tpu.dot_dimension_numbers<[1], [1], [0], [0], [0, 0, 1, 0], [], []>} : vector<32x16xbf16>, vector<64x16xbf16>, vector<32x64xf32> -> vector<32x64xf32>
    %c0_47 = arith.constant 0 : index
    %c0_48 = arith.constant 0 : index
    %c0_49 = arith.constant 0 : index
    %48 = vector.load %arg19[%c0_47, %c0_48, %c0_49] : memref<4x1x16xf32, #tpu.memory_space<vmem>>, vector<1x1x16xf32>
    %49 = vector.shape_cast %48 : vector<1x1x16xf32> to vector<1x16xf32>
    %50 = vector.broadcast %49 : vector<1x16xf32> to vector<32x16xf32>
    %51 = arith.addf %25, %50 : vector<32x16xf32>
    %52 = arith.truncf %51 : vector<32x16xf32> to vector<32x16xbf16>
    %c0_50 = arith.constant 0 : index
    %c0_51 = arith.constant 0 : index
    %c0_52 = arith.constant 0 : index
    %53 = vector.load %arg15[%c0_50, %c0_51, %c0_52] : memref<4x64x16xbf16, #tpu.memory_space<vmem>>, vector<1x64x16xbf16>
    %54 = vector.shape_cast %53 : vector<1x64x16xbf16> to vector<64x16xbf16>
    %cst_53 = arith.constant dense<0.000000e+00> : vector<32x64xf32>
    %55 = tpu.matmul %52, %54, %cst_53 {dimension_numbers = #tpu.dot_dimension_numbers<[1], [1], [0], [0], [0, 0, 1, 0], [], []>} : vector<32x16xbf16>, vector<64x16xbf16>, vector<32x64xf32> -> vector<32x64xf32>
    %56 = arith.mulf %55, %18 : vector<32x64xf32>
    %57 = arith.truncf %56 : vector<32x64xf32> to vector<32x64xbf16>
    %cst_54 = arith.constant dense<0.000000e+00> : vector<32x64xf32>
    %58 = tpu.matmul %57, %21, %cst_54 {dimension_numbers = #tpu.dot_dimension_numbers<[1], [1], [0], [0], [0, 0, 1, 0], [], []>} : vector<32x64xbf16>, vector<64x64xbf16>, vector<32x64xf32> -> vector<32x64xf32>
    %59 = arith.mulf %55, %20 : vector<32x64xf32>
    %60 = arith.truncf %59 : vector<32x64xf32> to vector<32x64xbf16>
    %cst_55 = arith.constant dense<0.000000e+00> : vector<32x64xf32>
    %61 = tpu.matmul %60, %22, %cst_55 {dimension_numbers = #tpu.dot_dimension_numbers<[1], [1], [0], [0], [0, 0, 1, 0], [], []>} : vector<32x64xbf16>, vector<64x64xbf16>, vector<32x64xf32> -> vector<32x64xf32>
    %62 = arith.addf %58, %61 : vector<32x64xf32>
    %c0_56 = arith.constant 0 : index
    %c0_57 = arith.constant 0 : index
    %c0_58 = arith.constant 0 : index
    %63 = vector.load %arg20[%c0_56, %c0_57, %c0_58] : memref<4x1x16xf32, #tpu.memory_space<vmem>>, vector<1x1x16xf32>
    %64 = vector.shape_cast %63 : vector<1x1x16xf32> to vector<1x16xf32>
    %65 = vector.broadcast %64 : vector<1x16xf32> to vector<32x16xf32>
    %66 = arith.addf %25, %65 : vector<32x16xf32>
    %c0_59 = arith.constant 0 : index
    %c0_60 = arith.constant 0 : index
    %c0_61 = arith.constant 0 : index
    %67 = vector.load %arg21[%c0_59, %c0_60, %c0_61] : memref<4x2x16xf32, #tpu.memory_space<vmem>>, vector<1x2x16xf32>
    %68 = vector.shape_cast %67 : vector<1x2x16xf32> to vector<2x16xf32>
    %cst_62 = arith.constant dense<0.000000e+00> : vector<32x2xf32>
    %69 = tpu.matmul %66, %68, %cst_62 {dimension_numbers = #tpu.dot_dimension_numbers<[1], [1], [0], [0], [0, 0, 1, 0], [], []>} : vector<32x16xf32>, vector<2x16xf32>, vector<32x2xf32> -> vector<32x2xf32>
    %70 = vector.extract_strided_slice %69 {offsets = [0, 0], sizes = [32, 1], strides = [1, 1]} : vector<32x2xf32> to vector<32x1xf32>
    %71 = vector.extract_strided_slice %69 {offsets = [0, 1], sizes = [32, 1], strides = [1, 1]} : vector<32x2xf32> to vector<32x1xf32>
    %72 = arith.subf %71, %70 : vector<32x1xf32>
    %73 = vector.broadcast %70 : vector<32x1xf32> to vector<32x64xf32>
    %74 = arith.addf %62, %73 : vector<32x64xf32>
    %75 = arith.mulf %8, %74 : vector<32x64xf32>
    %76 = arith.addf %47, %75 : vector<32x64xf32>
    %77 = vector.broadcast %72 : vector<32x1xf32> to vector<32x64xf32>
    %78 = arith.mulf %11, %77 : vector<32x64xf32>
    %79 = arith.addf %76, %78 : vector<32x64xf32>
    %80 = arith.addf %79, %16 : vector<32x64xf32>
    %cst_63 = arith.constant dense<0xFF800000> : vector<32xf32>
    %81 = vector.multi_reduction <maximumf>, %80, %cst_63 [1] : vector<32x64xf32> to vector<32xf32>
    %82 = vector.shape_cast %81 : vector<32xf32> to vector<32x1xf32>
    %83 = vector.broadcast %82 : vector<32x1xf32> to vector<32x64xf32>
    %84 = arith.subf %80, %83 : vector<32x64xf32>
    %85 = math.exp %84 : vector<32x64xf32>
    %cst_64 = arith.constant dense<0.000000e+00> : vector<32xf32>
    %86 = vector.multi_reduction <add>, %85, %cst_64 [1] : vector<32x64xf32> to vector<32xf32>
    %87 = vector.shape_cast %86 : vector<32xf32> to vector<32x1xf32>
    %88 = tpu.reciprocal %87 {approx = true} : vector<32x1xf32> -> vector<32x1xf32>
    %89 = vector.broadcast %88 : vector<32x1xf32> to vector<32x64xf32>
    %90 = arith.mulf %85, %89 : vector<32x64xf32>
    %91 = arith.truncf %90 : vector<32x64xf32> to vector<32x64xbf16>
    %cst_65 = arith.constant dense<0.000000e+00> : vector<32x16xf32>
    %92 = tpu.matmul %91, %41, %cst_65 {dimension_numbers = #tpu.dot_dimension_numbers<[1], [0], [0], [1], [0, 0, 1, 1], [], []>} : vector<32x64xbf16>, vector<64x16xbf16>, vector<32x16xf32> -> vector<32x16xf32>
    %c0_66 = arith.constant 0 : index
    %c0_67 = arith.constant 0 : index
    %93 = vector.load %arg27[%c0_66, %c0_67] : memref<32x64xf32, #tpu.memory_space<vmem>>, vector<32x16xf32>
    tpu.vector_store %arg27[%c0_66, %c0_67], %92 {strides = array<i32>} : memref<32x64xf32, #tpu.memory_space<vmem>>, vector<32x16xf32>,
    %c1 = arith.constant 1 : index
    %c0_68 = arith.constant 0 : index
    %c0_69 = arith.constant 0 : index
    %94 = vector.load %arg12[%c1, %c0_68, %c0_69] : memref<4x64x16xbf16, #tpu.memory_space<vmem>>, vector<1x64x16xbf16>
    %95 = vector.shape_cast %94 : vector<1x64x16xbf16> to vector<64x16xbf16>
    %cst_70 = arith.constant dense<0.000000e+00> : vector<32x16xf32>
    %96 = tpu.matmul %1, %95, %cst_70 {dimension_numbers = #tpu.dot_dimension_numbers<[1], [0], [0], [1], [0, 0, 1, 1], [], []>} : vector<32x64xbf16>, vector<64x16xbf16>, vector<32x16xf32> -> vector<32x16xf32>
    %c1_71 = arith.constant 1 : index
    %c0_72 = arith.constant 0 : index
    %c0_73 = arith.constant 0 : index
    %97 = vector.load %arg13[%c1_71, %c0_72, %c0_73] : memref<4x64x16xbf16, #tpu.memory_space<vmem>>, vector<1x64x16xbf16>
    %98 = vector.shape_cast %97 : vector<1x64x16xbf16> to vector<64x16xbf16>
    %cst_74 = arith.constant dense<0.000000e+00> : vector<64x16xf32>
    %99 = tpu.matmul %3, %98, %cst_74 {dimension_numbers = #tpu.dot_dimension_numbers<[1], [0], [0], [1], [0, 0, 1, 1], [], []>} : vector<64x64xbf16>, vector<64x16xbf16>, vector<64x16xf32> -> vector<64x16xf32>
    %c1_75 = arith.constant 1 : index
    %c0_76 = arith.constant 0 : index
    %c0_77 = arith.constant 0 : index
    %100 = vector.load %arg16[%c1_75, %c0_76, %c0_77] : memref<4x1x16xf32, #tpu.memory_space<vmem>>, vector<1x1x16xf32>
    %101 = vector.shape_cast %100 : vector<1x1x16xf32> to vector<1x16xf32>
    %102 = vector.broadcast %101 : vector<1x16xf32> to vector<64x16xf32>
    %103 = arith.addf %99, %102 : vector<64x16xf32>
    %104 = arith.truncf %103 : vector<64x16xf32> to vector<64x16xbf16>
    %c1_78 = arith.constant 1 : index
    %c0_79 = arith.constant 0 : index
    %c0_80 = arith.constant 0 : index
    %105 = vector.load %arg14[%c1_78, %c0_79, %c0_80] : memref<4x64x16xbf16, #tpu.memory_space<vmem>>, vector<1x64x16xbf16>
    %106 = vector.shape_cast %105 : vector<1x64x16xbf16> to vector<64x16xbf16>
    %cst_81 = arith.constant dense<0.000000e+00> : vector<64x16xf32>
    %107 = tpu.matmul %5, %106, %cst_81 {dimension_numbers = #tpu.dot_dimension_numbers<[1], [0], [0], [1], [0, 0, 1, 1], [], []>} : vector<64x64xbf16>, vector<64x16xbf16>, vector<64x16xf32> -> vector<64x16xf32>
    %c1_82 = arith.constant 1 : index
    %c0_83 = arith.constant 0 : index
    %c0_84 = arith.constant 0 : index
    %108 = vector.load %arg17[%c1_82, %c0_83, %c0_84] : memref<4x1x16xf32, #tpu.memory_space<vmem>>, vector<1x1x16xf32>
    %109 = vector.shape_cast %108 : vector<1x1x16xf32> to vector<1x16xf32>
    %110 = vector.broadcast %109 : vector<1x16xf32> to vector<64x16xf32>
    %111 = arith.addf %107, %110 : vector<64x16xf32>
    %112 = arith.truncf %111 : vector<64x16xf32> to vector<64x16xbf16>
    %c1_85 = arith.constant 1 : index
    %c0_86 = arith.constant 0 : index
    %c0_87 = arith.constant 0 : index
    %113 = vector.load %arg18[%c1_85, %c0_86, %c0_87] : memref<4x1x16xf32, #tpu.memory_space<vmem>>, vector<1x1x16xf32>
    %114 = vector.shape_cast %113 : vector<1x1x16xf32> to vector<1x16xf32>
    %115 = vector.broadcast %114 : vector<1x16xf32> to vector<32x16xf32>
    %116 = arith.addf %96, %115 : vector<32x16xf32>
    %117 = arith.truncf %116 : vector<32x16xf32> to vector<32x16xbf16>
    %cst_88 = arith.constant dense<0.000000e+00> : vector<32x64xf32>
    %118 = tpu.matmul %117, %104, %cst_88 {dimension_numbers = #tpu.dot_dimension_numbers<[1], [1], [0], [0], [0, 0, 1, 0], [], []>} : vector<32x16xbf16>, vector<64x16xbf16>, vector<32x64xf32> -> vector<32x64xf32>
    %c1_89 = arith.constant 1 : index
    %c0_90 = arith.constant 0 : index
    %c0_91 = arith.constant 0 : index
    %119 = vector.load %arg19[%c1_89, %c0_90, %c0_91] : memref<4x1x16xf32, #tpu.memory_space<vmem>>, vector<1x1x16xf32>
    %120 = vector.shape_cast %119 : vector<1x1x16xf32> to vector<1x16xf32>
    %121 = vector.broadcast %120 : vector<1x16xf32> to vector<32x16xf32>
    %122 = arith.addf %96, %121 : vector<32x16xf32>
    %123 = arith.truncf %122 : vector<32x16xf32> to vector<32x16xbf16>
    %c1_92 = arith.constant 1 : index
    %c0_93 = arith.constant 0 : index
    %c0_94 = arith.constant 0 : index
    %124 = vector.load %arg15[%c1_92, %c0_93, %c0_94] : memref<4x64x16xbf16, #tpu.memory_space<vmem>>, vector<1x64x16xbf16>
    %125 = vector.shape_cast %124 : vector<1x64x16xbf16> to vector<64x16xbf16>
    %cst_95 = arith.constant dense<0.000000e+00> : vector<32x64xf32>
    %126 = tpu.matmul %123, %125, %cst_95 {dimension_numbers = #tpu.dot_dimension_numbers<[1], [1], [0], [0], [0, 0, 1, 0], [], []>} : vector<32x16xbf16>, vector<64x16xbf16>, vector<32x64xf32> -> vector<32x64xf32>
    %127 = arith.mulf %126, %18 : vector<32x64xf32>
    %128 = arith.truncf %127 : vector<32x64xf32> to vector<32x64xbf16>
    %cst_96 = arith.constant dense<0.000000e+00> : vector<32x64xf32>
    %129 = tpu.matmul %128, %21, %cst_96 {dimension_numbers = #tpu.dot_dimension_numbers<[1], [1], [0], [0], [0, 0, 1, 0], [], []>} : vector<32x64xbf16>, vector<64x64xbf16>, vector<32x64xf32> -> vector<32x64xf32>
    %130 = arith.mulf %126, %20 : vector<32x64xf32>
    %131 = arith.truncf %130 : vector<32x64xf32> to vector<32x64xbf16>
    %cst_97 = arith.constant dense<0.000000e+00> : vector<32x64xf32>
    %132 = tpu.matmul %131, %22, %cst_97 {dimension_numbers = #tpu.dot_dimension_numbers<[1], [1], [0], [0], [0, 0, 1, 0], [], []>} : vector<32x64xbf16>, vector<64x64xbf16>, vector<32x64xf32> -> vector<32x64xf32>
    %133 = arith.addf %129, %132 : vector<32x64xf32>
    %c1_98 = arith.constant 1 : index
    %c0_99 = arith.constant 0 : index
    %c0_100 = arith.constant 0 : index
    %134 = vector.load %arg20[%c1_98, %c0_99, %c0_100] : memref<4x1x16xf32, #tpu.memory_space<vmem>>, vector<1x1x16xf32>
    %135 = vector.shape_cast %134 : vector<1x1x16xf32> to vector<1x16xf32>
    %136 = vector.broadcast %135 : vector<1x16xf32> to vector<32x16xf32>
    %137 = arith.addf %96, %136 : vector<32x16xf32>
    %c1_101 = arith.constant 1 : index
    %c0_102 = arith.constant 0 : index
    %c0_103 = arith.constant 0 : index
    %138 = vector.load %arg21[%c1_101, %c0_102, %c0_103] : memref<4x2x16xf32, #tpu.memory_space<vmem>>, vector<1x2x16xf32>
    %139 = vector.shape_cast %138 : vector<1x2x16xf32> to vector<2x16xf32>
    %cst_104 = arith.constant dense<0.000000e+00> : vector<32x2xf32>
    %140 = tpu.matmul %137, %139, %cst_104 {dimension_numbers = #tpu.dot_dimension_numbers<[1], [1], [0], [0], [0, 0, 1, 0], [], []>} : vector<32x16xf32>, vector<2x16xf32>, vector<32x2xf32> -> vector<32x2xf32>
    %141 = vector.extract_strided_slice %140 {offsets = [0, 0], sizes = [32, 1], strides = [1, 1]} : vector<32x2xf32> to vector<32x1xf32>
    %142 = vector.extract_strided_slice %140 {offsets = [0, 1], sizes = [32, 1], strides = [1, 1]} : vector<32x2xf32> to vector<32x1xf32>
    %143 = arith.subf %142, %141 : vector<32x1xf32>
    %144 = vector.broadcast %141 : vector<32x1xf32> to vector<32x64xf32>
    %145 = arith.addf %133, %144 : vector<32x64xf32>
    %146 = arith.mulf %8, %145 : vector<32x64xf32>
    %147 = arith.addf %118, %146 : vector<32x64xf32>
    %148 = vector.broadcast %143 : vector<32x1xf32> to vector<32x64xf32>
    %149 = arith.mulf %11, %148 : vector<32x64xf32>
    %150 = arith.addf %147, %149 : vector<32x64xf32>
    %151 = arith.addf %150, %16 : vector<32x64xf32>
    %cst_105 = arith.constant dense<0xFF800000> : vector<32xf32>
    %152 = vector.multi_reduction <maximumf>, %151, %cst_105 [1] : vector<32x64xf32> to vector<32xf32>
    %153 = vector.shape_cast %152 : vector<32xf32> to vector<32x1xf32>
    %154 = vector.broadcast %153 : vector<32x1xf32> to vector<32x64xf32>
    %155 = arith.subf %151, %154 : vector<32x64xf32>
    %156 = math.exp %155 : vector<32x64xf32>
    %cst_106 = arith.constant dense<0.000000e+00> : vector<32xf32>
    %157 = vector.multi_reduction <add>, %156, %cst_106 [1] : vector<32x64xf32> to vector<32xf32>
    %158 = vector.shape_cast %157 : vector<32xf32> to vector<32x1xf32>
    %159 = tpu.reciprocal %158 {approx = true} : vector<32x1xf32> -> vector<32x1xf32>
    %160 = vector.broadcast %159 : vector<32x1xf32> to vector<32x64xf32>
    %161 = arith.mulf %156, %160 : vector<32x64xf32>
    %162 = arith.truncf %161 : vector<32x64xf32> to vector<32x64xbf16>
    %cst_107 = arith.constant dense<0.000000e+00> : vector<32x16xf32>
    %163 = tpu.matmul %162, %112, %cst_107 {dimension_numbers = #tpu.dot_dimension_numbers<[1], [0], [0], [1], [0, 0, 1, 1], [], []>} : vector<32x64xbf16>, vector<64x16xbf16>, vector<32x16xf32> -> vector<32x16xf32>
    %c0_108 = arith.constant 0 : index
    %c16 = arith.constant 16 : index
    %164 = vector.load %arg27[%c0_108, %c16] : memref<32x64xf32, #tpu.memory_space<vmem>>, vector<32x16xf32>
    tpu.vector_store %arg27[%c0_108, %c16], %163 {strides = array<i32>} : memref<32x64xf32, #tpu.memory_space<vmem>>, vector<32x16xf32>,
    %c2 = arith.constant 2 : index
    %c0_109 = arith.constant 0 : index
    %c0_110 = arith.constant 0 : index
    %165 = vector.load %arg12[%c2, %c0_109, %c0_110] : memref<4x64x16xbf16, #tpu.memory_space<vmem>>, vector<1x64x16xbf16>
    %166 = vector.shape_cast %165 : vector<1x64x16xbf16> to vector<64x16xbf16>
    %cst_111 = arith.constant dense<0.000000e+00> : vector<32x16xf32>
    %167 = tpu.matmul %1, %166, %cst_111 {dimension_numbers = #tpu.dot_dimension_numbers<[1], [0], [0], [1], [0, 0, 1, 1], [], []>} : vector<32x64xbf16>, vector<64x16xbf16>, vector<32x16xf32> -> vector<32x16xf32>
    %c2_112 = arith.constant 2 : index
    %c0_113 = arith.constant 0 : index
    %c0_114 = arith.constant 0 : index
    %168 = vector.load %arg13[%c2_112, %c0_113, %c0_114] : memref<4x64x16xbf16, #tpu.memory_space<vmem>>, vector<1x64x16xbf16>
    %169 = vector.shape_cast %168 : vector<1x64x16xbf16> to vector<64x16xbf16>
    %cst_115 = arith.constant dense<0.000000e+00> : vector<64x16xf32>
    %170 = tpu.matmul %3, %169, %cst_115 {dimension_numbers = #tpu.dot_dimension_numbers<[1], [0], [0], [1], [0, 0, 1, 1], [], []>} : vector<64x64xbf16>, vector<64x16xbf16>, vector<64x16xf32> -> vector<64x16xf32>
    %c2_116 = arith.constant 2 : index
    %c0_117 = arith.constant 0 : index
    %c0_118 = arith.constant 0 : index
    %171 = vector.load %arg16[%c2_116, %c0_117, %c0_118] : memref<4x1x16xf32, #tpu.memory_space<vmem>>, vector<1x1x16xf32>
    %172 = vector.shape_cast %171 : vector<1x1x16xf32> to vector<1x16xf32>
    %173 = vector.broadcast %172 : vector<1x16xf32> to vector<64x16xf32>
    %174 = arith.addf %170, %173 : vector<64x16xf32>
    %175 = arith.truncf %174 : vector<64x16xf32> to vector<64x16xbf16>
    %c2_119 = arith.constant 2 : index
    %c0_120 = arith.constant 0 : index
    %c0_121 = arith.constant 0 : index
    %176 = vector.load %arg14[%c2_119, %c0_120, %c0_121] : memref<4x64x16xbf16, #tpu.memory_space<vmem>>, vector<1x64x16xbf16>
    %177 = vector.shape_cast %176 : vector<1x64x16xbf16> to vector<64x16xbf16>
    %cst_122 = arith.constant dense<0.000000e+00> : vector<64x16xf32>
    %178 = tpu.matmul %5, %177, %cst_122 {dimension_numbers = #tpu.dot_dimension_numbers<[1], [0], [0], [1], [0, 0, 1, 1], [], []>} : vector<64x64xbf16>, vector<64x16xbf16>, vector<64x16xf32> -> vector<64x16xf32>
    %c2_123 = arith.constant 2 : index
    %c0_124 = arith.constant 0 : index
    %c0_125 = arith.constant 0 : index
    %179 = vector.load %arg17[%c2_123, %c0_124, %c0_125] : memref<4x1x16xf32, #tpu.memory_space<vmem>>, vector<1x1x16xf32>
    %180 = vector.shape_cast %179 : vector<1x1x16xf32> to vector<1x16xf32>
    %181 = vector.broadcast %180 : vector<1x16xf32> to vector<64x16xf32>
    %182 = arith.addf %178, %181 : vector<64x16xf32>
    %183 = arith.truncf %182 : vector<64x16xf32> to vector<64x16xbf16>
    %c2_126 = arith.constant 2 : index
    %c0_127 = arith.constant 0 : index
    %c0_128 = arith.constant 0 : index
    %184 = vector.load %arg18[%c2_126, %c0_127, %c0_128] : memref<4x1x16xf32, #tpu.memory_space<vmem>>, vector<1x1x16xf32>
    %185 = vector.shape_cast %184 : vector<1x1x16xf32> to vector<1x16xf32>
    %186 = vector.broadcast %185 : vector<1x16xf32> to vector<32x16xf32>
    %187 = arith.addf %167, %186 : vector<32x16xf32>
    %188 = arith.truncf %187 : vector<32x16xf32> to vector<32x16xbf16>
    %cst_129 = arith.constant dense<0.000000e+00> : vector<32x64xf32>
    %189 = tpu.matmul %188, %175, %cst_129 {dimension_numbers = #tpu.dot_dimension_numbers<[1], [1], [0], [0], [0, 0, 1, 0], [], []>} : vector<32x16xbf16>, vector<64x16xbf16>, vector<32x64xf32> -> vector<32x64xf32>
    %c2_130 = arith.constant 2 : index
    %c0_131 = arith.constant 0 : index
    %c0_132 = arith.constant 0 : index
    %190 = vector.load %arg19[%c2_130, %c0_131, %c0_132] : memref<4x1x16xf32, #tpu.memory_space<vmem>>, vector<1x1x16xf32>
    %191 = vector.shape_cast %190 : vector<1x1x16xf32> to vector<1x16xf32>
    %192 = vector.broadcast %191 : vector<1x16xf32> to vector<32x16xf32>
    %193 = arith.addf %167, %192 : vector<32x16xf32>
    %194 = arith.truncf %193 : vector<32x16xf32> to vector<32x16xbf16>
    %c2_133 = arith.constant 2 : index
    %c0_134 = arith.constant 0 : index
    %c0_135 = arith.constant 0 : index
    %195 = vector.load %arg15[%c2_133, %c0_134, %c0_135] : memref<4x64x16xbf16, #tpu.memory_space<vmem>>, vector<1x64x16xbf16>
    %196 = vector.shape_cast %195 : vector<1x64x16xbf16> to vector<64x16xbf16>
    %cst_136 = arith.constant dense<0.000000e+00> : vector<32x64xf32>
    %197 = tpu.matmul %194, %196, %cst_136 {dimension_numbers = #tpu.dot_dimension_numbers<[1], [1], [0], [0], [0, 0, 1, 0], [], []>} : vector<32x16xbf16>, vector<64x16xbf16>, vector<32x64xf32> -> vector<32x64xf32>
    %198 = arith.mulf %197, %18 : vector<32x64xf32>
    %199 = arith.truncf %198 : vector<32x64xf32> to vector<32x64xbf16>
    %cst_137 = arith.constant dense<0.000000e+00> : vector<32x64xf32>
    %200 = tpu.matmul %199, %21, %cst_137 {dimension_numbers = #tpu.dot_dimension_numbers<[1], [1], [0], [0], [0, 0, 1, 0], [], []>} : vector<32x64xbf16>, vector<64x64xbf16>, vector<32x64xf32> -> vector<32x64xf32>
    %201 = arith.mulf %197, %20 : vector<32x64xf32>
    %202 = arith.truncf %201 : vector<32x64xf32> to vector<32x64xbf16>
    %cst_138 = arith.constant dense<0.000000e+00> : vector<32x64xf32>
    %203 = tpu.matmul %202, %22, %cst_138 {dimension_numbers = #tpu.dot_dimension_numbers<[1], [1], [0], [0], [0, 0, 1, 0], [], []>} : vector<32x64xbf16>, vector<64x64xbf16>, vector<32x64xf32> -> vector<32x64xf32>
    %204 = arith.addf %200, %203 : vector<32x64xf32>
    %c2_139 = arith.constant 2 : index
    %c0_140 = arith.constant 0 : index
    %c0_141 = arith.constant 0 : index
    %205 = vector.load %arg20[%c2_139, %c0_140, %c0_141] : memref<4x1x16xf32, #tpu.memory_space<vmem>>, vector<1x1x16xf32>
    %206 = vector.shape_cast %205 : vector<1x1x16xf32> to vector<1x16xf32>
    %207 = vector.broadcast %206 : vector<1x16xf32> to vector<32x16xf32>
    %208 = arith.addf %167, %207 : vector<32x16xf32>
    %c2_142 = arith.constant 2 : index
    %c0_143 = arith.constant 0 : index
    %c0_144 = arith.constant 0 : index
    %209 = vector.load %arg21[%c2_142, %c0_143, %c0_144] : memref<4x2x16xf32, #tpu.memory_space<vmem>>, vector<1x2x16xf32>
    %210 = vector.shape_cast %209 : vector<1x2x16xf32> to vector<2x16xf32>
    %cst_145 = arith.constant dense<0.000000e+00> : vector<32x2xf32>
    %211 = tpu.matmul %208, %210, %cst_145 {dimension_numbers = #tpu.dot_dimension_numbers<[1], [1], [0], [0], [0, 0, 1, 0], [], []>} : vector<32x16xf32>, vector<2x16xf32>, vector<32x2xf32> -> vector<32x2xf32>
    %212 = vector.extract_strided_slice %211 {offsets = [0, 0], sizes = [32, 1], strides = [1, 1]} : vector<32x2xf32> to vector<32x1xf32>
    %213 = vector.extract_strided_slice %211 {offsets = [0, 1], sizes = [32, 1], strides = [1, 1]} : vector<32x2xf32> to vector<32x1xf32>
    %214 = arith.subf %213, %212 : vector<32x1xf32>
    %215 = vector.broadcast %212 : vector<32x1xf32> to vector<32x64xf32>
    %216 = arith.addf %204, %215 : vector<32x64xf32>
    %217 = arith.mulf %8, %216 : vector<32x64xf32>
    %218 = arith.addf %189, %217 : vector<32x64xf32>
    %219 = vector.broadcast %214 : vector<32x1xf32> to vector<32x64xf32>
    %220 = arith.mulf %11, %219 : vector<32x64xf32>
    %221 = arith.addf %218, %220 : vector<32x64xf32>
    %222 = arith.addf %221, %16 : vector<32x64xf32>
    %cst_146 = arith.constant dense<0xFF800000> : vector<32xf32>
    %223 = vector.multi_reduction <maximumf>, %222, %cst_146 [1] : vector<32x64xf32> to vector<32xf32>
    %224 = vector.shape_cast %223 : vector<32xf32> to vector<32x1xf32>
    %225 = vector.broadcast %224 : vector<32x1xf32> to vector<32x64xf32>
    %226 = arith.subf %222, %225 : vector<32x64xf32>
    %227 = math.exp %226 : vector<32x64xf32>
    %cst_147 = arith.constant dense<0.000000e+00> : vector<32xf32>
    %228 = vector.multi_reduction <add>, %227, %cst_147 [1] : vector<32x64xf32> to vector<32xf32>
    %229 = vector.shape_cast %228 : vector<32xf32> to vector<32x1xf32>
    %230 = tpu.reciprocal %229 {approx = true} : vector<32x1xf32> -> vector<32x1xf32>
    %231 = vector.broadcast %230 : vector<32x1xf32> to vector<32x64xf32>
    %232 = arith.mulf %227, %231 : vector<32x64xf32>
    %233 = arith.truncf %232 : vector<32x64xf32> to vector<32x64xbf16>
    %cst_148 = arith.constant dense<0.000000e+00> : vector<32x16xf32>
    %234 = tpu.matmul %233, %183, %cst_148 {dimension_numbers = #tpu.dot_dimension_numbers<[1], [0], [0], [1], [0, 0, 1, 1], [], []>} : vector<32x64xbf16>, vector<64x16xbf16>, vector<32x16xf32> -> vector<32x16xf32>
    %c0_149 = arith.constant 0 : index
    %c32 = arith.constant 32 : index
    %235 = vector.load %arg27[%c0_149, %c32] : memref<32x64xf32, #tpu.memory_space<vmem>>, vector<32x16xf32>
    tpu.vector_store %arg27[%c0_149, %c32], %234 {strides = array<i32>} : memref<32x64xf32, #tpu.memory_space<vmem>>, vector<32x16xf32>,
    %c3 = arith.constant 3 : index
    %c0_150 = arith.constant 0 : index
    %c0_151 = arith.constant 0 : index
    %236 = vector.load %arg12[%c3, %c0_150, %c0_151] : memref<4x64x16xbf16, #tpu.memory_space<vmem>>, vector<1x64x16xbf16>
    %237 = vector.shape_cast %236 : vector<1x64x16xbf16> to vector<64x16xbf16>
    %cst_152 = arith.constant dense<0.000000e+00> : vector<32x16xf32>
    %238 = tpu.matmul %1, %237, %cst_152 {dimension_numbers = #tpu.dot_dimension_numbers<[1], [0], [0], [1], [0, 0, 1, 1], [], []>} : vector<32x64xbf16>, vector<64x16xbf16>, vector<32x16xf32> -> vector<32x16xf32>
    %c3_153 = arith.constant 3 : index
    %c0_154 = arith.constant 0 : index
    %c0_155 = arith.constant 0 : index
    %239 = vector.load %arg13[%c3_153, %c0_154, %c0_155] : memref<4x64x16xbf16, #tpu.memory_space<vmem>>, vector<1x64x16xbf16>
    %240 = vector.shape_cast %239 : vector<1x64x16xbf16> to vector<64x16xbf16>
    %cst_156 = arith.constant dense<0.000000e+00> : vector<64x16xf32>
    %241 = tpu.matmul %3, %240, %cst_156 {dimension_numbers = #tpu.dot_dimension_numbers<[1], [0], [0], [1], [0, 0, 1, 1], [], []>} : vector<64x64xbf16>, vector<64x16xbf16>, vector<64x16xf32> -> vector<64x16xf32>
    %c3_157 = arith.constant 3 : index
    %c0_158 = arith.constant 0 : index
    %c0_159 = arith.constant 0 : index
    %242 = vector.load %arg16[%c3_157, %c0_158, %c0_159] : memref<4x1x16xf32, #tpu.memory_space<vmem>>, vector<1x1x16xf32>
    %243 = vector.shape_cast %242 : vector<1x1x16xf32> to vector<1x16xf32>
    %244 = vector.broadcast %243 : vector<1x16xf32> to vector<64x16xf32>
    %245 = arith.addf %241, %244 : vector<64x16xf32>
    %246 = arith.truncf %245 : vector<64x16xf32> to vector<64x16xbf16>
    %c3_160 = arith.constant 3 : index
    %c0_161 = arith.constant 0 : index
    %c0_162 = arith.constant 0 : index
    %247 = vector.load %arg14[%c3_160, %c0_161, %c0_162] : memref<4x64x16xbf16, #tpu.memory_space<vmem>>, vector<1x64x16xbf16>
    %248 = vector.shape_cast %247 : vector<1x64x16xbf16> to vector<64x16xbf16>
    %cst_163 = arith.constant dense<0.000000e+00> : vector<64x16xf32>
    %249 = tpu.matmul %5, %248, %cst_163 {dimension_numbers = #tpu.dot_dimension_numbers<[1], [0], [0], [1], [0, 0, 1, 1], [], []>} : vector<64x64xbf16>, vector<64x16xbf16>, vector<64x16xf32> -> vector<64x16xf32>
    %c3_164 = arith.constant 3 : index
    %c0_165 = arith.constant 0 : index
    %c0_166 = arith.constant 0 : index
    %250 = vector.load %arg17[%c3_164, %c0_165, %c0_166] : memref<4x1x16xf32, #tpu.memory_space<vmem>>, vector<1x1x16xf32>
    %251 = vector.shape_cast %250 : vector<1x1x16xf32> to vector<1x16xf32>
    %252 = vector.broadcast %251 : vector<1x16xf32> to vector<64x16xf32>
    %253 = arith.addf %249, %252 : vector<64x16xf32>
    %254 = arith.truncf %253 : vector<64x16xf32> to vector<64x16xbf16>
    %c3_167 = arith.constant 3 : index
    %c0_168 = arith.constant 0 : index
    %c0_169 = arith.constant 0 : index
    %255 = vector.load %arg18[%c3_167, %c0_168, %c0_169] : memref<4x1x16xf32, #tpu.memory_space<vmem>>, vector<1x1x16xf32>
    %256 = vector.shape_cast %255 : vector<1x1x16xf32> to vector<1x16xf32>
    %257 = vector.broadcast %256 : vector<1x16xf32> to vector<32x16xf32>
    %258 = arith.addf %238, %257 : vector<32x16xf32>
    %259 = arith.truncf %258 : vector<32x16xf32> to vector<32x16xbf16>
    %cst_170 = arith.constant dense<0.000000e+00> : vector<32x64xf32>
    %260 = tpu.matmul %259, %246, %cst_170 {dimension_numbers = #tpu.dot_dimension_numbers<[1], [1], [0], [0], [0, 0, 1, 0], [], []>} : vector<32x16xbf16>, vector<64x16xbf16>, vector<32x64xf32> -> vector<32x64xf32>
    %c3_171 = arith.constant 3 : index
    %c0_172 = arith.constant 0 : index
    %c0_173 = arith.constant 0 : index
    %261 = vector.load %arg19[%c3_171, %c0_172, %c0_173] : memref<4x1x16xf32, #tpu.memory_space<vmem>>, vector<1x1x16xf32>
    %262 = vector.shape_cast %261 : vector<1x1x16xf32> to vector<1x16xf32>
    %263 = vector.broadcast %262 : vector<1x16xf32> to vector<32x16xf32>
    %264 = arith.addf %238, %263 : vector<32x16xf32>
    %265 = arith.truncf %264 : vector<32x16xf32> to vector<32x16xbf16>
    %c3_174 = arith.constant 3 : index
    %c0_175 = arith.constant 0 : index
    %c0_176 = arith.constant 0 : index
    %266 = vector.load %arg15[%c3_174, %c0_175, %c0_176] : memref<4x64x16xbf16, #tpu.memory_space<vmem>>, vector<1x64x16xbf16>
    %267 = vector.shape_cast %266 : vector<1x64x16xbf16> to vector<64x16xbf16>
    %cst_177 = arith.constant dense<0.000000e+00> : vector<32x64xf32>
    %268 = tpu.matmul %265, %267, %cst_177 {dimension_numbers = #tpu.dot_dimension_numbers<[1], [1], [0], [0], [0, 0, 1, 0], [], []>} : vector<32x16xbf16>, vector<64x16xbf16>, vector<32x64xf32> -> vector<32x64xf32>
    %269 = arith.mulf %268, %18 : vector<32x64xf32>
    %270 = arith.truncf %269 : vector<32x64xf32> to vector<32x64xbf16>
    %cst_178 = arith.constant dense<0.000000e+00> : vector<32x64xf32>
    %271 = tpu.matmul %270, %21, %cst_178 {dimension_numbers = #tpu.dot_dimension_numbers<[1], [1], [0], [0], [0, 0, 1, 0], [], []>} : vector<32x64xbf16>, vector<64x64xbf16>, vector<32x64xf32> -> vector<32x64xf32>
    %272 = arith.mulf %268, %20 : vector<32x64xf32>
    %273 = arith.truncf %272 : vector<32x64xf32> to vector<32x64xbf16>
    %cst_179 = arith.constant dense<0.000000e+00> : vector<32x64xf32>
    %274 = tpu.matmul %273, %22, %cst_179 {dimension_numbers = #tpu.dot_dimension_numbers<[1], [1], [0], [0], [0, 0, 1, 0], [], []>} : vector<32x64xbf16>, vector<64x64xbf16>, vector<32x64xf32> -> vector<32x64xf32>
    %275 = arith.addf %271, %274 : vector<32x64xf32>
    %c3_180 = arith.constant 3 : index
    %c0_181 = arith.constant 0 : index
    %c0_182 = arith.constant 0 : index
    %276 = vector.load %arg20[%c3_180, %c0_181, %c0_182] : memref<4x1x16xf32, #tpu.memory_space<vmem>>, vector<1x1x16xf32>
    %277 = vector.shape_cast %276 : vector<1x1x16xf32> to vector<1x16xf32>
    %278 = vector.broadcast %277 : vector<1x16xf32> to vector<32x16xf32>
    %279 = arith.addf %238, %278 : vector<32x16xf32>
    %c3_183 = arith.constant 3 : index
    %c0_184 = arith.constant 0 : index
    %c0_185 = arith.constant 0 : index
    %280 = vector.load %arg21[%c3_183, %c0_184, %c0_185] : memref<4x2x16xf32, #tpu.memory_space<vmem>>, vector<1x2x16xf32>
    %281 = vector.shape_cast %280 : vector<1x2x16xf32> to vector<2x16xf32>
    %cst_186 = arith.constant dense<0.000000e+00> : vector<32x2xf32>
    %282 = tpu.matmul %279, %281, %cst_186 {dimension_numbers = #tpu.dot_dimension_numbers<[1], [1], [0], [0], [0, 0, 1, 0], [], []>} : vector<32x16xf32>, vector<2x16xf32>, vector<32x2xf32> -> vector<32x2xf32>
    %283 = vector.extract_strided_slice %282 {offsets = [0, 0], sizes = [32, 1], strides = [1, 1]} : vector<32x2xf32> to vector<32x1xf32>
    %284 = vector.extract_strided_slice %282 {offsets = [0, 1], sizes = [32, 1], strides = [1, 1]} : vector<32x2xf32> to vector<32x1xf32>
    %285 = arith.subf %284, %283 : vector<32x1xf32>
    %286 = vector.broadcast %283 : vector<32x1xf32> to vector<32x64xf32>
    %287 = arith.addf %275, %286 : vector<32x64xf32>
    %288 = arith.mulf %8, %287 : vector<32x64xf32>
    %289 = arith.addf %260, %288 : vector<32x64xf32>
    %290 = vector.broadcast %285 : vector<32x1xf32> to vector<32x64xf32>
    %291 = arith.mulf %11, %290 : vector<32x64xf32>
    %292 = arith.addf %289, %291 : vector<32x64xf32>
    %293 = arith.addf %292, %16 : vector<32x64xf32>
    %cst_187 = arith.constant dense<0xFF800000> : vector<32xf32>
    %294 = vector.multi_reduction <maximumf>, %293, %cst_187 [1] : vector<32x64xf32> to vector<32xf32>
    %295 = vector.shape_cast %294 : vector<32xf32> to vector<32x1xf32>
    %296 = vector.broadcast %295 : vector<32x1xf32> to vector<32x64xf32>
    %297 = arith.subf %293, %296 : vector<32x64xf32>
    %298 = math.exp %297 : vector<32x64xf32>
    %cst_188 = arith.constant dense<0.000000e+00> : vector<32xf32>
    %299 = vector.multi_reduction <add>, %298, %cst_188 [1] : vector<32x64xf32> to vector<32xf32>
    %300 = vector.shape_cast %299 : vector<32xf32> to vector<32x1xf32>
    %301 = tpu.reciprocal %300 {approx = true} : vector<32x1xf32> -> vector<32x1xf32>
    %302 = vector.broadcast %301 : vector<32x1xf32> to vector<32x64xf32>
    %303 = arith.mulf %298, %302 : vector<32x64xf32>
    %304 = arith.truncf %303 : vector<32x64xf32> to vector<32x64xbf16>
    %cst_189 = arith.constant dense<0.000000e+00> : vector<32x16xf32>
    %305 = tpu.matmul %304, %254, %cst_189 {dimension_numbers = #tpu.dot_dimension_numbers<[1], [0], [0], [1], [0, 0, 1, 1], [], []>} : vector<32x64xbf16>, vector<64x16xbf16>, vector<32x16xf32> -> vector<32x16xf32>
    %c0_190 = arith.constant 0 : index
    %c48 = arith.constant 48 : index
    %306 = vector.load %arg27[%c0_190, %c48] : memref<32x64xf32, #tpu.memory_space<vmem>>, vector<32x16xf32>
    tpu.vector_store %arg27[%c0_190, %c48], %305 {strides = array<i32>} : memref<32x64xf32, #tpu.memory_space<vmem>>, vector<32x16xf32>,
    %c0_191 = arith.constant 0 : index
    %c0_192 = arith.constant 0 : index
    %307 = vector.load %arg27[%c0_191, %c0_192] : memref<32x64xf32, #tpu.memory_space<vmem>>, vector<32x64xf32>
    %308 = arith.truncf %307 : vector<32x64xf32> to vector<32x64xbf16>
    %c0_193 = arith.constant 0 : index
    %c0_194 = arith.constant 0 : index
    %309 = vector.load %arg22[%c0_193, %c0_194] : memref<64x64xbf16, #tpu.memory_space<vmem>>, vector<64x64xbf16>
    %cst_195 = arith.constant dense<0.000000e+00> : vector<32x64xf32>
    %310 = tpu.matmul %308, %309, %cst_195 {dimension_numbers = #tpu.dot_dimension_numbers<[1], [0], [0], [1], [0, 0, 1, 1], [], []>} : vector<32x64xbf16>, vector<64x64xbf16>, vector<32x64xf32> -> vector<32x64xf32>
    %c0_196 = arith.constant 0 : index
    %c0_197 = arith.constant 0 : index
    %311 = vector.load %arg23[%c0_196, %c0_197] : memref<1x64xf32, #tpu.memory_space<vmem>>, vector<1x64xf32>
    %312 = vector.broadcast %311 : vector<1x64xf32> to vector<32x64xf32>
    %313 = arith.addf %310, %312 : vector<32x64xf32>
    %314 = arith.extf %1 : vector<32x64xbf16> to vector<32x64xf32>
    %315 = arith.addf %314, %313 : vector<32x64xf32>
    %cst_198 = arith.constant dense<0.000000e+00> : vector<32xf32>
    %316 = vector.multi_reduction <add>, %315, %cst_198 [1] : vector<32x64xf32> to vector<32xf32>
    %317 = vector.shape_cast %316 : vector<32xf32> to vector<32x1xf32>
    %cst_199 = arith.constant 6.400000e+01 : f32
    %318 = vector.broadcast %cst_199 : f32 to vector<32x1xf32>
    %319 = arith.divf %317, %318 : vector<32x1xf32>
    %320 = vector.broadcast %319 : vector<32x1xf32> to vector<32x64xf32>
    %321 = arith.subf %315, %320 : vector<32x64xf32>
    %322 = arith.mulf %321, %321 : vector<32x64xf32>
    %cst_200 = arith.constant dense<0.000000e+00> : vector<32xf32>
    %323 = vector.multi_reduction <add>, %322, %cst_200 [1] : vector<32x64xf32> to vector<32xf32>
    %324 = vector.shape_cast %323 : vector<32xf32> to vector<32x1xf32>
    %cst_201 = arith.constant 6.400000e+01 : f32
    %325 = vector.broadcast %cst_201 : f32 to vector<32x1xf32>
    %326 = arith.divf %324, %325 : vector<32x1xf32>
    %327 = vector.broadcast %319 : vector<32x1xf32> to vector<32x64xf32>
    %328 = arith.subf %315, %327 : vector<32x64xf32>
    %cst_202 = arith.constant 9.99999974E-6 : f32
    %329 = vector.broadcast %cst_202 : f32 to vector<32x1xf32>
    %330 = arith.addf %326, %329 : vector<32x1xf32>
    %331 = math.rsqrt %330 : vector<32x1xf32>
    %332 = vector.broadcast %331 : vector<32x1xf32> to vector<32x64xf32>
    %333 = arith.mulf %328, %332 : vector<32x64xf32>
    %c0_203 = arith.constant 0 : index
    %c0_204 = arith.constant 0 : index
    %334 = vector.load %arg24[%c0_203, %c0_204] : memref<1x64xf32, #tpu.memory_space<vmem>>, vector<1x64xf32>
    %335 = vector.broadcast %334 : vector<1x64xf32> to vector<32x64xf32>
    %336 = arith.mulf %333, %335 : vector<32x64xf32>
    %c0_205 = arith.constant 0 : index
    %c0_206 = arith.constant 0 : index
    %337 = vector.load %arg25[%c0_205, %c0_206] : memref<1x64xf32, #tpu.memory_space<vmem>>, vector<1x64xf32>
    %338 = vector.broadcast %337 : vector<1x64xf32> to vector<32x64xf32>
    %339 = arith.addf %336, %338 : vector<32x64xf32>
    %c0_207 = arith.constant 0 : index
    %c0_208 = arith.constant 0 : index
    %c0_209 = arith.constant 0 : index
    %340 = vector.load %arg26[%c0_207, %c0_208, %c0_209] : memref<1x32x64xf32, #tpu.memory_space<vmem>>, vector<1x32x64xf32>
    %341 = vector.shape_cast %340 : vector<1x32x64xf32> to vector<32x64xf32>
    %342 = vector.shape_cast %339 : vector<32x64xf32> to vector<1x32x64xf32>
    tpu.vector_store %arg26[%c0_207, %c0_208, %c0_209], %342 {strides = array<i32>} : memref<1x32x64xf32, #tpu.memory_space<vmem>>, vector<1x32x64xf32>,
    return
  }
  func.func @transform_0(%arg0: i32, %arg1: i32) -> (i32, i32, i32) {
    %c0_i32 = arith.constant 0 : i32
    %c0_i32_0 = arith.constant 0 : i32
    return %arg0, %arg1, %c0_i32 : i32, i32, i32
  }
  func.func @transform_1(%arg0: i32, %arg1: i32) -> (i32, i32, i32) {
    %c0_i32 = arith.constant 0 : i32
    %c0_i32_0 = arith.constant 0 : i32
    %c0_i32_1 = arith.constant 0 : i32
    return %arg0, %c0_i32, %c0_i32_0 : i32, i32, i32
  }
  func.func @transform_2(%arg0: i32, %arg1: i32) -> (i32, i32, i32) {
    %c0_i32 = arith.constant 0 : i32
    %c0_i32_0 = arith.constant 0 : i32
    %c0_i32_1 = arith.constant 0 : i32
    return %arg0, %c0_i32, %c0_i32_0 : i32, i32, i32
  }
  func.func @transform_3(%arg0: i32, %arg1: i32) -> (i32, i32, i32) {
    %c0_i32 = arith.constant 0 : i32
    %c0_i32_0 = arith.constant 0 : i32
    return %arg0, %arg1, %c0_i32 : i32, i32, i32
  }
  func.func @transform_4(%arg0: i32, %arg1: i32) -> (i32, i32, i32) {
    %c0_i32 = arith.constant 0 : i32
    %c0_i32_0 = arith.constant 0 : i32
    return %arg0, %arg1, %c0_i32 : i32, i32, i32
  }
  func.func @transform_5(%arg0: i32, %arg1: i32) -> (i32, i32, i32) {
    %c0_i32 = arith.constant 0 : i32
    %c0_i32_0 = arith.constant 0 : i32
    return %arg0, %arg1, %c0_i32 : i32, i32, i32
  }
  func.func @transform_6(%arg0: i32, %arg1: i32) -> (i32, i32) {
    %c0_i32 = arith.constant 0 : i32
    %c0_i32_0 = arith.constant 0 : i32
    return %arg1, %c0_i32 : i32, i32
  }
  func.func @transform_7(%arg0: i32, %arg1: i32) -> (i32, i32) {
    %c0_i32 = arith.constant 0 : i32
    %c0_i32_0 = arith.constant 0 : i32
    return %arg1, %c0_i32 : i32, i32
  }
  func.func @transform_8(%arg0: i32, %arg1: i32) -> (i32, i32) {
    %c0_i32 = arith.constant 0 : i32
    %c0_i32_0 = arith.constant 0 : i32
    %c0_i32_1 = arith.constant 0 : i32
    return %c0_i32, %c0_i32_0 : i32, i32
  }
  func.func @transform_9(%arg0: i32, %arg1: i32) -> (i32, i32) {
    %c0_i32 = arith.constant 0 : i32
    %c0_i32_0 = arith.constant 0 : i32
    %c0_i32_1 = arith.constant 0 : i32
    return %c0_i32, %c0_i32_0 : i32, i32
  }
  func.func @transform_10(%arg0: i32, %arg1: i32) -> (i32, i32, i32) {
    %c0_i32 = arith.constant 0 : i32
    %c0_i32_0 = arith.constant 0 : i32
    %c0_i32_1 = arith.constant 0 : i32
    %c0_i32_2 = arith.constant 0 : i32
    return %c0_i32, %c0_i32_0, %c0_i32_1 : i32, i32, i32
  }
  func.func @transform_11(%arg0: i32, %arg1: i32) -> (i32, i32, i32) {
    %c0_i32 = arith.constant 0 : i32
    %c0_i32_0 = arith.constant 0 : i32
    %c0_i32_1 = arith.constant 0 : i32
    %c0_i32_2 = arith.constant 0 : i32
    return %c0_i32, %c0_i32_0, %c0_i32_1 : i32, i32, i32
  }
  func.func @transform_12(%arg0: i32, %arg1: i32) -> (i32, i32, i32) {
    %c0_i32 = arith.constant 0 : i32
    %c0_i32_0 = arith.constant 0 : i32
    %c0_i32_1 = arith.constant 0 : i32
    %c0_i32_2 = arith.constant 0 : i32
    return %c0_i32, %c0_i32_0, %c0_i32_1 : i32, i32, i32
  }
  func.func @transform_13(%arg0: i32, %arg1: i32) -> (i32, i32, i32) {
    %c0_i32 = arith.constant 0 : i32
    %c0_i32_0 = arith.constant 0 : i32
    %c0_i32_1 = arith.constant 0 : i32
    %c0_i32_2 = arith.constant 0 : i32
    return %c0_i32, %c0_i32_0, %c0_i32_1 : i32, i32, i32
  }
  func.func @transform_14(%arg0: i32, %arg1: i32) -> (i32, i32, i32) {
    %c0_i32 = arith.constant 0 : i32
    %c0_i32_0 = arith.constant 0 : i32
    %c0_i32_1 = arith.constant 0 : i32
    %c0_i32_2 = arith.constant 0 : i32
    return %c0_i32, %c0_i32_0, %c0_i32_1 : i32, i32, i32
  }
  func.func @transform_15(%arg0: i32, %arg1: i32) -> (i32, i32, i32) {
    %c0_i32 = arith.constant 0 : i32
    %c0_i32_0 = arith.constant 0 : i32
    %c0_i32_1 = arith.constant 0 : i32
    %c0_i32_2 = arith.constant 0 : i32
    return %c0_i32, %c0_i32_0, %c0_i32_1 : i32, i32, i32
  }
  func.func @transform_16(%arg0: i32, %arg1: i32) -> (i32, i32, i32) {
    %c0_i32 = arith.constant 0 : i32
    %c0_i32_0 = arith.constant 0 : i32
    %c0_i32_1 = arith.constant 0 : i32
    %c0_i32_2 = arith.constant 0 : i32
    return %c0_i32, %c0_i32_0, %c0_i32_1 : i32, i32, i32
  }
  func.func @transform_17(%arg0: i32, %arg1: i32) -> (i32, i32, i32) {
    %c0_i32 = arith.constant 0 : i32
    %c0_i32_0 = arith.constant 0 : i32
    %c0_i32_1 = arith.constant 0 : i32
    %c0_i32_2 = arith.constant 0 : i32
    return %c0_i32, %c0_i32_0, %c0_i32_1 : i32, i32, i32
  }
  func.func @transform_18(%arg0: i32, %arg1: i32) -> (i32, i32, i32) {
    %c0_i32 = arith.constant 0 : i32
    %c0_i32_0 = arith.constant 0 : i32
    %c0_i32_1 = arith.constant 0 : i32
    %c0_i32_2 = arith.constant 0 : i32
    return %c0_i32, %c0_i32_0, %c0_i32_1 : i32, i32, i32
  }
  func.func @transform_19(%arg0: i32, %arg1: i32) -> (i32, i32, i32) {
    %c0_i32 = arith.constant 0 : i32
    %c0_i32_0 = arith.constant 0 : i32
    %c0_i32_1 = arith.constant 0 : i32
    %c0_i32_2 = arith.constant 0 : i32
    return %c0_i32, %c0_i32_0, %c0_i32_1 : i32, i32, i32
  }
  func.func @transform_20(%arg0: i32, %arg1: i32) -> (i32, i32) {
    %c0_i32 = arith.constant 0 : i32
    %c0_i32_0 = arith.constant 0 : i32
    %c0_i32_1 = arith.constant 0 : i32
    return %c0_i32, %c0_i32_0 : i32, i32
  }
  func.func @transform_21(%arg0: i32, %arg1: i32) -> (i32, i32) {
    %c0_i32 = arith.constant 0 : i32
    %c0_i32_0 = arith.constant 0 : i32
    %c0_i32_1 = arith.constant 0 : i32
    return %c0_i32, %c0_i32_0 : i32, i32
  }
  func.func @transform_22(%arg0: i32, %arg1: i32) -> (i32, i32) {
    %c0_i32 = arith.constant 0 : i32
    %c0_i32_0 = arith.constant 0 : i32
    %c0_i32_1 = arith.constant 0 : i32
    return %c0_i32, %c0_i32_0 : i32, i32
  }
  func.func @transform_23(%arg0: i32, %arg1: i32) -> (i32, i32) {
    %c0_i32 = arith.constant 0 : i32
    %c0_i32_0 = arith.constant 0 : i32
    %c0_i32_1 = arith.constant 0 : i32
    return %c0_i32, %c0_i32_0 : i32, i32
  }
  func.func @transform_24(%arg0: i32, %arg1: i32) -> (i32, i32, i32) {
    %c0_i32 = arith.constant 0 : i32
    %c0_i32_0 = arith.constant 0 : i32
    return %arg0, %arg1, %c0_i32 : i32, i32, i32
  }
}

</mosaic_0001>

<bundles_post_ra>
// kernel: tpu_custom_call.1
= control target key start
LH: loop header
LB: loop body
LE: loop exit
PB: predicated region body
PF: predicated region fallthrough
CT: control target
= control target key end

     0   :  { %s8242_s0 = inlined_call_operand.vmem [shape: bf16[2,64,64], index: 0, kind: input, shape index: {}]   ;;  %s8243_s1 = inlined_call_operand.vmem [shape: bf16[2,64,64], index: 1, kind: input, shape index: {}]   ;;  %s8244_s2 = inlined_call_operand.vmem [shape: bf16[2,64,64], index: 2, kind: input, shape index: {}]   ;;  %s8245_s3 = inlined_call_operand.vmem [shape: s8[2,64,64], index: 3, kind: input, shape index: {}]   ;;  %s8246_s4 = inlined_call_operand.vmem [shape: s8[2,64,64], index: 4, kind: input, shape index: {}]   ;;  %s8247_s5 = inlined_call_operand.vmem [shape: s8[2,64,64], index: 5, kind: input, shape index: {}]   ;;  %s8248_s6 = inlined_call_operand.vmem [shape: bf16[64,64], index: 6, kind: input, shape index: {}]   ;;  %s8249_s7 = inlined_call_operand.vmem [shape: bf16[64,64], index: 7, kind: input, shape index: {}]   ;;  %s8250_s8 = inlined_call_operand.vmem [shape: bf16[64,64], index: 8, kind: input, shape index: {}]   ;;  %s8251_s9 = inlined_call_operand.vmem [shape: bf16[64,64], index: 9, kind: input, shape index: {}]   ;;  %s8252_s10 = inlined_call_operand.vmem [shape: bf16[4,64,16], index: 10, kind: input, shape index: {}]   ;;  %s8253_s11 = inlined_call_operand.vmem [shape: bf16[4,64,16], index: 11, kind: input, shape index: {}]   ;;  %s8254_s12 = inlined_call_operand.vmem [shape: bf16[4,64,16], index: 12, kind: input, shape index: {}]   ;;  %s8255_s13 = inlined_call_operand.vmem [shape: bf16[4,64,16], index: 13, kind: input, shape index: {}]   ;;  %s8256_s14 = inlined_call_operand.vmem [shape: f32[4,1,16], index: 14, kind: input, shape index: {}]   ;;  %s8257_s15 = inlined_call_operand.vmem [shape: f32[4,1,16], index: 15, kind: input, shape index: {}]   ;;  %s8258_s16 = inlined_call_operand.vmem [shape: f32[4,1,16], index: 16, kind: input, shape index: {}]   ;;  %s8259_s17 = inlined_call_operand.vmem [shape: f32[4,1,16], index: 17, kind: input, shape index: {}]   ;;  %s8260_s18 = inlined_call_operand.vmem [shape: f32[4,1,16], index: 18, kind: input, shape index: {}]   ;;  %s8261_s19 = inlined_call_operand.vmem [shape: f32[4,2,16], index: 19, kind: input, shape index: {}]   ;;  %s8262_s20 = inlined_call_operand.vmem [shape: bf16[64,64], index: 20, kind: input, shape index: {}]   ;;  %s8263_s21 = inlined_call_operand.vmem [shape: f32[1,64], index: 21, kind: input, shape index: {}]   ;;  %s8264_s22 = inlined_call_operand.vmem [shape: f32[1,64], index: 22, kind: input, shape index: {}]   ;;  %s8265_s23 = inlined_call_operand.vmem [shape: f32[1,64], index: 23, kind: input, shape index: {}]   ;;  %s8266_s24 = inlined_call_operand.hbm [shape: f32[2,64,64], index: 24, kind: output, shape index: {}]  }
   0x1   :  { %8312 = sst [smem:[#allocation32_spill]] %s8242_s0 }
   0x2   :  { %8313 = sst [smem:[#allocation33_spill]] %s8243_s1 }
   0x3   :  { %8314 = sst [smem:[#allocation34_spill]] %s8244_s2 }
   0x4   :  { %8315 = sst [smem:[#allocation35_spill]] %s8245_s3 }
   0x5   :  { %8316 = sst [smem:[#allocation36_spill]] %s8246_s4 }
   0x6   :  { %8317 = sst [smem:[#allocation37_spill]] %s8247_s5 }
   0x7   :  { %8318 = sst [smem:[#allocation38_spill]] %s8248_s6 }
   0x8   :  { %8319 = sst [smem:[#allocation39_spill]] %s8249_s7 }
   0x9   :  { %8320 = sst [smem:[#allocation40_spill]] %s8250_s8 }
   0xa   :  { %8321 = sst [smem:[#allocation41_spill]] %s8262_s20 }
   0xb   :  { %8322 = sst [smem:[#allocation42_spill]] %s8263_s21 }
   0xc   :  { %8323 = sst [smem:[#allocation43_spill]] %s8264_s22 }
   0xd   :  { %8324 = sst [smem:[#allocation44_spill]] %s8265_s23 }
   0xe   :  { %8325 = sst [smem:[#allocation45_spill]] %s8266_s24 }
   0xf   :  { %29 = vsyncpa [#allocation4], 0 }
  0x10   :  { %31 = vsyncpa [#allocation4 + $0x1], 0  ;;  %s6897_s5 = smov 0   ;;  %s6899_s26 = smov 0  }
  0x11   :  { %s6901_s27 = smov 0   ;;  %s6903_s28 = smov 0  }
  0x12   :  { %s6905_s6 = smov 0   ;;  %s6907_s2 = smov 0  }
  0x13   :  { %s6909_s29 = smov 0   ;;  %s6911_s0 = smov 0  }
  0x14 LB: > { %8326 = sst [smem:[#allocation6_spill]] %s6733_s5  ;;  %s5242_s7 = sadd.s32 4294967295, %s6761_s0   ;;  %s6761_s0 = sphi %s6911_s0, %s37_s0   ;;  %s6757_s29 = sphi %s6909_s29, %s8412_s29   ;;  %s6753_s2 = sphi %s6907_s2, %s8411_s2   ;;  %s6749_s6 = sphi %s6905_s6, %s8410_s6   ;;  %s6745_s28 = sphi %s6903_s28, %s8409_s28   ;;  %s6741_s27 = sphi %s6901_s27, %s8408_s27   ;;  %s6737_s26 = sphi %s6899_s26, %s8407_s26   ;;  %s6733_s5 = sphi %s6897_s5, %s8406_s5  }
  0x15   : > { %8327 = sst [smem:[#allocation7_spill]] %s6737_s26  ;;  %s5243_s30 = sadd.s32 4294967294, %s6761_s0  }
  0x16   : > { %8328 = sst [smem:[#allocation8_spill]] %s6741_s27  ;;  %s46_s3 = sadd.s32 1, %s6753_s2 }
  0x17   : > { %8329 = sst [smem:[#allocation9_spill]] %s6749_s6  ;;  %p47_p0 = scmp.ge.s32.totalorder %s46_s3, 2 }
  0x18   : > { %8330 = sst [smem:[#allocation10_spill]] %s6753_s2  ;;  %s49_s25 = sadd.s32 1, %s6757_s29 }
  0x19   : > { %8331 = sst [smem:[#allocation11_spill]] %s6757_s29  ;;  %p620_p1 = scmp.ne.s32.totalorder %s6741_s27, %s6737_s26 }
  0x1a   : > { %8332 = sst [smem:[#allocation12_spill]] %s6761_s0  ;;  %p621_p2 = scmp.eq.s32.totalorder %s5242_s7, 3 }
  0x1b   : > { %s8414_s3 = smov (%p47_p0, %s46_s3), 0  ;;  %s8416_s25 = smov (!%p47_p0, %s49_s25), %s6757_s29 }
  0x1c   : > { %8333 = sst [smem:[#allocation13_spill]] %s8414_s3  ;;  %s606_s8 = ssub.s32 %s6753_s2, %s8414_s3 }
  0x1d   : > { %p6948_p3 = por %p621_p2, %p620_p1  ;;  %p51_p4 = scmp.ge.s32.totalorder %s8416_s25, 2 }
  0x1e   : > { %p626_p5 = scmp.ne.s32.totalorder %s6737_s26, %s6733_s5  ;;  %p627_p6 = scmp.eq.s32.totalorder %s5243_s30, 3 }
  0x1f   : > { %s8334_s4 = scalar_select %p6948_p3, 1, 0 }
  0x20   : > { %p5246_p7 = scmp.ge.s32.totalorder %s6761_s0, 1  ;;  %s8418_s25 = smov (%p51_p4, %s8416_s25), 0 }
  0x21   : > { %8335 = sst [smem:[#allocation14_spill]] %s8334_s4  ;;  %p6957_p8 = por %p627_p6, %p626_p5 }
  0x22   : > { %8336 = sst [smem:[#allocation15_spill]] %s8418_s25  ;;  %p773_p9 = scmp.lt.s32.totalorder %s6761_s0, 5 }
  0x23   : > { %s8337_s1 = scalar_select %p6957_p8, 1, 0 }
  0x24   : > { %s605_s7 = ssub.s32 %s6757_s29, %s8418_s25  ;;  %s610_s24 = sadd.s32 1, %s6741_s27 }
  0x25   : > { %8338 = sst [smem:[#allocation16_spill]] %s8337_s1  ;;  %s607_s23 = sor.u32 %s606_s8, %s605_s7 }
  0x26   : > { %p774_p10 = pnand %p5246_p7, %p773_p9  ;;  %p608_p11 = scmp.eq.s32.totalorder %s607_s23, 0 }
  0x28   : > { %s6966_s3 = scalar_select %p608_p11, %s6741_s27, %s610_s24  }
  0x29   : > { %777 = sbr.rel (%p774_p10) target bundleno = 4537 (0x11b9), region = 116 }
  0x2a   : > { %8339 = sst [smem:[#allocation17_spill]] %s6966_s3 }
  0x30   : > { %v6485_v0 = vld [vmem:[%s8252_s10] sm:$0xff]   ;;  %s6972_s30 = sshll.u32 %s6745_s28, 2  ;;  %v6486_v1 = vld [vmem:[%s8252_s10 + $0x8] sm:$0xff]   ;;  %p888_p12 = scmp.lt.s32.totalorder %s6749_s6, 1  ;;  %v6487_v3 = vld [vmem:[%s8252_s10 + $0x10] sm:$0xff]   ;;  %vm1070_vm0 = vcmask 523264  }
  0x31   : > { %8340 = sst [smem:[#allocation18_spill]] %s6972_s30  ;;  %5850 = vmatprep.subr.bf16.mxu0 %v6485_v0  ;;  %p890_p13 = scmp.lt.s32.totalorder %s6972_s30, 7  ;;  %v6488_v2 = vld [vmem:[%s8253_s11] sm:$0xff]   ;;  %v6490_v4 = vld [vmem:[%s8253_s11 + $0x8] sm:$0xff]   ;;  %v6493_v5 = vld [vmem:[%s8253_s11 + $0x10] sm:$0xff]   ;;  %vm1460_vm1 = vcmask 130048  }
  0x32   : > { %5851 = vmatpush3.bf16.msra.mxu0 %v6485_v0  ;;  %s6983_s5 = scalar_select %p888_p12, %s6749_s6, 1  ;;  %5862 = vmatprep.subr.bf16.mxu1 %v6488_v2  ;;  %v6489_v6 = vld [vmem:[%s8252_s10 + $0x18] sm:$0xff]   ;;  %v6499_v11 = vld [vmem:[%s8255_s13] sm:$0xff]   ;;  %v6500_v12 = vld [vmem:[%s8255_s13 + $0x8] sm:$0xff]   ;;  %vm2996_vm2 = vcmask 261248   ;;  %vm3923_vm3 = vcmask 392448  }
  0x33   : > { %5852 = vmatprep.subr.bf16.mxu0 %v6486_v1  ;;  %s6989_s4 = scalar_select %p890_p13, %s6972_s30, 7  ;;  %5863 = vmatpush3.bf16.msra.mxu1 %v6488_v2  ;;  %v6494_v9 = vld [vmem:[%s8253_s11 + $0x18] sm:$0xff]   ;;  %v6501_v14 = vld [vmem:[%s8255_s13 + $0x10] sm:$0xff]   ;;  %v1468_v16 = vsel %vm1460_vm1, %v6499_v11, 0  ;;  %v1471_v17 = vsel %vm1460_vm1, %v6500_v12, 0  ;;  %v6503_v23 = vld [vmem:[%s8254_s12] sm:$0xff]  }
  0x34   : > { %s5249_s23 = sshll.u32 %s6983_s5, 3  ;;  %s5596_s25 = sshll.u32 %s6983_s5, 5  ;;  %5864 = vmatprep.subr.bf16.mxu1 %v6490_v4  ;;  %v1474_v18 = vsel %vm1460_vm1, %v6501_v14, 0  ;;  %v6502_v20 = vld [vmem:[%s8255_s13 + $0x18] sm:$0xff]   ;;  %v7066_v22 = vld [vmem:[%s8261_s19] sm:$0x3] }
  0x35   : > { %s893_s24 = sadd.s32 %s5249_s23, %s6989_s4  ;;  %s8341_s2 = sld [smem:[#allocation33_spill]]  ;;  %v1477_v21 = vsel %vm1460_vm1, %v6502_v20, 0  ;;  %v6504_v24 = vld [vmem:[%s8254_s12 + $0x8] sm:$0xff]   ;;  %v6505_v26 = vld [vmem:[%s8254_s12 + $0x10] sm:$0xff]   ;;  %v6506_v27 = vld [vmem:[%s8254_s12 + $0x18] sm:$0xff]   ;;  %vm4850_vm4 = vcmask 523648  }
  0x36   : > { %5853 = vmatpush3.bf16.msra.mxu0 %v6486_v1  ;;  %s5250_s29 = sshll.u32 %s893_s24, 2  ;;  %s8342_s6 = sld [smem:[#allocation32_spill]]  ;;  %v7090_v28 = vld [vmem:[%s8251_s9] sm:$0xff]   ;;  %v7111_v32 = vld [vmem:[%s8251_s9 + $0x8] sm:$0xff]   ;;  %v7128_v35 = vld [vmem:[%s8251_s9 + $0x10] sm:$0xff]  }
  0x37   : > { %5854 = vmatprep.subr.bf16.mxu0 %v6487_v3  ;;  %5865 = vmatpush3.bf16.msra.mxu1 %v6490_v4  ;;  %s8345_s23 = sld [smem:[#allocation34_spill]]  ;;  %v7106_v31 = vsel %vm1070_vm0, %v7090_v28, 0  ;;  %v7123_v34 = vsel %vm1070_vm0, %v7111_v32, 0  ;;  %v7135_v36 = vsel %vm1070_vm0, %v7128_v35, 0  ;;  %v5299_v37 = vld [vmem:[%s8258_s16] ss:$0 sm:$0xff] }
  0x38   : > { %5866 = vmatprep.subr.bf16.mxu1 %v6493_v5  ;;  %v5300_v39 = vld [vmem:[%s8259_s17] ss:$0 sm:$0xff]  ;;  %s8346_s1 = sld [smem:[#allocation40_spill]]  ;;  %s5262_s7 = sshll.u32 %s6989_s4, 2 }
  0x39   : > { %v5273_v43 = vld [vmem:[%s8256_s14] ss:$0 sm:$0xff]  ;;  %s8348_s3 = sld [smem:[#allocation39_spill]]  ;;  %s8284_s30 = smov 1  }
  0x3a   : > { %5855 = vmatpush3.bf16.msra.mxu0 %v6487_v3  ;;  %v5319_v55 = vld [vmem:[%s8260_s18] ss:$0 sm:$0xff]  ;;  %p909_p0 = scmp.lt.s32.totalorder %s6745_s28, 1  ;;  %s5255_s4 = sshll.u32 %s6983_s5, 1 }
  0x3b   : > { %s7002_s8 = scalar_lea.vmem %s8341_s2, %s5596_s25  ;;  %5856 = vmatprep.subr.bf16.mxu0 %v6489_v6  ;;  %5867 = vmatpush3.bf16.msra.mxu1 %v6493_v5  ;;  %s8352_s0 = sld [smem:[#allocation36_spill]] }
  0x3c   : > { %s7013_s24 = scalar_lea.vmem %s8342_s6, %s5250_s29  ;;  %v6495_v8 = vld [vmem:[%s7002_s8] sm:$0xff]   ;;  %5868 = vmatprep.subr.bf16.mxu1 %v6494_v9  ;;  %v6496_v13 = vld [vmem:[%s7002_s8 + $0x8] sm:$0xff]   ;;  %v6497_v15 = vld [vmem:[%s7002_s8 + $0x10] sm:$0xff]   ;;  %s8420_s28 = smov (!%p909_p0, %s6745_s28), 1 }
  0x3d   : > { %8343 = sst [smem:[#allocation19_spill]] %s7013_s24  ;;  %v7016_v7 = vld [vmem:[%s7013_s24] sm:$0xff]   ;;  %v7023_v10 = vld [vmem:[%s7013_s24 + $0x8] sm:$0xff]   ;;  %5870 = vmatprep.mubr.msk.bf16.mxu1 %vm1070_vm0, %v6495_v8  ;;  %s7049_s22 = scalar_lea.vmem %s8345_s23, %s5596_s25  ;;  %v6498_v19 = vld [vmem:[%s7002_s8 + $0x18] sm:$0xff]  }
  0x3e   : > { %8344 = vst [vmem:[#allocation20_spill] sm:$0xff] %v7023_v10  ;;  %5858 = vmatprep.mubr.msk.bf16.mxu0 %vm1070_vm0, %v7016_v7  ;;  %5857 = vmatpush3.bf16.msra.mxu0 %v6489_v6  ;;  %v7077_v25 = vld [vmem:[%s7049_s22] sm:$0xff]   ;;  %v7093_v29 = vld [vmem:[%s7049_s22 + $0x8] sm:$0xff]   ;;  %v7096_v30 = vld [vmem:[%s7049_s22 + $0x10] sm:$0xff]   ;;  %s8347_s25 = sld [smem:[#allocation38_spill]]  ;;  %s912_s2 = sadd.s32 %s5255_s4, %s8420_s28 }
  0x3f   : > { %5869 = vmatpush3.bf16.msra.mxu1 %v6494_v9  ;;  %5878 = vmatprep.subr.bf16.mxu0 %v6503_v23  ;;  %v7114_v33 = vld [vmem:[%s7049_s22 + $0x18] sm:$0xff]   ;;  %s941_s26 = scalar_lea.vmem %s8348_s3, %s5262_s7  ;;  %s8361_s24 = smov 1  }
  0x40   : > { %6326 = vmatprep.subr.msk.bf16.mxu1 %vm1460_vm1, %v6499_v11  ;;  %s6766_s23 = smov 16   ;;  %s6767_s27 = smov 32  }
  0x41   : > { %5859 = vmatmul.mubr.msk.bf16.vlgmr.msra.gmra.mrb[0].mxu0 %vm1070_vm0, %v7023_v10  ;;  %s6768_s5 = smov 48  }
  0x42   : > { %5871 = vmatmul.mubr.msk.bf16.vlgmr.msra.gmra.mrb[0].mxu1 %vm1070_vm0, %v6496_v13  ;;  %5879 = vmatpush3.bf16.msra.mxu0 %v6503_v23  ;;  %v7171_v23 = vld [vmem:[%s8251_s9 + $0x18] sm:$0xff]  }
  0x43   : > { %5874 = vmatprep.mubr.msk.bf16.mxu1 %vm1070_vm0, %v6497_v15  ;;  %5886 = vmatprep.mubr.msk.bf16.mxu0 %vm1070_vm0, %v7077_v25 }
  0x44   : > { %5880 = vmatprep.subr.bf16.mxu0 %v6504_v24  ;;  %s935_s6 = scalar_lea.vmem %s8347_s25, %s5262_s7  ;;  %s5256_s7 = sshll.u32 %s912_s2, 3 }
  0x45   : > { %s8351_s25 = sld [smem:[#allocation35_spill]]  ;;  %s922_s21 = scalar_lea.vmem %s8352_s0, %s5256_s7 }
  0x46   : > { %5881 = vmatpush3.bf16.msra.mxu0 %v6504_v24  ;;  %v7177_v24 = vsel %vm1070_vm0, %v7171_v23, 0  ;;  %s8395_s2 = sld [smem:[#allocation42_spill]] }
  0x47   : > { %5882 = vmatprep.subr.bf16.mxu0 %v6505_v26 }
  0x48   : > { %5895 = vmatpush3.bf16.xpose.msra.mxu1 %v1468_v16 }
  0x49   : > { %6327 = vmatprep.subr.msk.bf16.mxu1 %vm1460_vm1, %v6500_v12 }
  0x4a   : > { %5875 = vmatmul.mubr.msk.bf16.gmra.mrb[4].mxu1 %vm1070_vm0, %v6498_v19  ;;  %5883 = vmatpush3.bf16.msra.mxu0 %v6505_v26  ;;  %v7183_v26 = vld [vmem:[%s8346_s1] sm:$0xff]  }
  0x4b   : > { %5884 = vmatprep.subr.bf16.mxu0 %v6506_v27 }
  0x4e   : > { %5885 = vmatpush3.bf16.msra.mxu0 %v6506_v27  ;;  %v8289_v27 = vmov 0  }
  0x4f   : > { %6330 = vmatprep.subr.msk.bf16.mxu0 %vm1070_vm0, %v7090_v28  ;;  %6469 = vset.pattern.permute.xlu0 %v8289_v27 }
  0x50   : > { %5897 = vmatpush3.bf16.xpose.msra.mxu1 %v1471_v17  ;;  %6470 = vset.pattern.permute.xlu1 %v8289_v27 }
  0x51   : > { %6328 = vmatprep.subr.msk.bf16.mxu1 %vm1460_vm1, %v6501_v14  ;;  %5887 = vmatmul.mubr.msk.bf16.vlgmr.msra.gmra.mrb[4].mxu0 %vm1070_vm0, %v7093_v29 }
  0x52   : > { %5890 = vmatprep.mubr.msk.bf16.mxu0 %vm1070_vm0, %v7096_v30 }
  0x57   : > { %5907 = vmatpush3.bf16.xpose.msra.mxu0 %v7106_v31 }
  0x58   : > { %5899 = vmatpush3.bf16.xpose.msra.mxu1 %v1474_v18  ;;  %6331 = vmatprep.subr.msk.bf16.mxu0 %vm1070_vm0, %v7111_v32 }
  0x59   : > { %6329 = vmatprep.subr.msk.bf16.mxu1 %vm1460_vm1, %v6502_v20  ;;  %5891 = vmatmul.mubr.msk.bf16.gmra.mrb[8].mxu0 %vm1070_vm0, %v7114_v33 }
  0x5f   : > { %5909 = vmatpush3.bf16.xpose.msra.mxu0 %v7123_v34 }
  0x60   : > { %5901 = vmatpush3.bf16.xpose.msra.mxu1 %v1477_v21  ;;  %6332 = vmatprep.subr.msk.bf16.mxu0 %vm1070_vm0, %v7128_v35 }
  0x61   : > { %5930 = vmatprep.subr.msk.mxu1 %vm1460_vm1, %v7066_v22 }
  0x67   : > { %5911 = vmatpush3.bf16.xpose.msra.mxu0 %v7135_v36 }
  0x68   : > { %6333 = vmatprep.subr.msk.bf16.mxu0 %vm1070_vm0, %v7171_v23 }
  0x6f   : > { %5913 = vmatpush3.bf16.xpose.msra.mxu0 %v7177_v24 }
  0x70   : > { %6334 = vmatprep.subr.msk.bf16.mxu0 %vm1070_vm0, %v7183_v26 }
 0x114   : > { %v5860_v38 = vpop.f32.mrb[0].mxu0 }
 0x115   : > { %v1111_v40 = vpop.f32.mrb[1].mxu0  ;;  %v1415_v41 = vadd.f32 %v5860_v38, %v5299_v37  ;;  %v1428_v44 = vadd.f32 %v5860_v38, %v5300_v39  ;;  %v5872_v49 = vpop.f32.mrb[0].mxu1  ;;  %v1723_v16 = vadd.f32 %v5860_v38, %v5319_v55  ;;  %v5615_v38 = vld [vmem:[%s941_s26 + $0x8] sm:$0xff]  }
 0x116   : > { %v5861_v42 = vpop.f32.mrb[2].mxu0  ;;  %v1413_v45 = vadd.f32 %v5299_v37, %v1111_v40  ;;  %v1426_v50 = vadd.f32 %v5300_v39, %v1111_v40  ;;  %v1240_v53 = vadd.f32 %v5872_v49, %v5273_v43  ;;  %v1231_v54 = vpop.f32.mrb[1].mxu1  ;;  %v1721_v1 = vadd.f32 %v5319_v55, %v1111_v40  ;;  %v5607_v40 = vld [vmem:[%s941_s26] sm:$0xff]   ;;  %s8353_s26 = sld [smem:[#allocation37_spill]] }
 0x117   : > { %v1416_v46 = vadd.f32 %v5861_v42, %v5299_v37  ;;  %v1429_v47 = vadd.f32 %v5861_v42, %v5300_v39  ;;  %v1114_v48 = vpop.f32.mrb[3].mxu0  ;;  %v1232_v58 = vadd.f32 %v5273_v43, %v1231_v54  ;;  %v5873_v59 = vpop.f32.mrb[2].mxu1  ;;  %v1724_v19 = vadd.f32 %v5861_v42, %v5319_v55 }
 0x118   : > { %v1414_v51 = vadd.f32 %v5299_v37, %v1114_v48  ;;  %v1427_v52 = vadd.f32 %v5300_v39, %v1114_v48  ;;  %v1243_v62 = vadd.f32 %v5873_v59, %v5273_v43  ;;  %v1234_v63 = vpop.f32.mrb[3].mxu1  ;;  %v1722_v13 = vadd.f32 %v5319_v55, %v1114_v48  ;;  %v5614_v37 = vld [vmem:[%s935_s6 + $0x8] sm:$0xff]   ;;  %v5599_v39 = vld [vmem:[%s935_s6] sm:$0xff]   ;;  %s914_s6 = scalar_lea.vmem %s8351_s25, %s5256_s7 }
 0x119   : > { %v1418_v56 = vpack.c.bf16 %v1416_v46, %v1415_v41  ;;  %v1431_v57 = vpack.c.bf16 %v1429_v47, %v1428_v44  ;;  %v1235_v0 = vadd.f32 %v5273_v43, %v1234_v63  ;;  %v7196_v41 = vunpack.c.l.bf16 %v5614_v37 }
 0x11a   : > { %v1417_v60 = vpack.c.bf16 %v1414_v51, %v1413_v45  ;;  %v1430_v61 = vpack.c.bf16 %v1427_v52, %v1426_v50  ;;  %v1263_v2 = vpack.c.bf16 %v1243_v62, %v1240_v53  ;;  %v7198_v42 = vunpack.c.l.bf16 %v5615_v38 }
 0x11b   : > { %v1262_v3 = vpack.c.bf16 %v1235_v0, %v1232_v58  ;;  %v7202_v44 = vunpack.c.h.bf16 %v5615_v38  ;;  %v7204_v46 = vunpack.c.l.bf16 %v5599_v39  ;;  %v7206_v47 = vunpack.c.l.bf16 %v5607_v40 }
 0x11c   : > { %5902 = vmatprep.mubr.msk.bf16.mxu1 %vm1460_vm1, %v1430_v61  ;;  %v1880_v20 = vsel %vm1460_vm1, %v1263_v2, 0  ;;  %v7208_v48 = vunpack.c.h.bf16 %v5599_v39  ;;  %v7210_v49 = vunpack.c.h.bf16 %v5607_v40  ;;  %s930_s20 = scalar_lea.vmem %s8353_s26, %s5256_s7  ;;  %s8396_s7 = sld [smem:[#allocation7_spill]] }
 0x11d   : > { %5903 = vmatmul.mubr.msk.bf16.vlgmr.msra.gmra.mrb[8].mxu1 %vm1460_vm1, %v1431_v57  ;;  %v5876_v4 = vpop.f32.mrb[4].mxu1  ;;  %v1877_v14 = vsel %vm1460_vm1, %v1262_v3, 0 }
 0x11e   : > { %5932 = vmatprep.mubr.msk.f32.mxu1 %vm1460_vm1, %v1721_v1  ;;  %5931 = vmatpush3.xpose.msk.msra.mxu1 %vm1460_vm1, %v7066_v22  ;;  %v1256_v5 = vadd.f32 %v5876_v4, %v5273_v43  ;;  %v1247_v6 = vpop.f32.mrb[5].mxu1  ;;  %v7228_v1 = vsel %vm1070_vm0, %v7183_v26, 0 }
 0x11f   : > { %6338 = vmatprep.subr.msk.bf16.mxu1 %vm1460_vm1, %v1262_v3  ;;  %v1248_v8 = vadd.f32 %v5273_v43, %v1247_v6  ;;  %v5877_v9 = vpop.f32.mrb[6].mxu1 }
 0x120   : > { %v1259_v11 = vadd.f32 %v5877_v9, %v5273_v43  ;;  %v1250_v12 = vpop.f32.mrb[7].mxu1  ;;  %v7262_v9 = vld [vmem:[%s8346_s1 + $0x10] sm:$0xff]  }
 0x121   : > { %v1251_v15 = vadd.f32 %v5273_v43, %v1250_v12  ;;  %v7200_v43 = vunpack.c.h.bf16 %v5614_v37  ;;  %v7279_v12 = vld [vmem:[%s8346_s1 + $0x18] sm:$0xff]  }
 0x122   : > { %v1265_v17 = vpack.c.bf16 %v1259_v11, %v1256_v5  ;;  %v7274_v11 = vsel %vm1070_vm0, %v7262_v9, 0  ;;  %8349 = vst [vmem:[#allocation21_spill] sm:$0xff] %v7279_v12  ;;  %v7291_v38 = vsel %vm1070_vm0, %v7279_v12, 0 }
 0x123   : > { %v1264_v18 = vpack.c.bf16 %v1251_v15, %v1248_v8  ;;  %v5286_v15 = vld [vmem:[%s8257_s15] ss:$0 sm:$0xff]  ;;  %8350 = vst [vmem:[#allocation22_spill] sm:$0xff] %v7291_v38 }
 0x124   : > { %v1886_v22 = vsel %vm1460_vm1, %v1265_v17, 0 }
 0x125   : > { %5933 = vmatmul.mubr.msk.f32.vlgmr.msra.gmra.mrb[12].mxu1 %vm1460_vm1, %v1722_v13  ;;  %v1883_v21 = vsel %vm1460_vm1, %v1264_v18, 0  ;;  %v8291_v13 = vmov 1  }
 0x126   : > { %5939 = vmatpush3.bf16.xpose.msra.mxu1 %v1877_v14  ;;  %5935 = vmatprep.mubr.msk.f32.mxu1 %vm1460_vm1, %v1723_v16  ;;  %v5888_v14 = vpop.f32.mrb[4].mxu0 }
 0x127   : > { %6339 = vmatprep.subr.msk.bf16.mxu1 %vm1460_vm1, %v1263_v2  ;;  %v7233_v2 = vld [vmem:[%s8346_s1 + $0x8] sm:$0xff]   ;;  %v1380_v16 = vadd.f32 %v5888_v14, %v5286_v15 }
 0x128   : > { %v7257_v8 = vsel %vm1070_vm0, %v7233_v2, 0 }
 0x129   : > { %5936 = vmatmul.mubr.msk.f32.gmra.mrb[14].mxu1 %vm1460_vm1, %v1724_v19 }
 0x12a   : > { %5946 = vmatprep.mubr.msk.bf16.mxu1 %vm1460_vm1, %v1417_v60 }
 0x12e   : > { %5941 = vmatpush3.bf16.xpose.msra.mxu1 %v1880_v20 }
 0x12f   : > { %6340 = vmatprep.subr.msk.bf16.mxu1 %vm1460_vm1, %v1264_v18 }
 0x136   : > { %5943 = vmatpush3.bf16.xpose.msra.mxu1 %v1883_v21 }
 0x137   : > { %6341 = vmatprep.subr.msk.bf16.mxu1 %vm1460_vm1, %v1265_v17  ;;  %v1371_v17 = vpop.f32.mrb[5].mxu0 }
 0x138   : > { %v1372_v18 = vadd.f32 %v5286_v15, %v1371_v17  ;;  %v5889_v19 = vpop.f32.mrb[6].mxu0 }
 0x139   : > { %v1383_v20 = vadd.f32 %v5889_v19, %v5286_v15  ;;  %v1374_v21 = vpop.f32.mrb[7].mxu0  ;;  %v974_v19 = vld [vmem:[%s922_s21] sm:$0xff] }
 0x13a   : > { %v5892_v37 = vpop.f32.mrb[8].mxu0 }
 0x13b   : > { %v1403_v39 = vpack.c.bf16 %v1383_v20, %v1380_v16  ;;  %v1396_v40 = vadd.f32 %v5892_v37, %v5286_v15  ;;  %v983_v20 = vld [vmem:[%s930_s20] sm:$0xff]  ;;  %s8400_s20 = sld [smem:[#allocation44_spill]] }
 0x13e   : > { %5945 = vmatpush3.bf16.xpose.msra.mxu1 %v1886_v22  ;;  %v1375_v22 = vadd.f32 %v5286_v15, %v1374_v21 }
 0x145   : > { %5947 = vmatmul.mubr.msk.bf16.vlgmr.msra.gmra.mrb[16].mxu1 %vm1460_vm1, %v1418_v56 }
 0x1f0   : > { %v5904_v45 = vpop.f32.mrb[8].mxu1 }
 0x1f1   : > { %v1513_v50 = vpop.f32.mrb[9].mxu1  ;;  %v7213_v52 = vmul.f32 %v5904_v45, %v7196_v41  ;;  %v1536_v53 = vmul.f32 %v5904_v45, %v7198_v42  ;;  %v1387_v45 = vpop.f32.mrb[9].mxu0 }
 0x1f2   : > { %v5905_v51 = vpop.f32.mrb[10].mxu1  ;;  %v1528_v57 = vmul.f32 %v7204_v46, %v1513_v50  ;;  %v1534_v58 = vmul.f32 %v7206_v47, %v1513_v50  ;;  %v1402_v50 = vpack.c.bf16 %v1375_v22, %v1372_v18 }
 0x1f3   : > { %v7217_v54 = vmul.f32 %v5905_v51, %v7200_v43  ;;  %v1537_v55 = vmul.f32 %v5905_v51, %v7202_v44  ;;  %v1516_v56 = vpop.f32.mrb[11].mxu1  ;;  %v1388_v51 = vadd.f32 %v5286_v15, %v1387_v45  ;;  %v984_v45 = vunpack.c.0.s8 %v983_v20 }
 0x1f4   : > { %v1529_v59 = vmul.f32 %v7208_v48, %v1516_v56  ;;  %v1535_v60 = vmul.f32 %v7210_v49, %v1516_v56  ;;  %5950 = vmatprep.subr.bf16.mxu1 %v1402_v50 }
 0x1f5   : > { %v1533_v61 = vpack.c.bf16 %v7217_v54, %v7213_v52  ;;  %v1539_v62 = vpack.c.bf16 %v1537_v55, %v1536_v53  ;;  %v5893_v53 = vpop.f32.mrb[10].mxu0  ;;  %5951 = vmatpush3.bf16.msra.mxu1 %v1402_v50 }
 0x1f6   : > { %v1532_v63 = vpack.c.bf16 %v1529_v59, %v1528_v57  ;;  %v1538_v0 = vpack.c.bf16 %v1535_v60, %v1534_v58  ;;  %v1399_v55 = vadd.f32 %v5893_v53, %v5286_v15  ;;  %v1390_v56 = vpop.f32.mrb[11].mxu0  ;;  %5952 = vmatprep.subr.bf16.mxu1 %v1403_v39  ;;  %v976_v53 = vunpack.c.1.s8 %v974_v19 }
 0x1f7   : > { %v1391_v57 = vadd.f32 %v5286_v15, %v1390_v56  ;;  %v977_v56 = vunpack.c.2.s8 %v974_v19 }
 0x1f8   : > { %5914 = vmatprep.mubr.msk.bf16.mxu0 %vm1070_vm0, %v1538_v0  ;;  %v7236_v3 = vpop.f32.mrb[12].mxu1  ;;  %v1405_v58 = vpack.c.bf16 %v1399_v55, %v1396_v40  ;;  %v975_v40 = vunpack.c.0.s8 %v974_v19 }
 0x1f9   : > { %5915 = vmatmul.mubr.msk.bf16.vlgmr.msra.gmra.mrb[12].mxu0 %vm1070_vm0, %v1539_v62  ;;  %v7239_v4 = vpop.f32.mrb[13].mxu1  ;;  %v1404_v59 = vpack.c.bf16 %v1391_v57, %v1388_v51  ;;  %5953 = vmatpush3.bf16.msra.mxu1 %v1403_v39 }
 0x1fa   : > { %5919 = vmatpush3.bf16.xpose.msra.mxu0 %v7228_v1  ;;  %1830 = vrot.lane.b32.xlu0 %v7239_v4, %s8284_s30 }
 0x1fb   : > { %5926 = vmatprep.mubr.msk.bf16.mxu0 %vm1070_vm0, %v1532_v63  ;;  %6335 = vmatprep.subr.msk.bf16.mxu0 %vm1070_vm0, %v7233_v2 }
 0x1fc   : > { %v7247_v5 = vpop.f32.mrb[14].mxu1  ;;  %5954 = vmatprep.subr.bf16.mxu1 %v1404_v59 }
 0x1fd   : > { %v7249_v6 = vpop.f32.mrb[15].mxu1  ;;  %5955 = vmatpush3.bf16.msra.mxu1 %v1404_v59  ;;  %v985_v59 = vunpack.c.1.s8 %v983_v20 }
 0x1fe   : > { %1832 = vrot.lane.b32.xlu0 %v7236_v3, %s8284_s30  ;;  %1834 = vrot.lane.b32.xlu1 %v7249_v6, %s8284_s30 }
 0x1ff   : > { %5956 = vmatprep.subr.bf16.mxu1 %v1405_v58 }
 0x201   : > { %5957 = vmatpush3.bf16.msra.mxu1 %v1405_v58 }
 0x202   : > { %5921 = vmatpush3.bf16.xpose.msra.mxu0 %v7257_v8  ;;  %1847 = vperm.xlu0 %6469, %v7239_v4  }
 0x203   : > { %1836 = vrot.lane.b32.xlu1 %v7247_v5, %s8284_s30  ;;  %6336 = vmatprep.subr.msk.bf16.mxu0 %vm1070_vm0, %v7262_v9  ;;  %s8394_s30 = sld [smem:[#allocation19_spill]] }
 0x206   : > { %1859 = vperm.xlu0 %6469, %v7247_v5  }
 0x207   : > { %1851 = vperm.xlu1 %6470, %v7236_v3  }
 0x20a   : > { %5923 = vmatpush3.bf16.xpose.msra.mxu0 %v7274_v11  ;;  %6471 = vset.pattern.permute.xlu0 %v8291_v13 }
 0x20b   : > { %1855 = vperm.xlu1 %6470, %v7249_v6   ;;  %6337 = vmatprep.subr.msk.bf16.mxu0 %vm1070_vm0, %v7279_v12  ;;  %v7346_v12 = vcvt.s32.f32 %v977_v56 }
 0x20f   : > { %6472 = vset.pattern.permute.xlu1 %v8291_v13 }
 0x212   : > { %5925 = vmatpush3.bf16.xpose.msra.mxu0 %v7291_v38 }
 0x218   : > { %v7295_v60 = vpop.f32.mrb[16].mxu1 }
 0x219   : > { %5927 = vmatmul.mubr.msk.bf16.vlgmr.msra.gmra.mrb[12].mxu0 %vm1070_vm0, %v1533_v61  ;;  %v7301_v62 = vpop.f32.mrb[17].mxu1 }
 0x21a   : > { %v7303_v63 = vpop.f32.mrb[18].mxu1  ;;  %5970 = vmatprep.mubr.msk.bf16.mxu0 %vm1070_vm0, %v7016_v7 }
 0x21b   : > { %v7307_v0 = vpop.f32.mrb[19].mxu1 }
 0x26c   : > { %v1831_v14 = vpop.permute.xlu0 %1830 }
 0x26d   : > { %v1842_v15 = vsub.f32 %v7239_v4, %v1831_v14  ;;  %v6519_v4 = vld [vmem:[%s8252_s10 + $0x20] sm:$0xff]   ;;  %v986_v14 = vunpack.c.2.s8 %v983_v20 }
 0x26e   : > { %5962 = vmatprep.subr.bf16.mxu0 %v6519_v4 }
 0x26f   : > { %1939 = vperm.xlu1 %6472, %v1842_v15   ;;  %5963 = vmatpush3.bf16.msra.mxu0 %v6519_v4 }
 0x270   : > { %v1833_v16 = vpop.permute.xlu0 %1832  ;;  %v1835_v52 = vpop.permute.xlu1 %1834 }
 0x271   : > { %v1843_v54 = vsub.f32 %v7236_v3, %v1833_v16  ;;  %v1844_v61 = vsub.f32 %v7249_v6, %v1835_v52  ;;  %v6520_v3 = vld [vmem:[%s8252_s10 + $0x28] sm:$0xff]   ;;  %v965_v6 = vld [vmem:[%s914_s6] sm:$0xff]  ;;  %s8392_s6 = sld [smem:[#allocation41_spill]] }
 0x272   : > { %5964 = vmatprep.subr.bf16.mxu0 %v6520_v3  ;;  %v968_v22 = vunpack.c.2.s8 %v965_v6  ;;  %v966_v37 = vunpack.c.0.s8 %v965_v6  ;;  %v969_v39 = vunpack.c.3.s8 %v965_v6  ;;  %v967_v51 = vunpack.c.1.s8 %v965_v6 }
 0x273   : > { %1944 = vperm.xlu0 %6471, %v1843_v54   ;;  %1949 = vperm.xlu1 %6472, %v1844_v61   ;;  %v7339_v61 = vcvt.s32.f32 %v975_v40 }
 0x274   : > { %5965 = vmatpush3.bf16.msra.mxu0 %v6520_v3  ;;  %v7333_v55 = vcvt.s32.f32 %v968_v22  ;;  %v7335_v58 = vcvt.s32.f32 %v966_v37  ;;  %v7337_v54 = vcvt.s32.f32 %v969_v39  ;;  %v7341_v6 = vcvt.s32.f32 %v967_v51 }
 0x275   : > { %v1837_v17 = vpop.permute.xlu1 %1836  ;;  %v7343_v22 = vcvt.s32.f32 %v976_v53 }
 0x276   : > { %v1845_v18 = vsub.f32 %v7247_v5, %v1837_v17  ;;  %v988_v17 = vcvt.s32.f32 %v984_v45  ;;  %v990_v45 = vcvt.s32.f32 %v986_v14 }
 0x277   : > { %6473 = vset.pattern.permute.xlu0 %v8289_v27  ;;  %8354 = vst [vmem:[#allocation23_spill] sm:$0xff] %v7343_v22  ;;  %s8393_s3 = smov %s8392_s6 }
 0x278   : > { %1954 = vperm.xlu1 %6472, %v1845_v18  }
 0x27c   : > { %6474 = vset.pattern.permute.xlu1 %v8289_v27  ;;  %v978_v27 = vunpack.c.3.s8 %v974_v19 }
 0x281   : > { %v1848_v21 = vpop.permute.xlu0 %1847 }
 0x285   : > { %v1860_v15 = vpop.permute.xlu0 %1859 }
 0x286   : > { %v1852_v5 = vpop.permute.xlu1 %1851 }
 0x28a   : > { %v1856_v50 = vpop.permute.xlu1 %1855 }
 0x2ec   : > { %v5928_v57 = vpop.f32.mrb[12].mxu0 }
 0x2ed   : > { %v1864_v16 = vadd.f32 %v5928_v57, %v1856_v50  ;;  %v1699_v52 = vpop.f32.mrb[13].mxu0  ;;  %v987_v50 = vunpack.c.3.s8 %v983_v20  ;;  %v989_v57 = vcvt.s32.f32 %v985_v59  ;;  %v7356_v20 = vcvt.s32.f32 %v978_v27 }
 0x2ee   : > { %v1862_v18 = vadd.f32 %v1848_v21, %v1699_v52  ;;  %v5929_v4 = vpop.f32.mrb[14].mxu0  ;;  %v1940_v3 = vpop.permute.xlu1 %1939  ;;  %v7351_v52 = vmul.f32 -1000000.0, %v988_v17 }
 0x2ef   : > { %v1868_v37 = vmul.f32 %v1864_v16, %v7333_v55  ;;  %v1865_v13 = vadd.f32 %v5929_v4, %v1860_v15  ;;  %v1702_v38 = vpop.f32.mrb[15].mxu0  ;;  %v1957_v53 = vmul.f32 %v1940_v3, %v7339_v61  ;;  %8356 = vst [vmem:[#allocation25_spill] sm:$0xff] %v7356_v20  ;;  %v991_v59 = vcvt.s32.f32 %v987_v50 }
 0x2f0   : > { %v1866_v39 = vmul.f32 %v1862_v18, %v7335_v58  ;;  %v1863_v40 = vadd.f32 %v1852_v5, %v1702_v38  ;;  %8355 = vst [vmem:[#allocation24_spill] sm:$0xff] %v7351_v52  ;;  %v7362_v17 = vmul.f32 -1000000.0, %v989_v57 }
 0x2f1   : > { %v1869_v21 = vmul.f32 %v1865_v13, %v7337_v54  ;;  %v1931_v51 = vadd.f32 %v7295_v60, %v1868_v37  ;;  %v7367_v37 = vmul.f32 -1000000.0, %v991_v59 }
 0x2f2   : > { %v1923_v19 = vadd.f32 %v7301_v62, %v1866_v39  ;;  %v1867_v15 = vmul.f32 %v1863_v40, %v7341_v6  ;;  %v1945_v56 = vpop.permute.xlu0 %1944  ;;  %v1950_v16 = vpop.permute.xlu1 %1949  ;;  %8357 = vst [vmem:[#allocation26_spill] sm:$0xff] %v7362_v17  ;;  %v7364_v62 = vmul.f32 -1000000.0, %v990_v45 }
 0x2f3   : > { %v1958_v38 = vmul.f32 %v1945_v56, %v7343_v22  ;;  %v1959_v5 = vmul.f32 %v1950_v16, %v7346_v12  ;;  %v1934_v13 = vadd.f32 %v7303_v63, %v1869_v21  ;;  %8359 = vst [vmem:[#allocation28_spill] sm:$0xff] %v7367_v37 }
 0x2f4   : > { %v1961_v60 = vadd.f32 %v1957_v53, %v1923_v19  ;;  %v1926_v14 = vadd.f32 %v7307_v0, %v1867_v15  ;;  %8358 = vst [vmem:[#allocation27_spill] sm:$0xff] %v7364_v62  ;;  %v6521_v19 = vld [vmem:[%s8252_s10 + $0x30] sm:$0xff]   ;;  %v6522_v53 = vld [vmem:[%s8252_s10 + $0x38] sm:$0xff]  }
 0x2f5   : > { %v1963_v18 = vadd.f32 %v1959_v5, %v1931_v51  ;;  %5966 = vmatprep.subr.bf16.mxu0 %v6521_v19 }
 0x2f6   : > { %v1962_v4 = vadd.f32 %v1958_v38, %v1926_v14  ;;  %v1965_v3 = vadd.f32 %v1961_v60, %v7351_v52  ;;  %5967 = vmatpush3.bf16.msra.mxu0 %v6521_v19 }
 0x2f7   : > { %v1955_v27 = vpop.permute.xlu1 %1954  ;;  %v1967_v50 = vadd.f32 %v1963_v18, %v7364_v62  ;;  %5968 = vmatprep.subr.bf16.mxu0 %v6522_v53 }
 0x2f8   : > { %v1960_v39 = vmul.f32 %v1955_v27, %v7356_v20  ;;  %v1969_v40 = vsel %vm1070_vm0, %v1965_v3, -inf  ;;  %v1966_v63 = vadd.f32 %v1962_v4, %v7362_v17 }
 0x2f9   : > { %1970 = vmax.xlane.f32.xlu0 %v1969_v40  ;;  %v1975_v45 = vsel %vm1070_vm0, %v1967_v50, -inf }
 0x2fa   : > { %v1964_v0 = vadd.f32 %v1960_v39, %v1934_v13  ;;  %v1972_v57 = vsel %vm1070_vm0, %v1966_v63, -inf  ;;  %5969 = vmatpush3.bf16.msra.mxu0 %v6522_v53 }
 0x2fb   : > { %1973 = vmax.xlane.f32.xlu1 %v1972_v57 }
 0x2fc   : > { %v1968_v21 = vadd.f32 %v1964_v0, %v7367_v37 }
 0x2fd   : > { %1976 = vmax.xlane.f32.xlu0 %v1975_v45  ;;  %5971 = vmatmul.mubr.msk.bf16.vlgmr.msra.gmra.mrb[16].mxu0 %vm1070_vm0, %v7023_v10  ;;  %v6523_v45 = vld [vmem:[%s8253_s11 + $0x20] sm:$0xff]  }
 0x2fe   : > { %v1978_v51 = vsel %vm1070_vm0, %v1968_v21, -inf  ;;  %5998 = vmatprep.mubr.msk.bf16.mxu0 %vm1070_vm0, %v7077_v25  ;;  %5974 = vmatprep.subr.bf16.mxu1 %v6523_v45 }
 0x301   : > { %1979 = vmax.xlane.f32.xlu0 %v1978_v51  ;;  %v5382_v51 = vld [vmem:[%s8259_s17 + $0x1] ss:$0 sm:$0xff] }
 0x386   : > { %v1971_v15 = vpop.xlane.xlu0 %1970 }
 0x387   : > { %v1981_v56 = vsub.f32 %v1965_v3, %v1971_v15 }
 0x388   : > { %v1974_v16 = vpop.xlane.xlu1 %1973 }
 0x389   : > { %v1985_v38 = vmul.f32 1.442695, %v1981_v56  ;;  %v1982_v5 = vsub.f32 %v1966_v63, %v1974_v16 }
 0x38a   : > { %v1977_v13 = vpop.xlane.xlu0 %1976 }
 0x38b   : > { %6573 = vpow2.f32 %v1985_v38  ;;  %v1987_v59 = vmul.f32 1.442695, %v1982_v5  ;;  %v1983_v60 = vsub.f32 %v1967_v50, %v1977_v13 }
 0x38d   : > { %6575 = vpow2.f32 %v1987_v59  ;;  %v1989_v14 = vmul.f32 1.442695, %v1983_v60 }
 0x38e   : > { %v1980_v18 = vpop.xlane.xlu0 %1979 }
 0x38f   : > { %6577 = vpow2.f32 %v1989_v14  ;;  %v1984_v4 = vsub.f32 %v1968_v21, %v1980_v18  ;;  %v5380_v21 = vld [vmem:[%s8258_s16 + $0x1] ss:$0 sm:$0xff] }
 0x391   : > { %v1991_v27 = vmul.f32 1.442695, %v1984_v4 }
 0x393   : > { %6579 = vpow2.f32 %v1991_v27 }
 0x395   : > { %v6574_v39 = vpop.eup %6573 }
 0x396   : > { %v1993_v40 = vsel %vm1070_vm0, %v6574_v39, 0.0 }
 0x397   : > { %v6576_v25 = vpop.eup %6575  ;;  %1994 = vadd.xlane.f32.xlu1 %v1993_v40 }
 0x398   : > { %v1996_v3 = vsel %vm1070_vm0, %v6576_v25, 0.0 }
 0x399   : > { %v6578_v0 = vpop.eup %6577  ;;  %1997 = vadd.xlane.f32.xlu0 %v1996_v3 }
 0x39a   : > { %v1999_v63 = vsel %vm1070_vm0, %v6578_v0, 0.0 }
 0x39b   : > { %2000 = vadd.xlane.f32.xlu1 %v1999_v63 }
 0x39d   : > { %v6580_v50 = vpop.eup %6579 }
 0x39e   : > { %v2002_v57 = vsel %vm1070_vm0, %v6580_v50, 0.0 }
 0x39f   : > { %2003 = vadd.xlane.f32.xlu0 %v2002_v57 }
 0x3d0   : > { %v7400_v19 = vpop.f32.mrb[16].mxu0 }
 0x3d1   : > { %v7403_v53 = vadd.f32 %v7400_v19, %v5380_v21  ;;  %v7406_v15 = vadd.f32 %v7400_v19, %v5382_v51  ;;  %v7408_v56 = vpop.f32.mrb[17].mxu0 }
 0x3d2   : > { %v7411_v16 = vadd.f32 %v5380_v21, %v7408_v56  ;;  %v2398_v38 = vadd.f32 %v5382_v51, %v7408_v56  ;;  %v7414_v5 = vpop.f32.mrb[18].mxu0 }
 0x3d3   : > { %v7417_v13 = vadd.f32 %v7414_v5, %v5380_v21  ;;  %v7420_v59 = vadd.f32 %v7414_v5, %v5382_v51  ;;  %v7422_v60 = vpop.f32.mrb[19].mxu0 }
 0x3d4   : > { %v7425_v14 = vadd.f32 %v5380_v21, %v7422_v60  ;;  %v2399_v18 = vadd.f32 %v5382_v51, %v7422_v60 }
 0x3d5   : > { %v2403_v27 = vpack.c.bf16 %v7420_v59, %v7406_v15 }
 0x3d6   : > { %v2388_v40 = vpack.c.bf16 %v7425_v14, %v7411_v16  ;;  %v2402_v3 = vpack.c.bf16 %v2399_v18, %v2398_v38  ;;  %v6534_v16 = vld [vmem:[%s8254_s12 + $0x38] sm:$0xff]  }
 0x424   : > { %v1995_v63 = vpop.xlane.xlu1 %1994 }
 0x425   : > { %6581 = vrcp.f32 %v1995_v63  ;;  %v7440_v63 = vld [vmem:[%s7002_s8] sm:$0xff]  }
 0x426   : > { %v1998_v57 = vpop.xlane.xlu0 %1997 }
 0x427   : > { %6583 = vrcp.f32 %v1998_v57 }
 0x428   : > { %v2001_v10 = vpop.xlane.xlu1 %2000 }
 0x429   : > { %6585 = vrcp.f32 %v2001_v10  ;;  %v6524_v10 = vld [vmem:[%s8253_s11 + $0x28] sm:$0xff]  }
 0x42c   : > { %v2004_v21 = vpop.xlane.xlu0 %2003 }
 0x42d   : > { %6587 = vrcp.f32 %v2004_v21  ;;  %v6530_v21 = vld [vmem:[%s8255_s13 + $0x38] sm:$0xff]  }
 0x42f   : > { %v6582_v51 = vpop.eup %6581 }
 0x430   : > { %v2009_v62 = vmul.f32 %v6582_v51, %v6574_v39  ;;  %v7460_v39 = vld [vmem:[%s7002_s8 + $0x10] sm:$0xff]   ;;  %v5403_v51 = vld [vmem:[%s8261_s19 + $0x2] sm:$0x3] }
 0x431   : > { %v6584_v37 = vpop.eup %6583 }
 0x432   : > { %v2010_v4 = vmul.f32 %v6584_v37, %v6576_v25  ;;  %v7455_v37 = vld [vmem:[%s7002_s8 + $0x8] sm:$0xff]  }
 0x433   : > { %v6586_v20 = vpop.eup %6585 }
 0x434   : > { %v2013_v17 = vpack.c.bf16 %v2010_v4, %v2009_v62  ;;  %v2011_v59 = vmul.f32 %v6586_v20, %v6578_v0  ;;  %v6525_v20 = vld [vmem:[%s8253_s11 + $0x30] sm:$0xff]   ;;  %v6527_v62 = vld [vmem:[%s8255_s13 + $0x20] sm:$0xff]   ;;  %v6528_v0 = vld [vmem:[%s8255_s13 + $0x28] sm:$0xff]  }
 0x435   : > { %v2440_v25 = vsel %vm1460_vm1, %v6527_v62, 0  ;;  %v6529_v4 = vld [vmem:[%s8255_s13 + $0x30] sm:$0xff]  }
 0x436   : > { %5958 = vmatprep.mubr.msk.bf16.mxu1 %vm1070_vm0, %v2013_v17  ;;  %v6526_v17 = vld [vmem:[%s8253_s11 + $0x38] sm:$0xff]   ;;  %v2446_v57 = vsel %vm1460_vm1, %v6529_v4, 0 }
 0x437   : > { %v6588_v15 = vpop.eup %6587 }
 0x438   : > { %v2012_v38 = vmul.f32 %v6588_v15, %v6580_v50  ;;  %v7470_v50 = vld [vmem:[%s7002_s8 + $0x18] sm:$0xff]   ;;  %v5402_v15 = vld [vmem:[%s8260_s18 + $0x1] ss:$0 sm:$0xff] }
 0x43a   : > { %v2014_v18 = vpack.c.bf16 %v2012_v38, %v2011_v59  ;;  %v2630_v59 = vadd.f32 %v5402_v15, %v7408_v56  ;;  %v2631_v38 = vadd.f32 %v5402_v15, %v7422_v60  ;;  %v6531_v56 = vld [vmem:[%s8254_s12 + $0x20] sm:$0xff]  }
 0x43b   : > { %5990 = vmatprep.subr.bf16.mxu0 %v6531_v56 }
 0x43c   : > { %5959 = vmatmul.mubr.msk.bf16.vlgmr.msra.gmra.mrb[20].mxu1 %vm1070_vm0, %v2014_v18  ;;  %v2632_v18 = vadd.f32 %v7400_v19, %v5402_v15  ;;  %v6532_v19 = vld [vmem:[%s8254_s12 + $0x28] sm:$0xff]   ;;  %5991 = vmatpush3.bf16.msra.mxu0 %v6531_v56 }
 0x43d   : > { %5975 = vmatpush3.bf16.msra.mxu1 %v6523_v45  ;;  %5982 = vmatprep.mubr.msk.bf16.mxu1 %vm1070_vm0, %v7440_v63  ;;  %v2443_v45 = vsel %vm1460_vm1, %v6528_v0, 0 }
 0x43e   : > { %5976 = vmatprep.subr.bf16.mxu1 %v6524_v10  ;;  %5992 = vmatprep.subr.bf16.mxu0 %v6532_v19 }
 0x440   : > { %5993 = vmatpush3.bf16.msra.mxu0 %v6532_v19 }
 0x441   : > { %5977 = vmatpush3.bf16.msra.mxu1 %v6524_v10  ;;  %v2633_v10 = vadd.f32 %v7414_v5, %v5402_v15  ;;  %v6533_v5 = vld [vmem:[%s8254_s12 + $0x30] sm:$0xff]  }
 0x442   : > { %5978 = vmatprep.subr.bf16.mxu1 %v6525_v20  ;;  %5994 = vmatprep.subr.bf16.mxu0 %v6533_v5 }
 0x444   : > { %5995 = vmatpush3.bf16.msra.mxu0 %v6533_v5 }
 0x445   : > { %5979 = vmatpush3.bf16.msra.mxu1 %v6525_v20  ;;  %5996 = vmatprep.subr.bf16.mxu0 %v6534_v16 }
 0x446   : > { %5980 = vmatprep.subr.bf16.mxu1 %v6526_v17 }
 0x448   : > { %5997 = vmatpush3.bf16.msra.mxu0 %v6534_v16 }
 0x449   : > { %5981 = vmatpush3.bf16.msra.mxu1 %v6526_v17  ;;  %6346 = vmatprep.subr.msk.bf16.mxu0 %vm1070_vm0, %v7090_v28 }
 0x44a   : > { %6342 = vmatprep.subr.msk.bf16.mxu1 %vm1460_vm1, %v6527_v62 }
 0x44b   : > { %5999 = vmatmul.mubr.msk.bf16.vlgmr.msra.gmra.mrb[20].mxu0 %vm1070_vm0, %v7093_v29 }
 0x44c   : > { %5983 = vmatmul.mubr.msk.bf16.vlgmr.msra.gmra.mrb[24].mxu1 %vm1070_vm0, %v7455_v37  ;;  %6002 = vmatprep.mubr.msk.bf16.mxu0 %vm1070_vm0, %v7096_v30 }
 0x44d   : > { %5986 = vmatprep.mubr.msk.bf16.mxu1 %vm1070_vm0, %v7460_v39 }
 0x451   : > { %6019 = vmatpush3.bf16.xpose.msra.mxu0 %v7106_v31 }
 0x452   : > { %6007 = vmatpush3.bf16.xpose.msra.mxu1 %v2440_v25  ;;  %6347 = vmatprep.subr.msk.bf16.mxu0 %vm1070_vm0, %v7111_v32 }
 0x453   : > { %6343 = vmatprep.subr.msk.bf16.mxu1 %vm1460_vm1, %v6528_v0  ;;  %6003 = vmatmul.mubr.msk.bf16.gmra.mrb[24].mxu0 %vm1070_vm0, %v7114_v33  ;;  %v5352_v33 = vld [vmem:[%s8256_s14 + $0x1] ss:$0 sm:$0xff] }
 0x454   : > { %5987 = vmatmul.mubr.msk.bf16.gmra.mrb[28].mxu1 %vm1070_vm0, %v7470_v50 }
 0x455   : > { %6014 = vmatprep.mubr.msk.bf16.mxu1 %vm1460_vm1, %v2402_v3  ;;  %v2449_v3 = vsel %vm1460_vm1, %v6530_v21, 0 }
 0x459   : > { %6021 = vmatpush3.bf16.xpose.msra.mxu0 %v7123_v34 }
 0x45a   : > { %6009 = vmatpush3.bf16.xpose.msra.mxu1 %v2443_v45  ;;  %6348 = vmatprep.subr.msk.bf16.mxu0 %vm1070_vm0, %v7128_v35 }
 0x45b   : > { %6344 = vmatprep.subr.msk.bf16.mxu1 %vm1460_vm1, %v6529_v4 }
 0x461   : > { %6023 = vmatpush3.bf16.xpose.msra.mxu0 %v7135_v36 }
 0x462   : > { %6011 = vmatpush3.bf16.xpose.msra.mxu1 %v2446_v57  ;;  %6349 = vmatprep.subr.msk.bf16.mxu0 %vm1070_vm0, %v7171_v23 }
 0x463   : > { %6345 = vmatprep.subr.msk.bf16.mxu1 %vm1460_vm1, %v6530_v21 }
 0x469   : > { %6025 = vmatpush3.bf16.xpose.msra.mxu0 %v7177_v24 }
 0x46a   : > { %6013 = vmatpush3.bf16.xpose.msra.mxu1 %v2449_v3  ;;  %6350 = vmatprep.subr.msk.bf16.mxu0 %vm1070_vm0, %v7183_v26 }
 0x46b   : > { %6042 = vmatprep.subr.msk.mxu1 %vm1460_vm1, %v5403_v51 }
 0x471   : > { %6015 = vmatmul.mubr.msk.bf16.vlgmr.msra.gmra.mrb[32].mxu1 %vm1460_vm1, %v2403_v27 }
 0x472   : > { %6044 = vmatprep.mubr.msk.f32.mxu1 %vm1460_vm1, %v2630_v59  ;;  %6043 = vmatpush3.xpose.msk.msra.mxu1 %vm1460_vm1, %v5403_v51 }
 0x479   : > { %6045 = vmatmul.mubr.msk.f32.vlgmr.msra.gmra.mrb[36].mxu1 %vm1460_vm1, %v2631_v38 }
 0x47a   : > { %6047 = vmatprep.mubr.msk.f32.mxu1 %vm1460_vm1, %v2632_v18 }
 0x47d   : > { %6048 = vmatmul.mubr.msk.f32.gmra.mrb[38].mxu1 %vm1460_vm1, %v2633_v10 }
 0x47e   : > { %6058 = vmatprep.mubr.msk.bf16.mxu1 %vm1460_vm1, %v2388_v40 }
 0x50f   : > { %v5960_v28 = vpop.f32.mrb[20].mxu1 }
 0x510   : > { %2072 = vst.msk [vmem:[#allocation2 + $0x10] sm:$0xff] %vm1460_vm1, %v5960_v28  ;;  %v2055_v29 = vpop.f32.mrb[21].mxu1 }
 0x511   : > { %2070 = vst.msk [vmem:[#allocation2] sm:$0xff] %vm1460_vm1, %v2055_v29  ;;  %v5961_v30 = vpop.f32.mrb[22].mxu1 }
 0x512   : > { %2073 = vst.msk [vmem:[#allocation2 + $0x18] sm:$0xff] %vm1460_vm1, %v5961_v30  ;;  %v2058_v32 = vpop.f32.mrb[23].mxu1 }
 0x513   : > { %2071 = vst.msk [vmem:[#allocation2 + $0x8] sm:$0xff] %vm1460_vm1, %v2058_v32 }
 0x51f   : > { %v5984_v35 = vpop.f32.mrb[24].mxu1 }
 0x520   : > { %v2240_v23 = vadd.f32 %v5984_v35, %v5352_v33  ;;  %v2231_v60 = vpop.f32.mrb[25].mxu1  ;;  %v8360_v35 = vpack.c.bf16 %v7417_v13, %v7403_v53 }
 0x521   : > { %v2232_v26 = vadd.f32 %v5352_v33, %v2231_v60  ;;  %v5985_v14 = vpop.f32.mrb[26].mxu1 }
 0x522   : > { %v2243_v27 = vadd.f32 %v5985_v14, %v5352_v33  ;;  %v2234_v40 = vpop.f32.mrb[27].mxu1 }
 0x523   : > { %v2235_v20 = vadd.f32 %v5352_v33, %v2234_v40 }
 0x524   : > { %v2263_v17 = vpack.c.bf16 %v2243_v27, %v2240_v23 }
 0x525   : > { %v2262_v62 = vpack.c.bf16 %v2235_v20, %v2232_v26 }
 0x526   : > { %v2790_v18 = vsel %vm1460_vm1, %v2263_v17, 0 }
 0x527   : > { %6354 = vmatprep.subr.msk.bf16.mxu1 %vm1460_vm1, %v2262_v62  ;;  %v2787_v25 = vsel %vm1460_vm1, %v2262_v62, 0  ;;  %v5988_v0 = vpop.f32.mrb[28].mxu1 }
 0x528   : > { %6051 = vmatpush3.bf16.xpose.msra.mxu1 %v2787_v25  ;;  %v2256_v45 = vadd.f32 %v5988_v0, %v5352_v33  ;;  %v2247_v4 = vpop.f32.mrb[29].mxu1  ;;  %v8362_v0 = vmov 1  }
 0x529   : > { %6355 = vmatprep.subr.msk.bf16.mxu1 %vm1460_vm1, %v2263_v17  ;;  %v2248_v57 = vadd.f32 %v5352_v33, %v2247_v4  ;;  %v5989_v21 = vpop.f32.mrb[30].mxu1  ;;  %v5370_v4 = vld [vmem:[%s8257_s15 + $0x1] ss:$0 sm:$0xff] }
 0x52a   : > { %v2259_v3 = vadd.f32 %v5989_v21, %v5352_v33  ;;  %v2250_v51 = vpop.f32.mrb[31].mxu1 }
 0x52b   : > { %v2251_v15 = vadd.f32 %v5352_v33, %v2250_v51 }
 0x52c   : > { %v2265_v59 = vpack.c.bf16 %v2259_v3, %v2256_v45  ;;  %v8364_v45 = vld [vmem:[#allocation22_spill] sm:$0xff] }
 0x52d   : > { %v2264_v38 = vpack.c.bf16 %v2251_v15, %v2248_v57 }
 0x52e   : > { %v2796_v56 = vsel %vm1460_vm1, %v2265_v59, 0 }
 0x52f   : > { %v2793_v10 = vsel %vm1460_vm1, %v2264_v38, 0 }
 0x530   : > { %6053 = vmatpush3.bf16.xpose.msra.mxu1 %v2790_v18 }
 0x531   : > { %6356 = vmatprep.subr.msk.bf16.mxu1 %vm1460_vm1, %v2264_v38 }
 0x538   : > { %6055 = vmatpush3.bf16.xpose.msra.mxu1 %v2793_v10 }
 0x539   : > { %6357 = vmatprep.subr.msk.bf16.mxu1 %vm1460_vm1, %v2265_v59 }
 0x540   : > { %6057 = vmatpush3.bf16.xpose.msra.mxu1 %v2796_v56 }
 0x544   : > { %v6016_v19 = vpop.f32.mrb[32].mxu1 }
 0x545   : > { %v2485_v5 = vpop.f32.mrb[33].mxu1  ;;  %v2502_v28 = vmul.f32 %v6016_v19, %v7196_v41  ;;  %v2508_v29 = vmul.f32 %v6016_v19, %v7198_v42 }
 0x546   : > { %v6017_v16 = vpop.f32.mrb[34].mxu1  ;;  %v2500_v23 = vmul.f32 %v7204_v46, %v2485_v5  ;;  %v2506_v60 = vmul.f32 %v7206_v47, %v2485_v5 }
 0x547   : > { %v2503_v30 = vmul.f32 %v6017_v16, %v7200_v43  ;;  %v2509_v32 = vmul.f32 %v6017_v16, %v7202_v44  ;;  %v2488_v33 = vpop.f32.mrb[35].mxu1  ;;  %6059 = vmatmul.mubr.msk.bf16.vlgmr.msra.gmra.mrb[40].mxu1 %vm1460_vm1, %v8360_v35 }
 0x548   : > { %v2501_v26 = vmul.f32 %v7208_v48, %v2488_v33  ;;  %v2507_v14 = vmul.f32 %v7210_v49, %v2488_v33  ;;  %6082 = vmatprep.mubr.msk.bf16.mxu1 %vm1070_vm0, %v7016_v7 }
 0x549   : > { %v2505_v27 = vpack.c.bf16 %v2503_v30, %v2502_v28  ;;  %v2511_v40 = vpack.c.bf16 %v2509_v32, %v2508_v29 }
 0x54a   : > { %v2504_v20 = vpack.c.bf16 %v2501_v26, %v2500_v23  ;;  %v2510_v17 = vpack.c.bf16 %v2507_v14, %v2506_v60 }
 0x54c   : > { %6026 = vmatprep.mubr.msk.bf16.mxu0 %vm1070_vm0, %v2510_v17  ;;  %v6046_v53 = vpop.f32.mrb[36].mxu1 }
 0x54d   : > { %2742 = vrot.lane.b32.xlu0 %v6046_v53, %s8361_s24  ;;  %6027 = vmatmul.mubr.msk.bf16.vlgmr.msra.gmra.mrb[28].mxu0 %vm1070_vm0, %v2511_v40  ;;  %v2717_v13 = vpop.f32.mrb[37].mxu1 }
 0x54e   : > { %6031 = vmatpush3.bf16.xpose.msra.mxu0 %v7228_v1  ;;  %2740 = vrot.lane.b32.xlu1 %v2717_v13, %s8361_s24 }
 0x54f   : > { %6038 = vmatprep.mubr.msk.bf16.mxu0 %vm1070_vm0, %v2504_v20  ;;  %6351 = vmatprep.subr.msk.bf16.mxu0 %vm1070_vm0, %v7233_v2  ;;  %v8363_v2 = vld [vmem:[#allocation21_spill] sm:$0xff]  ;;  %v8365_v20 = vmov 0  }
 0x550   : > { %v6049_v62 = vpop.f32.mrb[38].mxu1 }
 0x551   : > { %2757 = vperm.xlu0 %6473, %v2717_v13   ;;  %v2727_v25 = vpop.f32.mrb[39].mxu1 }
 0x552   : > { %2744 = vrot.lane.b32.xlu1 %v2727_v25, %s8361_s24 }
 0x555   : > { %2769 = vperm.xlu0 %6473, %v6049_v62  }
 0x556   : > { %6033 = vmatpush3.bf16.xpose.msra.mxu0 %v7257_v8  ;;  %2746 = vrot.lane.b32.xlu1 %v6049_v62, %s8361_s24 }
 0x557   : > { %6352 = vmatprep.subr.msk.bf16.mxu0 %vm1070_vm0, %v7262_v9  ;;  %v6000_v9 = vpop.f32.mrb[20].mxu0 }
 0x558   : > { %v2350_v57 = vadd.f32 %v6000_v9, %v5370_v4  ;;  %v2341_v21 = vpop.f32.mrb[21].mxu0 }
 0x559   : > { %6475 = vset.pattern.permute.xlu0 %v8362_v0  ;;  %v2342_v3 = vadd.f32 %v5370_v4, %v2341_v21  ;;  %v6001_v51 = vpop.f32.mrb[22].mxu0 }
 0x55a   : > { %2761 = vperm.xlu1 %6474, %v6046_v53   ;;  %v2353_v15 = vadd.f32 %v6001_v51, %v5370_v4  ;;  %v2344_v59 = vpop.f32.mrb[23].mxu0 }
 0x55b   : > { %v2345_v38 = vadd.f32 %v5370_v4, %v2344_v59  ;;  %v6004_v56 = vpop.f32.mrb[24].mxu0 }
 0x55c   : > { %v2373_v18 = vpack.c.bf16 %v2353_v15, %v2350_v57  ;;  %v2366_v19 = vadd.f32 %v6004_v56, %v5370_v4  ;;  %v2357_v5 = vpop.f32.mrb[25].mxu0 }
 0x55d   : > { %v2372_v10 = vpack.c.bf16 %v2345_v38, %v2342_v3  ;;  %v2358_v16 = vadd.f32 %v5370_v4, %v2357_v5  ;;  %v6005_v28 = vpop.f32.mrb[26].mxu0 }
 0x55e   : > { %6035 = vmatpush3.bf16.xpose.msra.mxu0 %v7274_v11  ;;  %2765 = vperm.xlu1 %6474, %v2727_v25   ;;  %v2369_v29 = vadd.f32 %v6005_v28, %v5370_v4  ;;  %v2360_v30 = vpop.f32.mrb[27].mxu0 }
 0x55f   : > { %6353 = vmatprep.subr.msk.bf16.mxu0 %vm1070_vm0, %v8363_v2  ;;  %v2361_v32 = vadd.f32 %v5370_v4, %v2360_v30  ;;  %v6535_v4 = vld [vmem:[%s8252_s10 + $0x40] sm:$0xff]  }
 0x560   : > { %v2375_v33 = vpack.c.bf16 %v2369_v29, %v2366_v19  ;;  %6074 = vmatprep.subr.bf16.mxu1 %v6535_v4 }
 0x561   : > { %v2374_v35 = vpack.c.bf16 %v2361_v32, %v2358_v16  ;;  %6075 = vmatpush3.bf16.msra.mxu1 %v6535_v4 }
 0x562   : > { %6476 = vset.pattern.permute.xlu1 %v8362_v0 }
 0x566   : > { %6037 = vmatpush3.bf16.xpose.msra.mxu0 %v8364_v45 }
 0x567   : > { %6062 = vmatprep.subr.bf16.mxu0 %v2372_v10 }
 0x56d   : > { %6039 = vmatmul.mubr.msk.bf16.vlgmr.msra.gmra.mrb[28].mxu0 %vm1070_vm0, %v2505_v27 }
 0x56e   : > { %6063 = vmatpush3.bf16.msra.mxu0 %v2372_v10 }
 0x56f   : > { %6064 = vmatprep.subr.bf16.mxu0 %v2373_v18 }
 0x572   : > { %6065 = vmatpush3.bf16.msra.mxu0 %v2373_v18 }
 0x573   : > { %6066 = vmatprep.subr.bf16.mxu0 %v2374_v35 }
 0x576   : > { %6067 = vmatpush3.bf16.msra.mxu0 %v2374_v35 }
 0x577   : > { %6068 = vmatprep.subr.bf16.mxu0 %v2375_v33 }
 0x57a   : > { %6069 = vmatpush3.bf16.msra.mxu0 %v2375_v33 }
 0x5bf   : > { %v2743_v23 = vpop.permute.xlu0 %2742 }
 0x5c0   : > { %v2753_v60 = vsub.f32 %v6046_v53, %v2743_v23  ;;  %v2741_v26 = vpop.permute.xlu1 %2740  ;;  %v6536_v53 = vld [vmem:[%s8252_s10 + $0x48] sm:$0xff]  }
 0x5c1   : > { %v2752_v14 = vsub.f32 %v2717_v13, %v2741_v26  ;;  %6076 = vmatprep.subr.bf16.mxu1 %v6536_v53 }
 0x5c2   : > { %2854 = vperm.xlu0 %6475, %v2753_v60   ;;  %6077 = vmatpush3.bf16.msra.mxu1 %v6536_v53 }
 0x5c3   : > { %2849 = vperm.xlu1 %6476, %v2752_v14  }
 0x5c4   : > { %v2745_v27 = vpop.permute.xlu1 %2744 }
 0x5c5   : > { %v2754_v40 = vsub.f32 %v2727_v25, %v2745_v27 }
 0x5c6   : > { %6477 = vset.pattern.permute.xlu0 %v8365_v20 }
 0x5c7   : > { %2859 = vperm.xlu1 %6476, %v2754_v40  }
 0x5c8   : > { %v2747_v17 = vpop.permute.xlu1 %2746 }
 0x5c9   : > { %v2755_v2 = vsub.f32 %v6049_v62, %v2747_v17 }
 0x5cb   : > { %2864 = vperm.xlu1 %6476, %v2755_v2  }
 0x5cf   : > { %6478 = vset.pattern.permute.xlu1 %v8365_v20 }
 0x5d0   : > { %v2758_v21 = vpop.permute.xlu0 %2757 }
 0x5d4   : > { %v2770_v15 = vpop.permute.xlu0 %2769 }
 0x5d9   : > { %v2762_v62 = vpop.permute.xlu1 %2761 }
 0x5dd   : > { %v2766_v3 = vpop.permute.xlu1 %2765 }
 0x61a   : > { %v6060_v13 = vpop.f32.mrb[40].mxu1 }
 0x61b   : > { %v2832_v25 = vpop.f32.mrb[41].mxu1 }
 0x61c   : > { %v6061_v9 = vpop.f32.mrb[42].mxu1 }
 0x61d   : > { %v2835_v57 = vpop.f32.mrb[43].mxu1 }
 0x640   : > { %v6040_v51 = vpop.f32.mrb[28].mxu0 }
 0x641   : > { %v2774_v59 = vadd.f32 %v6040_v51, %v2766_v3  ;;  %v2607_v38 = vpop.f32.mrb[29].mxu0  ;;  %v2855_v30 = vpop.permute.xlu0 %2854  ;;  %v8366_v3 = vld [vmem:[#allocation25_spill] sm:$0xff]  ;;  %v8367_v51 = vld [vmem:[#allocation26_spill] sm:$0xff] }
 0x642   : > { %v2772_v18 = vadd.f32 %v2758_v21, %v2607_v38  ;;  %v6041_v10 = vpop.f32.mrb[30].mxu0  ;;  %v2850_v56 = vpop.permute.xlu1 %2849  ;;  %v2868_v40 = vmul.f32 %v2855_v30, %v7343_v22 }
 0x643   : > { %v2778_v19 = vmul.f32 %v2774_v59, %v7333_v55  ;;  %v2775_v5 = vadd.f32 %v6041_v10, %v2770_v15  ;;  %v2610_v16 = vpop.f32.mrb[31].mxu0  ;;  %v2867_v23 = vmul.f32 %v2850_v56, %v7339_v61  ;;  %v8368_v59 = vld [vmem:[#allocation27_spill] sm:$0xff]  ;;  %v8369_v10 = vld [vmem:[#allocation28_spill] sm:$0xff] }
 0x644   : > { %v2776_v28 = vmul.f32 %v2772_v18, %v7335_v58  ;;  %v2773_v29 = vadd.f32 %v2762_v62, %v2610_v16  ;;  %v6538_v16 = vld [vmem:[%s8252_s10 + $0x58] sm:$0xff]  }
 0x645   : > { %v2779_v32 = vmul.f32 %v2775_v5, %v7337_v54  ;;  %v2841_v33 = vadd.f32 %v6060_v13, %v2778_v19  ;;  %v6537_v5 = vld [vmem:[%s8252_s10 + $0x50] sm:$0xff]  }
 0x646   : > { %v2833_v35 = vadd.f32 %v2832_v25, %v2776_v28  ;;  %v2777_v60 = vmul.f32 %v2773_v29, %v7341_v6  ;;  %v2860_v26 = vpop.permute.xlu1 %2859  ;;  %6078 = vmatprep.subr.bf16.mxu1 %v6537_v5  ;;  %v8370_v28 = vld [vmem:[#allocation20_spill] sm:$0xff] }
 0x647   : > { %v2869_v14 = vmul.f32 %v2860_v26, %v7346_v12  ;;  %v2844_v27 = vadd.f32 %v6061_v9, %v2779_v32  ;;  %6079 = vmatpush3.bf16.msra.mxu1 %v6537_v5  ;;  %v7624_v29 = vld [vmem:[%s7049_s22] sm:$0xff]  }
 0x648   : > { %v2871_v17 = vadd.f32 %v2867_v23, %v2833_v35  ;;  %v2836_v2 = vadd.f32 %v2835_v57, %v2777_v60  ;;  %6080 = vmatprep.subr.bf16.mxu1 %v6538_v16  ;;  %8371 = vst [vmem:[#allocation21_spill] sm:$0xff] %v7624_v29 }
 0x649   : > { %v2873_v4 = vadd.f32 %v2869_v14, %v2841_v33 }
 0x64a   : > { %v2865_v53 = vpop.permute.xlu1 %2864  ;;  %v2875_v62 = vadd.f32 %v2871_v17, %v7351_v52  ;;  %v2872_v21 = vadd.f32 %v2868_v40, %v2836_v2 }
 0x64b   : > { %v2870_v13 = vmul.f32 %v2865_v53, %v8366_v3  ;;  %v2877_v38 = vadd.f32 %v2873_v4, %v8368_v59  ;;  %6081 = vmatpush3.bf16.msra.mxu1 %v6538_v16 }
 0x64c   : > { %v2879_v25 = vsel %vm1070_vm0, %v2875_v62, -inf  ;;  %v2876_v15 = vadd.f32 %v2872_v21, %v8367_v51 }
 0x64d   : > { %v2874_v18 = vadd.f32 %v2870_v13, %v2844_v27  ;;  %2880 = vmax.xlane.f32.xlu0 %v2879_v25  ;;  %v2885_v57 = vsel %vm1070_vm0, %v2877_v38, -inf }
 0x64e   : > { %v2882_v9 = vsel %vm1070_vm0, %v2876_v15, -inf  ;;  %6083 = vmatmul.mubr.msk.bf16.vlgmr.msra.gmra.mrb[44].mxu1 %vm1070_vm0, %v8370_v28 }
 0x64f   : > { %2883 = vmax.xlane.f32.xlu1 %v2882_v9  ;;  %v2878_v56 = vadd.f32 %v2874_v18, %v8369_v10  ;;  %6110 = vmatprep.mubr.msk.bf16.mxu1 %vm1070_vm0, %v7624_v29  ;;  %v6539_v18 = vld [vmem:[%s8253_s11 + $0x40] sm:$0xff]  }
 0x650   : > { %6086 = vmatprep.subr.bf16.mxu0 %v6539_v18  ;;  %v5464_v9 = vld [vmem:[%s8258_s16 + $0x2] ss:$0 sm:$0xff] }
 0x651   : > { %2886 = vmax.xlane.f32.xlu0 %v2885_v57  ;;  %v2888_v19 = vsel %vm1070_vm0, %v2878_v56, -inf  ;;  %v5466_v57 = vld [vmem:[%s8259_s17 + $0x2] ss:$0 sm:$0xff] }
 0x655   : > { %2889 = vmax.xlane.f32.xlu0 %v2888_v19 }
 0x6da   : > { %v2881_v30 = vpop.xlane.xlu0 %2880 }
 0x6db   : > { %v2891_v32 = vsub.f32 %v2875_v62, %v2881_v30 }
 0x6dc   : > { %v2884_v33 = vpop.xlane.xlu1 %2883 }
 0x6dd   : > { %v2895_v35 = vmul.f32 1.442695, %v2891_v32  ;;  %v2892_v23 = vsub.f32 %v2876_v15, %v2884_v33 }
 0x6de   : > { %v2887_v60 = vpop.xlane.xlu0 %2886 }
 0x6df   : > { %6589 = vpow2.f32 %v2895_v35  ;;  %v2897_v26 = vmul.f32 1.442695, %v2892_v23  ;;  %v2893_v14 = vsub.f32 %v2877_v38, %v2887_v60 }
 0x6e1   : > { %6591 = vpow2.f32 %v2897_v26  ;;  %v2899_v27 = vmul.f32 1.442695, %v2893_v14 }
 0x6e2   : > { %v2890_v40 = vpop.xlane.xlu0 %2889 }
 0x6e3   : > { %6593 = vpow2.f32 %v2899_v27  ;;  %v2894_v17 = vsub.f32 %v2878_v56, %v2890_v40 }
 0x6e5   : > { %v2901_v2 = vmul.f32 1.442695, %v2894_v17 }
 0x6e7   : > { %6595 = vpow2.f32 %v2901_v2 }
 0x6e9   : > { %v6590_v4 = vpop.eup %6589 }
 0x6ea   : > { %v2903_v53 = vsel %vm1070_vm0, %v6590_v4, 0.0 }
 0x6eb   : > { %v6592_v21 = vpop.eup %6591  ;;  %2904 = vadd.xlane.f32.xlu1 %v2903_v53 }
 0x6ec   : > { %v2906_v62 = vsel %vm1070_vm0, %v6592_v21, 0.0 }
 0x6ed   : > { %v6594_v13 = vpop.eup %6593  ;;  %2907 = vadd.xlane.f32.xlu0 %v2906_v62 }
 0x6ee   : > { %v2909_v25 = vsel %vm1070_vm0, %v6594_v13, 0.0 }
 0x6ef   : > { %2910 = vadd.xlane.f32.xlu1 %v2909_v25 }
 0x6f1   : > { %v6596_v15 = vpop.eup %6595 }
 0x6f2   : > { %v2912_v38 = vsel %vm1070_vm0, %v6596_v15, 0.0 }
 0x6f3   : > { %2913 = vadd.xlane.f32.xlu0 %v2912_v38 }
 0x721   : > { %v7641_v56 = vpop.f32.mrb[44].mxu1 }
 0x722   : > { %v7644_v19 = vadd.f32 %v7641_v56, %v5464_v9  ;;  %v7647_v5 = vadd.f32 %v7641_v56, %v5466_v57  ;;  %v7649_v16 = vpop.f32.mrb[45].mxu1 }
 0x723   : > { %v7652_v30 = vadd.f32 %v5464_v9, %v7649_v16  ;;  %v3325_v32 = vadd.f32 %v5466_v57, %v7649_v16  ;;  %v7655_v33 = vpop.f32.mrb[46].mxu1 }
 0x724   : > { %v7658_v35 = vadd.f32 %v7655_v33, %v5464_v9  ;;  %v7661_v23 = vadd.f32 %v7655_v33, %v5466_v57  ;;  %v7663_v60 = vpop.f32.mrb[47].mxu1 }
 0x725   : > { %v7666_v26 = vadd.f32 %v5464_v9, %v7663_v60  ;;  %v3326_v14 = vadd.f32 %v5466_v57, %v7663_v60 }
 0x726   : > { %v3330_v40 = vpack.c.bf16 %v7661_v23, %v7647_v5 }
 0x727   : > { %v3329_v2 = vpack.c.bf16 %v3326_v14, %v3325_v32  ;;  %v6540_v14 = vld [vmem:[%s8253_s11 + $0x48] sm:$0xff]  }
 0x778   : > { %v2905_v53 = vpop.xlane.xlu1 %2904 }
 0x779   : > { %6597 = vrcp.f32 %v2905_v53 }
 0x77a   : > { %v2908_v62 = vpop.xlane.xlu0 %2907 }
 0x77b   : > { %6599 = vrcp.f32 %v2908_v62  ;;  %v7761_v62 = vld [vmem:[%s7049_s22 + $0x10] sm:$0xff]  }
 0x77c   : > { %v2911_v25 = vpop.xlane.xlu1 %2910 }
 0x77d   : > { %6601 = vrcp.f32 %v2911_v25  ;;  %v7769_v25 = vld [vmem:[%s8251_s9 + $0x8] sm:$0xff]  }
 0x780   : > { %v2914_v38 = vpop.xlane.xlu0 %2913 }
 0x781   : > { %6603 = vrcp.f32 %v2914_v38  ;;  %v7774_v38 = vld [vmem:[%s7049_s22 + $0x18] sm:$0xff]  }
 0x783   : > { %v6598_v9 = vpop.eup %6597 }
 0x784   : > { %v2919_v29 = vmul.f32 %v6598_v9, %v6590_v4  ;;  %v6544_v4 = vld [vmem:[%s8255_s13 + $0x48] sm:$0xff]   ;;  %v7782_v9 = vld [vmem:[%s8251_s9 + $0x10] sm:$0xff]  }
 0x785   : > { %v6600_v57 = vpop.eup %6599 }
 0x786   : > { %v2920_v28 = vmul.f32 %v6600_v57, %v6592_v21  ;;  %v3370_v21 = vsel %vm1460_vm1, %v6544_v4, 0  ;;  %v7790_v57 = vld [vmem:[%s8251_s9 + $0x18] sm:$0xff]  }
 0x787   : > { %v6602_v10 = vpop.eup %6601 }
 0x788   : > { %v2923_v27 = vpack.c.bf16 %v2920_v28, %v2919_v29  ;;  %v2921_v23 = vmul.f32 %v6602_v10, %v6594_v13  ;;  %v6541_v28 = vld [vmem:[%s8253_s11 + $0x50] sm:$0xff]   ;;  %v6542_v10 = vld [vmem:[%s8253_s11 + $0x58] sm:$0xff]   ;;  %v6543_v29 = vld [vmem:[%s8255_s13 + $0x40] sm:$0xff]  }
 0x789   : > { %v6546_v13 = vld [vmem:[%s8255_s13 + $0x58] sm:$0xff]  }
 0x78a   : > { %6070 = vmatprep.mubr.msk.bf16.mxu0 %vm1070_vm0, %v2923_v27 }
 0x78b   : > { %v6604_v5 = vpop.eup %6603 }
 0x78c   : > { %v2922_v17 = vmul.f32 %v6604_v5, %v6596_v15  ;;  %v5487_v15 = vld [vmem:[%s8261_s19 + $0x4] sm:$0x3] }
 0x78d   : > { %v7798_v5 = vld [vmem:[%s8346_s1] sm:$0xff]  }
 0x78e   : > { %v2924_v32 = vpack.c.bf16 %v2922_v17, %v2921_v23 }
 0x790   : > { %6071 = vmatmul.mubr.msk.bf16.vlgmr.msra.gmra.mrb[32].mxu0 %vm1070_vm0, %v2924_v32 }
 0x791   : > { %6087 = vmatpush3.bf16.msra.mxu0 %v6539_v18  ;;  %6094 = vmatprep.mubr.msk.bf16.mxu0 %vm1070_vm0, %v7440_v63  ;;  %v3367_v63 = vsel %vm1460_vm1, %v6543_v29, 0  ;;  %v5486_v18 = vld [vmem:[%s8260_s18 + $0x2] ss:$0 sm:$0xff] }
 0x792   : > { %6088 = vmatprep.subr.bf16.mxu0 %v6540_v14  ;;  %v3557_v27 = vadd.f32 %v5486_v18, %v7649_v16  ;;  %v3558_v17 = vadd.f32 %v5486_v18, %v7663_v60  ;;  %v3560_v53 = vadd.f32 %v7655_v33, %v5486_v18  ;;  %v8372_v16 = vpack.c.bf16 %v7666_v26, %v7652_v30  ;;  %v6547_v60 = vld [vmem:[%s8254_s12 + $0x40] sm:$0xff]   ;;  %v6549_v33 = vld [vmem:[%s8254_s12 + $0x50] sm:$0xff]   ;;  %v6550_v30 = vld [vmem:[%s8254_s12 + $0x58] sm:$0xff]  }
 0x793   : > { %6102 = vmatprep.subr.bf16.mxu1 %v6547_v60  ;;  %v7751_v26 = vld [vmem:[%s8251_s9] sm:$0xff]  }
 0x794   : > { %6103 = vmatpush3.bf16.msra.mxu1 %v6547_v60 }
 0x795   : > { %6089 = vmatpush3.bf16.msra.mxu0 %v6540_v14 }
 0x796   : > { %6090 = vmatprep.subr.bf16.mxu0 %v6541_v28 }
 0x799   : > { %6091 = vmatpush3.bf16.msra.mxu0 %v6541_v28 }
 0x79a   : > { %6092 = vmatprep.subr.bf16.mxu0 %v6542_v10 }
 0x79d   : > { %6093 = vmatpush3.bf16.msra.mxu0 %v6542_v10  ;;  %v5436_v10 = vld [vmem:[%s8256_s14 + $0x2] ss:$0 sm:$0xff] }
 0x79e   : > { %6358 = vmatprep.subr.msk.bf16.mxu0 %vm1460_vm1, %v6543_v29 }
 0x7a0   : > { %6095 = vmatmul.mubr.msk.bf16.vlgmr.msra.gmra.mrb[36].mxu0 %vm1070_vm0, %v7455_v37  ;;  %v6545_v37 = vld [vmem:[%s8255_s13 + $0x50] sm:$0xff]  }
 0x7a1   : > { %6098 = vmatprep.mubr.msk.bf16.mxu0 %vm1070_vm0, %v7460_v39  ;;  %v3373_v39 = vsel %vm1460_vm1, %v6545_v37, 0 }
 0x7a6   : > { %6119 = vmatpush3.bf16.xpose.msra.mxu0 %v3367_v63 }
 0x7a7   : > { %6359 = vmatprep.subr.msk.bf16.mxu0 %vm1460_vm1, %v6544_v4 }
 0x7a8   : > { %6099 = vmatmul.mubr.msk.bf16.gmra.mrb[40].mxu0 %vm1070_vm0, %v7470_v50  ;;  %v3376_v50 = vsel %vm1460_vm1, %v6546_v13, 0 }
 0x7a9   : > { %6126 = vmatprep.mubr.msk.bf16.mxu0 %vm1460_vm1, %v3329_v2  ;;  %v3559_v2 = vadd.f32 %v7641_v56, %v5486_v18  ;;  %v6548_v56 = vld [vmem:[%s8254_s12 + $0x48] sm:$0xff]  }
 0x7aa   : > { %6104 = vmatprep.subr.bf16.mxu1 %v6548_v56 }
 0x7ab   : > { %6105 = vmatpush3.bf16.msra.mxu1 %v6548_v56 }
 0x7ac   : > { %6106 = vmatprep.subr.bf16.mxu1 %v6549_v33 }
 0x7ae   : > { %6121 = vmatpush3.bf16.xpose.msra.mxu0 %v3370_v21 }
 0x7af   : > { %6360 = vmatprep.subr.msk.bf16.mxu0 %vm1460_vm1, %v6545_v37  ;;  %6107 = vmatpush3.bf16.msra.mxu1 %v6549_v33 }
 0x7b0   : > { %6108 = vmatprep.subr.bf16.mxu1 %v6550_v30 }
 0x7b3   : > { %6109 = vmatpush3.bf16.msra.mxu1 %v6550_v30 }
 0x7b4   : > { %6362 = vmatprep.subr.msk.bf16.mxu1 %vm1070_vm0, %v7751_v26 }
 0x7b6   : > { %6123 = vmatpush3.bf16.xpose.msra.mxu0 %v3373_v39 }
 0x7b7   : > { %6361 = vmatprep.subr.msk.bf16.mxu0 %vm1460_vm1, %v6546_v13 }
 0x7be   : > { %6125 = vmatpush3.bf16.xpose.msra.mxu0 %v3376_v50 }
 0x7bf   : > { %6154 = vmatprep.subr.msk.mxu0 %vm1460_vm1, %v5487_v15 }
 0x7c5   : > { %6127 = vmatmul.mubr.msk.bf16.vlgmr.msra.gmra.mrb[44].mxu0 %vm1460_vm1, %v3330_v40  ;;  %v7756_v40 = vld [vmem:[%s7049_s22 + $0x8] sm:$0xff]  }
 0x7c6   : > { %6156 = vmatprep.mubr.msk.f32.mxu0 %vm1460_vm1, %v3557_v27  ;;  %6155 = vmatpush3.xpose.msk.msra.mxu0 %vm1460_vm1, %v5487_v15 }
 0x7c7   : > { %6111 = vmatmul.mubr.msk.bf16.vlgmr.msra.gmra.mrb[48].mxu1 %vm1070_vm0, %v7756_v40 }
 0x7c8   : > { %6114 = vmatprep.mubr.msk.bf16.mxu1 %vm1070_vm0, %v7761_v62  ;;  %6131 = vmatpush3.bf16.xpose.msra.mxu1 %v7106_v31 }
 0x7c9   : > { %6363 = vmatprep.subr.msk.bf16.mxu1 %vm1070_vm0, %v7769_v25 }
 0x7cd   : > { %6157 = vmatmul.mubr.msk.f32.vlgmr.msra.gmra.mrb[48].mxu0 %vm1460_vm1, %v3558_v17 }
 0x7ce   : > { %6159 = vmatprep.mubr.msk.f32.mxu0 %vm1460_vm1, %v3559_v2 }
 0x7cf   : > { %6115 = vmatmul.mubr.msk.bf16.gmra.mrb[52].mxu1 %vm1070_vm0, %v7774_v38 }
 0x7d0   : > { %6133 = vmatpush3.bf16.xpose.msra.mxu1 %v7123_v34 }
 0x7d1   : > { %6160 = vmatmul.mubr.msk.f32.gmra.mrb[50].mxu0 %vm1460_vm1, %v3560_v53  ;;  %6364 = vmatprep.subr.msk.bf16.mxu1 %vm1070_vm0, %v7782_v9 }
 0x7d2   : > { %6170 = vmatprep.mubr.msk.bf16.mxu0 %vm1460_vm1, %v8372_v16 }
 0x7d8   : > { %6135 = vmatpush3.bf16.xpose.msra.mxu1 %v7135_v36 }
 0x7d9   : > { %6365 = vmatprep.subr.msk.bf16.mxu1 %vm1070_vm0, %v7790_v57 }
 0x7e0   : > { %6137 = vmatpush3.bf16.xpose.msra.mxu1 %v7177_v24 }
 0x7e1   : > { %6366 = vmatprep.subr.msk.bf16.mxu1 %vm1070_vm0, %v7798_v5 }
 0x863   : > { %v7802_v23 = vpop.f32.mrb[32].mxu0 }
 0x864   : > { %8373 = vst [vmem:[#allocation22_spill] sm:$0xff] %v7802_v23  ;;  %v7804_v32 = vpop.f32.mrb[33].mxu0 }
 0x865   : > { %8374 = vst [vmem:[#allocation29_spill] sm:$0xff] %v7804_v32  ;;  %v7806_v14 = vpop.f32.mrb[34].mxu0 }
 0x866   : > { %8375 = vst [vmem:[#allocation30_spill] sm:$0xff] %v7806_v14  ;;  %v7808_v28 = vpop.f32.mrb[35].mxu0 }
 0x867   : > { %8376 = vst [vmem:[#allocation31_spill] sm:$0xff] %v7808_v28 }
 0x873   : > { %v6096_v29 = vpop.f32.mrb[36].mxu0 }
 0x874   : > { %v3167_v63 = vadd.f32 %v6096_v29, %v5436_v10  ;;  %v3158_v4 = vpop.f32.mrb[37].mxu0 }
 0x875   : > { %v3159_v21 = vadd.f32 %v5436_v10, %v3158_v4  ;;  %v6097_v37 = vpop.f32.mrb[38].mxu0 }
 0x876   : > { %v3170_v39 = vadd.f32 %v6097_v37, %v5436_v10  ;;  %v3161_v13 = vpop.f32.mrb[39].mxu0 }
 0x877   : > { %v3162_v50 = vadd.f32 %v5436_v10, %v3161_v13 }
 0x878   : > { %v3190_v15 = vpack.c.bf16 %v3170_v39, %v3167_v63 }
 0x879   : > { %v3189_v18 = vpack.c.bf16 %v3162_v50, %v3159_v21 }
 0x87a   : > { %v3717_v63 = vsel %vm1460_vm1, %v3190_v15, 0 }
 0x87b   : > { %6370 = vmatprep.subr.msk.bf16.mxu0 %vm1460_vm1, %v3189_v18  ;;  %v3714_v27 = vsel %vm1460_vm1, %v3189_v18, 0  ;;  %v6100_v17 = vpop.f32.mrb[40].mxu0 }
 0x87c   : > { %6163 = vmatpush3.bf16.xpose.msra.mxu0 %v3714_v27  ;;  %v3183_v2 = vadd.f32 %v6100_v17, %v5436_v10  ;;  %v3174_v53 = vpop.f32.mrb[41].mxu0 }
 0x87d   : > { %6371 = vmatprep.subr.msk.bf16.mxu0 %vm1460_vm1, %v3190_v15  ;;  %v3175_v16 = vadd.f32 %v5436_v10, %v3174_v53  ;;  %v6101_v60 = vpop.f32.mrb[42].mxu0 }
 0x87e   : > { %v3186_v56 = vadd.f32 %v6101_v60, %v5436_v10  ;;  %v3177_v33 = vpop.f32.mrb[43].mxu0 }
 0x87f   : > { %v3178_v30 = vadd.f32 %v5436_v10, %v3177_v33 }
 0x880   : > { %v3192_v29 = vpack.c.bf16 %v3186_v56, %v3183_v2  ;;  %v8377_v2 = vpack.c.bf16 %v7658_v35, %v7644_v19 }
 0x881   : > { %v3191_v4 = vpack.c.bf16 %v3178_v30, %v3175_v16 }
 0x882   : > { %v3723_v37 = vsel %vm1460_vm1, %v3192_v29, 0 }
 0x883   : > { %v3720_v21 = vsel %vm1460_vm1, %v3191_v4, 0 }
 0x884   : > { %6165 = vmatpush3.bf16.xpose.msra.mxu0 %v3717_v63 }
 0x885   : > { %6372 = vmatprep.subr.msk.bf16.mxu0 %vm1460_vm1, %v3191_v4 }
 0x88c   : > { %6167 = vmatpush3.bf16.xpose.msra.mxu0 %v3720_v21 }
 0x88d   : > { %6373 = vmatprep.subr.msk.bf16.mxu0 %vm1460_vm1, %v3192_v29 }
 0x894   : > { %6169 = vmatpush3.bf16.xpose.msra.mxu0 %v3723_v37  ;;  %v7854_v37 = vld [vmem:[%s8346_s1 + $0x10] sm:$0xff]  }
 0x898   : > { %v6128_v39 = vpop.f32.mrb[44].mxu0 }
 0x899   : > { %v3412_v13 = vpop.f32.mrb[45].mxu0  ;;  %v3429_v10 = vmul.f32 %v6128_v39, %v7196_v41  ;;  %v3435_v18 = vmul.f32 %v6128_v39, %v7198_v42  ;;  %v7863_v39 = vld [vmem:[%s8346_s1 + $0x18] sm:$0xff]  }
 0x89a   : > { %v6129_v50 = vpop.f32.mrb[46].mxu0  ;;  %v3427_v53 = vmul.f32 %v7204_v46, %v3412_v13  ;;  %v3433_v16 = vmul.f32 %v7206_v47, %v3412_v13  ;;  %v5454_v13 = vld [vmem:[%s8257_s15 + $0x2] ss:$0 sm:$0xff] }
 0x89b   : > { %v3430_v15 = vmul.f32 %v6129_v50, %v7200_v43  ;;  %v3436_v27 = vmul.f32 %v6129_v50, %v7202_v44  ;;  %v3415_v17 = vpop.f32.mrb[47].mxu0  ;;  %6171 = vmatmul.mubr.msk.bf16.vlgmr.msra.gmra.mrb[52].mxu0 %vm1460_vm1, %v8377_v2  ;;  %v6112_v50 = vpop.f32.mrb[48].mxu1 }
 0x89c   : > { %v3428_v60 = vmul.f32 %v7208_v48, %v3415_v17  ;;  %v3434_v56 = vmul.f32 %v7210_v49, %v3415_v17  ;;  %6194 = vmatprep.mubr.msk.bf16.mxu0 %vm1070_vm0, %v7016_v7  ;;  %v7844_v7 = vld [vmem:[%s8346_s1 + $0x8] sm:$0xff]  }
 0x89d   : > { %v3432_v33 = vpack.c.bf16 %v3430_v15, %v3429_v10  ;;  %v3438_v30 = vpack.c.bf16 %v3436_v27, %v3435_v18  ;;  %v3277_v10 = vadd.f32 %v6112_v50, %v5454_v13  ;;  %v3268_v18 = vpop.f32.mrb[49].mxu1 }
 0x89e   : > { %v3431_v29 = vpack.c.bf16 %v3428_v60, %v3427_v53  ;;  %v3437_v4 = vpack.c.bf16 %v3434_v56, %v3433_v16  ;;  %v3269_v15 = vadd.f32 %v5454_v13, %v3268_v18  ;;  %v6113_v27 = vpop.f32.mrb[50].mxu1 }
 0x89f   : > { %v3280_v17 = vadd.f32 %v6113_v27, %v5454_v13  ;;  %v3271_v2 = vpop.f32.mrb[51].mxu1 }
 0x8a0   : > { %6138 = vmatprep.mubr.msk.bf16.mxu1 %vm1070_vm0, %v3437_v4  ;;  %v6158_v19 = vpop.f32.mrb[48].mxu0  ;;  %v3272_v53 = vadd.f32 %v5454_v13, %v3271_v2 }
 0x8a1   : > { %3669 = vrot.lane.b32.xlu0 %v6158_v19, %s8361_s24  ;;  %6139 = vmatmul.mubr.msk.bf16.vlgmr.msra.gmra.mrb[56].mxu1 %vm1070_vm0, %v3438_v30  ;;  %v3644_v35 = vpop.f32.mrb[49].mxu0  ;;  %v3300_v16 = vpack.c.bf16 %v3280_v17, %v3277_v10 }
 0x8a2   : > { %6143 = vmatpush3.bf16.xpose.msra.mxu1 %v7228_v1  ;;  %3667 = vrot.lane.b32.xlu1 %v3644_v35, %s8361_s24  ;;  %v3299_v60 = vpack.c.bf16 %v3272_v53, %v3269_v15  ;;  %v6116_v56 = vpop.f32.mrb[52].mxu1 }
 0x8a3   : > { %6150 = vmatprep.mubr.msk.bf16.mxu1 %vm1070_vm0, %v3431_v29  ;;  %6367 = vmatprep.subr.msk.bf16.mxu1 %vm1070_vm0, %v7844_v7  ;;  %v3293_v30 = vadd.f32 %v6116_v56, %v5454_v13  ;;  %v3284_v29 = vpop.f32.mrb[53].mxu1 }
 0x8a4   : > { %v6161_v63 = vpop.f32.mrb[50].mxu0  ;;  %v6117_v4 = vpop.f32.mrb[54].mxu1 }
 0x8a5   : > { %3684 = vperm.xlu0 %6477, %v3644_v35   ;;  %v3654_v21 = vpop.f32.mrb[51].mxu0  ;;  %v3296_v28 = vadd.f32 %v6117_v4, %v5454_v13  ;;  %v3287_v14 = vpop.f32.mrb[55].mxu1 }
 0x8a6   : > { %3671 = vrot.lane.b32.xlu1 %v3654_v21, %s8361_s24  ;;  %v3288_v23 = vadd.f32 %v5454_v13, %v3287_v14 }
 0x8a7   : > { %v3302_v50 = vpack.c.bf16 %v3296_v28, %v3293_v30  ;;  %v6552_v28 = vld [vmem:[%s8252_s10 + $0x68] sm:$0xff]  }
 0x8a9   : > { %3696 = vperm.xlu0 %6477, %v6161_v63  }
 0x8aa   : > { %6145 = vmatpush3.bf16.xpose.msra.mxu1 %v7257_v8  ;;  %3673 = vrot.lane.b32.xlu1 %v6161_v63, %s8361_s24 }
 0x8ab   : > { %6368 = vmatprep.subr.msk.bf16.mxu1 %vm1070_vm0, %v7854_v37 }
 0x8ad   : > { %6479 = vset.pattern.permute.xlu0 %v8362_v0 }
 0x8ae   : > { %3688 = vperm.xlu1 %6478, %v6158_v19  }
 0x8b2   : > { %6147 = vmatpush3.bf16.xpose.msra.mxu1 %v7274_v11  ;;  %3692 = vperm.xlu1 %6478, %v3654_v21  }
 0x8b3   : > { %6369 = vmatprep.subr.msk.bf16.mxu1 %vm1070_vm0, %v7863_v39 }
 0x8b6   : > { %6480 = vset.pattern.permute.xlu1 %v8362_v0 }
 0x8ba   : > { %6149 = vmatpush3.bf16.xpose.msra.mxu1 %v8364_v45 }
 0x8bb   : > { %6174 = vmatprep.subr.bf16.mxu1 %v3299_v60 }
 0x8c1   : > { %6151 = vmatmul.mubr.msk.bf16.vlgmr.msra.gmra.mrb[56].mxu1 %vm1070_vm0, %v3432_v33  ;;  %v3285_v33 = vadd.f32 %v5454_v13, %v3284_v29 }
 0x8c2   : > { %6175 = vmatpush3.bf16.msra.mxu1 %v3299_v60 }
 0x8c3   : > { %6176 = vmatprep.subr.bf16.mxu1 %v3300_v16  ;;  %v3301_v18 = vpack.c.bf16 %v3288_v23, %v3285_v33  ;;  %v6551_v23 = vld [vmem:[%s8252_s10 + $0x60] sm:$0xff]  }
 0x8c4   : > { %6186 = vmatprep.subr.bf16.mxu0 %v6551_v23 }
 0x8c5   : > { %6187 = vmatpush3.bf16.msra.mxu0 %v6551_v23 }
 0x8c6   : > { %6177 = vmatpush3.bf16.msra.mxu1 %v3300_v16  ;;  %6188 = vmatprep.subr.bf16.mxu0 %v6552_v28 }
 0x8c7   : > { %6178 = vmatprep.subr.bf16.mxu1 %v3301_v18 }
 0x8c9   : > { %6189 = vmatpush3.bf16.msra.mxu0 %v6552_v28 }
 0x8ca   : > { %6179 = vmatpush3.bf16.msra.mxu1 %v3301_v18 }
 0x8cb   : > { %6180 = vmatprep.subr.bf16.mxu1 %v3302_v50 }
 0x8ce   : > { %6181 = vmatpush3.bf16.msra.mxu1 %v3302_v50 }
 0x913   : > { %v3670_v10 = vpop.permute.xlu0 %3669 }
 0x914   : > { %v3680_v15 = vsub.f32 %v6158_v19, %v3670_v10  ;;  %v3668_v27 = vpop.permute.xlu1 %3667 }
 0x915   : > { %v3679_v17 = vsub.f32 %v3644_v35, %v3668_v27 }
 0x916   : > { %3781 = vperm.xlu0 %6479, %v3680_v15  }
 0x917   : > { %3776 = vperm.xlu1 %6480, %v3679_v17  }
 0x918   : > { %v3672_v2 = vpop.permute.xlu1 %3671 }
 0x919   : > { %v3681_v53 = vsub.f32 %v3654_v21, %v3672_v2 }
 0x91a   : > { %6481 = vset.pattern.permute.xlu0 %v8365_v20 }
 0x91b   : > { %3786 = vperm.xlu1 %6480, %v3681_v53  }
 0x91c   : > { %v3674_v60 = vpop.permute.xlu1 %3673 }
 0x91d   : > { %v3682_v14 = vsub.f32 %v6161_v63, %v3674_v60 }
 0x91f   : > { %3791 = vperm.xlu1 %6480, %v3682_v14  }
 0x923   : > { %6482 = vset.pattern.permute.xlu1 %v8365_v20 }
 0x924   : > { %v3685_v16 = vpop.permute.xlu0 %3684 }
 0x928   : > { %v3697_v30 = vpop.permute.xlu0 %3696 }
 0x92d   : > { %v3689_v63 = vpop.permute.xlu1 %3688 }
 0x931   : > { %v3693_v56 = vpop.permute.xlu1 %3692 }
 0x96e   : > { %v6172_v19 = vpop.f32.mrb[52].mxu0 }
 0x96f   : > { %v3759_v35 = vpop.f32.mrb[53].mxu0 }
 0x970   : > { %v6173_v21 = vpop.f32.mrb[54].mxu0 }
 0x971   : > { %v3762_v13 = vpop.f32.mrb[55].mxu0 }
 0x994   : > { %v6152_v20 = vpop.f32.mrb[56].mxu1 }
 0x995   : > { %v3701_v29 = vadd.f32 %v6152_v20, %v3693_v56  ;;  %v3534_v33 = vpop.f32.mrb[57].mxu1  ;;  %v3782_v53 = vpop.permute.xlu0 %3781 }
 0x996   : > { %v3699_v4 = vadd.f32 %v3685_v16, %v3534_v33  ;;  %v6153_v50 = vpop.f32.mrb[58].mxu1  ;;  %v3777_v18 = vpop.permute.xlu1 %3776 }
 0x997   : > { %v3705_v10 = vmul.f32 %v3701_v29, %v7333_v55  ;;  %v3702_v15 = vadd.f32 %v6153_v50, %v3697_v30  ;;  %v3537_v27 = vpop.f32.mrb[59].mxu1  ;;  %v3794_v28 = vmul.f32 %v3777_v18, %v7339_v61  ;;  %v3795_v29 = vmul.f32 %v3782_v53, %v7343_v22 }
 0x998   : > { %v3703_v17 = vmul.f32 %v3699_v4, %v7335_v58  ;;  %v3700_v2 = vadd.f32 %v3689_v63, %v3537_v27 }
 0x999   : > { %v3706_v60 = vmul.f32 %v3702_v15, %v7337_v54  ;;  %v3768_v14 = vadd.f32 %v6172_v19, %v3705_v10 }
 0x99a   : > { %v3760_v23 = vadd.f32 %v3759_v35, %v3703_v17  ;;  %v3704_v56 = vmul.f32 %v3700_v2, %v7341_v6  ;;  %v3787_v20 = vpop.permute.xlu1 %3786  ;;  %v8378_v17 = vld [vmem:[#allocation28_spill] sm:$0xff] }
 0x99b   : > { %v3796_v16 = vmul.f32 %v3787_v20, %v7346_v12  ;;  %v3771_v33 = vadd.f32 %v6173_v21, %v3706_v60  ;;  %v6553_v60 = vld [vmem:[%s8252_s10 + $0x70] sm:$0xff]  }
 0x99c   : > { %v3798_v30 = vadd.f32 %v3794_v28, %v3760_v23  ;;  %v3763_v50 = vadd.f32 %v3762_v13, %v3704_v56  ;;  %6190 = vmatprep.subr.bf16.mxu0 %v6553_v60  ;;  %v8380_v23 = vld [vmem:[#allocation21_spill] sm:$0xff] }
 0x99d   : > { %v3800_v32 = vadd.f32 %v3796_v16, %v3768_v14  ;;  %6191 = vmatpush3.bf16.msra.mxu0 %v6553_v60  ;;  %v8379_v14 = vld [vmem:[#allocation20_spill] sm:$0xff] }
 0x99e   : > { %v3792_v4 = vpop.permute.xlu1 %3791  ;;  %v3802_v63 = vadd.f32 %v3798_v30, %v7351_v52  ;;  %v3799_v27 = vadd.f32 %v3795_v29, %v3763_v50 }
 0x99f   : > { %v3797_v19 = vmul.f32 %v3792_v4, %v8366_v3  ;;  %v3804_v10 = vadd.f32 %v3800_v32, %v8368_v59  ;;  %v6554_v32 = vld [vmem:[%s8252_s10 + $0x78] sm:$0xff]  }
 0x9a0   : > { %v3806_v35 = vsel %vm1070_vm0, %v3802_v63, -inf  ;;  %v3803_v18 = vadd.f32 %v3799_v27, %v8367_v51  ;;  %6192 = vmatprep.subr.bf16.mxu0 %v6554_v32 }
 0x9a1   : > { %v3801_v15 = vadd.f32 %v3797_v19, %v3771_v33  ;;  %3807 = vmax.xlane.f32.xlu0 %v3806_v35  ;;  %v3812_v13 = vsel %vm1070_vm0, %v3804_v10, -inf  ;;  %6193 = vmatpush3.bf16.msra.mxu0 %v6554_v32  ;;  %v5548_v32 = vld [vmem:[%s8258_s16 + $0x3] ss:$0 sm:$0xff] }
 0x9a2   : > { %v3809_v21 = vsel %vm1070_vm0, %v3803_v18, -inf }
 0x9a3   : > { %3810 = vmax.xlane.f32.xlu1 %v3809_v21  ;;  %v3805_v2 = vadd.f32 %v3801_v15, %v8378_v17 }
 0x9a4   : > { %6195 = vmatmul.mubr.msk.bf16.vlgmr.msra.gmra.mrb[56].mxu0 %vm1070_vm0, %v8379_v14  ;;  %v5550_v14 = vld [vmem:[%s8259_s17 + $0x3] ss:$0 sm:$0xff] }
 0x9a5   : > { %3813 = vmax.xlane.f32.xlu0 %v3812_v13  ;;  %v3815_v53 = vsel %vm1070_vm0, %v3805_v2, -inf  ;;  %6222 = vmatprep.mubr.msk.bf16.mxu0 %vm1070_vm0, %v8380_v23 }
 0x9a9   : > { %3816 = vmax.xlane.f32.xlu0 %v3815_v53 }
 0xa2e   : > { %v3808_v28 = vpop.xlane.xlu0 %3807 }
 0xa2f   : > { %v3818_v56 = vsub.f32 %v3802_v63, %v3808_v28 }
 0xa30   : > { %v3811_v20 = vpop.xlane.xlu1 %3810 }
 0xa31   : > { %v3822_v16 = vmul.f32 1.442695, %v3818_v56  ;;  %v3819_v33 = vsub.f32 %v3803_v18, %v3811_v20 }
 0xa32   : > { %v3814_v29 = vpop.xlane.xlu0 %3813 }
 0xa33   : > { %6605 = vpow2.f32 %v3822_v16  ;;  %v3824_v30 = vmul.f32 1.442695, %v3819_v33  ;;  %v3820_v50 = vsub.f32 %v3804_v10, %v3814_v29 }
 0xa35   : > { %6607 = vpow2.f32 %v3824_v30  ;;  %v3826_v4 = vmul.f32 1.442695, %v3820_v50 }
 0xa36   : > { %v3817_v27 = vpop.xlane.xlu0 %3816 }
 0xa37   : > { %6609 = vpow2.f32 %v3826_v4  ;;  %v3821_v19 = vsub.f32 %v3805_v2, %v3817_v27  ;;  %v6555_v2 = vld [vmem:[%s8253_s11 + $0x60] sm:$0xff]  }
 0xa38   : > { %6198 = vmatprep.subr.bf16.mxu1 %v6555_v2 }
 0xa39   : > { %v3828_v35 = vmul.f32 1.442695, %v3821_v19 }
 0xa3b   : > { %6611 = vpow2.f32 %v3828_v35 }
 0xa3d   : > { %v6606_v15 = vpop.eup %6605 }
 0xa3e   : > { %v3830_v21 = vsel %vm1070_vm0, %v6606_v15, 0.0 }
 0xa3f   : > { %v6608_v13 = vpop.eup %6607  ;;  %3831 = vadd.xlane.f32.xlu1 %v3830_v21 }
 0xa40   : > { %v3833_v63 = vsel %vm1070_vm0, %v6608_v13, 0.0 }
 0xa41   : > { %v6610_v53 = vpop.eup %6609  ;;  %3834 = vadd.xlane.f32.xlu0 %v3833_v63 }
 0xa42   : > { %v3836_v18 = vsel %vm1070_vm0, %v6610_v53, 0.0 }
 0xa43   : > { %3837 = vadd.xlane.f32.xlu1 %v3836_v18 }
 0xa45   : > { %v6612_v10 = vpop.eup %6611 }
 0xa46   : > { %v3839_v60 = vsel %vm1070_vm0, %v6612_v10, 0.0 }
 0xa47   : > { %3840 = vadd.xlane.f32.xlu0 %v3839_v60 }
 0xa77   : > { %v7920_v23 = vpop.f32.mrb[56].mxu0 }
 0xa78   : > { %v7923_v28 = vadd.f32 %v7920_v23, %v5548_v32  ;;  %v7926_v56 = vadd.f32 %v7920_v23, %v5550_v14  ;;  %v7928_v20 = vpop.f32.mrb[57].mxu0 }
 0xa79   : > { %v7931_v16 = vadd.f32 %v5548_v32, %v7928_v20  ;;  %v4252_v33 = vadd.f32 %v5550_v14, %v7928_v20  ;;  %v7934_v29 = vpop.f32.mrb[58].mxu0 }
 0xa7a   : > { %v7937_v30 = vadd.f32 %v7934_v29, %v5548_v32  ;;  %v7940_v50 = vadd.f32 %v7934_v29, %v5550_v14  ;;  %v7942_v4 = vpop.f32.mrb[59].mxu0 }
 0xa7b   : > { %v7945_v27 = vadd.f32 %v5548_v32, %v7942_v4  ;;  %v4253_v19 = vadd.f32 %v5550_v14, %v7942_v4 }
 0xa7c   : > { %v4257_v21 = vpack.c.bf16 %v7940_v50, %v7926_v56 }
 0xa7d   : > { %v4242_v63 = vpack.c.bf16 %v7945_v27, %v7931_v16  ;;  %v4256_v18 = vpack.c.bf16 %v4253_v19, %v4252_v33  ;;  %v6566_v16 = vld [vmem:[%s8254_s12 + $0x78] sm:$0xff]  }
 0xacc   : > { %v3832_v60 = vpop.xlane.xlu1 %3831 }
 0xacd   : > { %6613 = vrcp.f32 %v3832_v60 }
 0xace   : > { %v3835_v17 = vpop.xlane.xlu0 %3834 }
 0xacf   : > { %6615 = vrcp.f32 %v3835_v17  ;;  %v6661_v17 = vld [vmem:[%s7002_s8] sm:$0xff]  }
 0xad0   : > { %v3838_v59 = vpop.xlane.xlu1 %3837 }
 0xad1   : > { %6617 = vrcp.f32 %v3838_v59  ;;  %v6556_v59 = vld [vmem:[%s8253_s11 + $0x68] sm:$0xff]  }
 0xad4   : > { %v3841_v32 = vpop.xlane.xlu0 %3840 }
 0xad5   : > { %6619 = vrcp.f32 %v3841_v32  ;;  %v6562_v32 = vld [vmem:[%s8255_s13 + $0x78] sm:$0xff]  }
 0xad7   : > { %v6614_v14 = vpop.eup %6613 }
 0xad8   : > { %v3846_v3 = vmul.f32 %v6614_v14, %v6606_v15  ;;  %v6663_v15 = vld [vmem:[%s7002_s8 + $0x10] sm:$0xff]   ;;  %v5571_v14 = vld [vmem:[%s8261_s19 + $0x6] sm:$0x3] }
 0xad9   : > { %v6616_v51 = vpop.eup %6615 }
 0xada   : > { %v3847_v35 = vmul.f32 %v6616_v51, %v6608_v13  ;;  %v6662_v51 = vld [vmem:[%s7002_s8 + $0x8] sm:$0xff]  }
 0xadb   : > { %v6618_v22 = vpop.eup %6617 }
 0xadc   : > { %v3850_v52 = vpack.c.bf16 %v3847_v35, %v3846_v3  ;;  %v3848_v50 = vmul.f32 %v6618_v22, %v6610_v53  ;;  %v6558_v22 = vld [vmem:[%s8253_s11 + $0x78] sm:$0xff]   ;;  %v6559_v3 = vld [vmem:[%s8255_s13 + $0x60] sm:$0xff]   ;;  %v6560_v53 = vld [vmem:[%s8255_s13 + $0x68] sm:$0xff]  }
 0xadd   : > { %v4294_v13 = vsel %vm1460_vm1, %v6559_v3, 0  ;;  %v6561_v35 = vld [vmem:[%s8255_s13 + $0x70] sm:$0xff]  }
 0xade   : > { %6182 = vmatprep.mubr.msk.bf16.mxu1 %vm1070_vm0, %v3850_v52  ;;  %v6557_v52 = vld [vmem:[%s8253_s11 + $0x70] sm:$0xff]   ;;  %v4300_v60 = vsel %vm1460_vm1, %v6561_v35, 0 }
 0xadf   : > { %v6620_v56 = vpop.eup %6619 }
 0xae0   : > { %v3849_v33 = vmul.f32 %v6620_v56, %v6612_v10  ;;  %v6664_v10 = vld [vmem:[%s7002_s8 + $0x18] sm:$0xff]   ;;  %v5570_v56 = vld [vmem:[%s8260_s18 + $0x3] ss:$0 sm:$0xff] }
 0xae2   : > { %v3851_v19 = vpack.c.bf16 %v3849_v33, %v3848_v50  ;;  %v4484_v50 = vadd.f32 %v5570_v56, %v7928_v20  ;;  %v4485_v33 = vadd.f32 %v5570_v56, %v7942_v4  ;;  %v6563_v20 = vld [vmem:[%s8254_s12 + $0x60] sm:$0xff]  }
 0xae3   : > { %6214 = vmatprep.subr.bf16.mxu0 %v6563_v20 }
 0xae4   : > { %6183 = vmatmul.mubr.msk.bf16.vlgmr.msra.gmra.mrb[60].mxu1 %vm1070_vm0, %v3851_v19  ;;  %v4486_v19 = vadd.f32 %v7920_v23, %v5570_v56  ;;  %v6564_v23 = vld [vmem:[%s8254_s12 + $0x68] sm:$0xff]   ;;  %6215 = vmatpush3.bf16.msra.mxu0 %v6563_v20 }
 0xae5   : > { %6199 = vmatpush3.bf16.msra.mxu1 %v6555_v2  ;;  %6206 = vmatprep.mubr.msk.bf16.mxu1 %vm1070_vm0, %v6661_v17  ;;  %v4297_v2 = vsel %vm1460_vm1, %v6560_v53, 0 }
 0xae6   : > { %6200 = vmatprep.subr.bf16.mxu1 %v6556_v59  ;;  %6216 = vmatprep.subr.bf16.mxu0 %v6564_v23 }
 0xae8   : > { %6217 = vmatpush3.bf16.msra.mxu0 %v6564_v23  ;;  %v8381_v23 = vpack.c.bf16 %v7937_v30, %v7923_v28 }
 0xae9   : > { %6201 = vmatpush3.bf16.msra.mxu1 %v6556_v59  ;;  %v4487_v59 = vadd.f32 %v7934_v29, %v5570_v56  ;;  %v6565_v29 = vld [vmem:[%s8254_s12 + $0x70] sm:$0xff]  }
 0xaea   : > { %6202 = vmatprep.subr.bf16.mxu1 %v6557_v52  ;;  %6218 = vmatprep.subr.bf16.mxu0 %v6565_v29 }
 0xaec   : > { %6219 = vmatpush3.bf16.msra.mxu0 %v6565_v29 }
 0xaed   : > { %6203 = vmatpush3.bf16.msra.mxu1 %v6557_v52  ;;  %6220 = vmatprep.subr.bf16.mxu0 %v6566_v16 }
 0xaee   : > { %6204 = vmatprep.subr.bf16.mxu1 %v6558_v22 }
 0xaf0   : > { %6221 = vmatpush3.bf16.msra.mxu0 %v6566_v16 }
 0xaf1   : > { %6205 = vmatpush3.bf16.msra.mxu1 %v6558_v22  ;;  %6378 = vmatprep.subr.msk.bf16.mxu0 %vm1070_vm0, %v7751_v26 }
 0xaf2   : > { %6374 = vmatprep.subr.msk.bf16.mxu1 %vm1460_vm1, %v6559_v3 }
 0xaf3   : > { %6223 = vmatmul.mubr.msk.bf16.vlgmr.msra.gmra.mrb[60].mxu0 %vm1070_vm0, %v7756_v40 }
 0xaf4   : > { %6207 = vmatmul.mubr.msk.bf16.vlgmr.msra.gmra.mrb[64].mxu1 %vm1070_vm0, %v6662_v51  ;;  %6226 = vmatprep.mubr.msk.bf16.mxu0 %vm1070_vm0, %v7761_v62 }
 0xaf5   : > { %6210 = vmatprep.mubr.msk.bf16.mxu1 %vm1070_vm0, %v6663_v15 }
 0xaf9   : > { %6243 = vmatpush3.bf16.xpose.msra.mxu0 %v7106_v31 }
 0xafa   : > { %6231 = vmatpush3.bf16.xpose.msra.mxu1 %v4294_v13  ;;  %6379 = vmatprep.subr.msk.bf16.mxu0 %vm1070_vm0, %v7769_v25 }
 0xafb   : > { %6375 = vmatprep.subr.msk.bf16.mxu1 %vm1460_vm1, %v6560_v53  ;;  %6227 = vmatmul.mubr.msk.bf16.gmra.mrb[64].mxu0 %vm1070_vm0, %v7774_v38 }
 0xafc   : > { %6211 = vmatmul.mubr.msk.bf16.gmra.mrb[68].mxu1 %vm1070_vm0, %v6664_v10 }
 0xafd   : > { %6238 = vmatprep.mubr.msk.bf16.mxu1 %vm1460_vm1, %v4256_v18  ;;  %v4303_v18 = vsel %vm1460_vm1, %v6562_v32, 0 }
 0xb01   : > { %6245 = vmatpush3.bf16.xpose.msra.mxu0 %v7123_v34 }
 0xb02   : > { %6233 = vmatpush3.bf16.xpose.msra.mxu1 %v4297_v2  ;;  %6380 = vmatprep.subr.msk.bf16.mxu0 %vm1070_vm0, %v7782_v9 }
 0xb03   : > { %6376 = vmatprep.subr.msk.bf16.mxu1 %vm1460_vm1, %v6561_v35 }
 0xb09   : > { %6247 = vmatpush3.bf16.xpose.msra.mxu0 %v7135_v36  ;;  %v5520_v36 = vld [vmem:[%s8256_s14 + $0x3] ss:$0 sm:$0xff] }
 0xb0a   : > { %6235 = vmatpush3.bf16.xpose.msra.mxu1 %v4300_v60  ;;  %6381 = vmatprep.subr.msk.bf16.mxu0 %vm1070_vm0, %v7790_v57 }
 0xb0b   : > { %6377 = vmatprep.subr.msk.bf16.mxu1 %vm1460_vm1, %v6562_v32 }
 0xb11   : > { %6249 = vmatpush3.bf16.xpose.msra.mxu0 %v7177_v24 }
 0xb12   : > { %6237 = vmatpush3.bf16.xpose.msra.mxu1 %v4303_v18  ;;  %6382 = vmatprep.subr.msk.bf16.mxu0 %vm1070_vm0, %v7798_v5 }
 0xb13   : > { %6266 = vmatprep.subr.msk.mxu1 %vm1460_vm1, %v5571_v14 }
 0xb19   : > { %6239 = vmatmul.mubr.msk.bf16.vlgmr.msra.gmra.mrb[72].mxu1 %vm1460_vm1, %v4257_v21 }
 0xb1a   : > { %6268 = vmatprep.mubr.msk.f32.mxu1 %vm1460_vm1, %v4484_v50  ;;  %6267 = vmatpush3.xpose.msk.msra.mxu1 %vm1460_vm1, %v5571_v14 }
 0xb21   : > { %6269 = vmatmul.mubr.msk.f32.vlgmr.msra.gmra.mrb[76].mxu1 %vm1460_vm1, %v4485_v33 }
 0xb22   : > { %6271 = vmatprep.mubr.msk.f32.mxu1 %vm1460_vm1, %v4486_v19 }
 0xb25   : > { %6272 = vmatmul.mubr.msk.f32.gmra.mrb[78].mxu1 %vm1460_vm1, %v4487_v59 }
 0xb26   : > { %6282 = vmatprep.mubr.msk.bf16.mxu1 %vm1460_vm1, %v4242_v63 }
 0xbb7   : > { %v8047_v31 = vpop.f32.mrb[60].mxu1 }
 0xbb8   : > { %v8049_v26 = vpop.f32.mrb[61].mxu1 }
 0xbb9   : > { %v8051_v40 = vpop.f32.mrb[62].mxu1 }
 0xbba   : > { %v8053_v34 = vpop.f32.mrb[63].mxu1 }
 0xbc7   : > { %v6208_v62 = vpop.f32.mrb[64].mxu1 }
 0xbc8   : > { %v4094_v25 = vadd.f32 %v6208_v62, %v5520_v36  ;;  %v4085_v38 = vpop.f32.mrb[65].mxu1 }
 0xbc9   : > { %v4086_v9 = vadd.f32 %v5520_v36, %v4085_v38  ;;  %v6209_v24 = vpop.f32.mrb[66].mxu1 }
 0xbca   : > { %v4097_v57 = vadd.f32 %v6209_v24, %v5520_v36  ;;  %v4088_v4 = vpop.f32.mrb[67].mxu1 }
 0xbcb   : > { %v4089_v5 = vadd.f32 %v5520_v36, %v4088_v4 }
 0xbcc   : > { %v4117_v27 = vpack.c.bf16 %v4097_v57, %v4094_v25 }
 0xbcd   : > { %v4116_v21 = vpack.c.bf16 %v4089_v5, %v4086_v9 }
 0xbce   : > { %v4644_v35 = vsel %vm1460_vm1, %v4117_v27, 0 }
 0xbcf   : > { %6386 = vmatprep.subr.msk.bf16.mxu1 %vm1460_vm1, %v4116_v21  ;;  %v4641_v63 = vsel %vm1460_vm1, %v4116_v21, 0  ;;  %v6212_v17 = vpop.f32.mrb[68].mxu1 }
 0xbd0   : > { %6275 = vmatpush3.bf16.xpose.msra.mxu1 %v4641_v63  ;;  %v4110_v52 = vadd.f32 %v6212_v17, %v5520_v36  ;;  %v4101_v22 = vpop.f32.mrb[69].mxu1 }
 0xbd1   : > { %6387 = vmatprep.subr.msk.bf16.mxu1 %vm1460_vm1, %v4117_v27  ;;  %v4102_v3 = vadd.f32 %v5520_v36, %v4101_v22  ;;  %v6213_v51 = vpop.f32.mrb[70].mxu1 }
 0xbd2   : > { %v4113_v15 = vadd.f32 %v6213_v51, %v5520_v36  ;;  %v4104_v13 = vpop.f32.mrb[71].mxu1 }
 0xbd3   : > { %v4105_v53 = vadd.f32 %v5520_v36, %v4104_v13 }
 0xbd4   : > { %v4119_v10 = vpack.c.bf16 %v4113_v15, %v4110_v52 }
 0xbd5   : > { %v4118_v2 = vpack.c.bf16 %v4105_v53, %v4102_v3 }
 0xbd6   : > { %v4650_v32 = vsel %vm1460_vm1, %v4119_v10, 0 }
 0xbd7   : > { %v4647_v60 = vsel %vm1460_vm1, %v4118_v2, 0 }
 0xbd8   : > { %6277 = vmatpush3.bf16.xpose.msra.mxu1 %v4644_v35 }
 0xbd9   : > { %6388 = vmatprep.subr.msk.bf16.mxu1 %vm1460_vm1, %v4118_v2 }
 0xbe0   : > { %6279 = vmatpush3.bf16.xpose.msra.mxu1 %v4647_v60 }
 0xbe1   : > { %6389 = vmatprep.subr.msk.bf16.mxu1 %vm1460_vm1, %v4119_v10 }
 0xbe8   : > { %6281 = vmatpush3.bf16.xpose.msra.mxu1 %v4650_v32 }
 0xbec   : > { %v6240_v18 = vpop.f32.mrb[72].mxu1 }
 0xbed   : > { %v4339_v14 = vpop.f32.mrb[73].mxu1  ;;  %v4356_v50 = vmul.f32 %v6240_v18, %v7196_v41  ;;  %v4362_v33 = vmul.f32 %v6240_v18, %v7198_v42 }
 0xbee   : > { %v6241_v56 = vpop.f32.mrb[74].mxu1  ;;  %v4354_v29 = vmul.f32 %v7204_v46, %v4339_v14  ;;  %v4360_v16 = vmul.f32 %v7206_v47, %v4339_v14 }
 0xbef   : > { %v4357_v19 = vmul.f32 %v6241_v56, %v7200_v43  ;;  %v4363_v59 = vmul.f32 %v6241_v56, %v7202_v44  ;;  %v4342_v20 = vpop.f32.mrb[75].mxu1  ;;  %6283 = vmatmul.mubr.msk.bf16.vlgmr.msra.gmra.mrb[80].mxu1 %vm1460_vm1, %v8381_v23 }
 0xbf0   : > { %v4355_v36 = vmul.f32 %v7208_v48, %v4342_v20  ;;  %v4361_v41 = vmul.f32 %v7210_v49, %v4342_v20  ;;  %v5538_v48 = vld [vmem:[%s8257_s15 + $0x3] ss:$0 sm:$0xff]  ;;  %v6224_v49 = vpop.f32.mrb[60].mxu0 }
 0xbf1   : > { %v4359_v62 = vpack.c.bf16 %v4357_v19, %v4356_v50  ;;  %v4365_v42 = vpack.c.bf16 %v4363_v59, %v4362_v33 }
 0xbf2   : > { %v4358_v25 = vpack.c.bf16 %v4355_v36, %v4354_v29  ;;  %v4364_v43 = vpack.c.bf16 %v4361_v41, %v4360_v16 }
 0xbf4   : > { %6250 = vmatprep.mubr.msk.bf16.mxu0 %vm1070_vm0, %v4364_v43  ;;  %v6270_v44 = vpop.f32.mrb[76].mxu1 }
 0xbf5   : > { %4596 = vrot.lane.b32.xlu0 %v6270_v44, %s8361_s24  ;;  %6251 = vmatmul.mubr.msk.bf16.vlgmr.msra.gmra.mrb[68].mxu0 %vm1070_vm0, %v4365_v42  ;;  %v4571_v28 = vpop.f32.mrb[77].mxu1 }
 0xbf6   : > { %6255 = vmatpush3.bf16.xpose.msra.mxu0 %v7228_v1  ;;  %4594 = vrot.lane.b32.xlu1 %v4571_v28, %s8361_s24  ;;  %v4204_v1 = vadd.f32 %v6224_v49, %v5538_v48 }
 0xbf7   : > { %6262 = vmatprep.mubr.msk.bf16.mxu0 %vm1070_vm0, %v4358_v25  ;;  %6383 = vmatprep.subr.msk.bf16.mxu0 %vm1070_vm0, %v7844_v7 }
 0xbf8   : > { %v6273_v46 = vpop.f32.mrb[78].mxu1 }
 0xbf9   : > { %4611 = vperm.xlu0 %6481, %v4571_v28   ;;  %v4581_v47 = vpop.f32.mrb[79].mxu1 }
 0xbfa   : > { %4598 = vrot.lane.b32.xlu1 %v4581_v47, %s8361_s24 }
 0xbfd   : > { %4623 = vperm.xlu0 %6481, %v6273_v46  }
 0xbfe   : > { %6257 = vmatpush3.bf16.xpose.msra.mxu0 %v7257_v8  ;;  %4600 = vrot.lane.b32.xlu1 %v6273_v46, %s8361_s24  ;;  %v4195_v8 = vpop.f32.mrb[61].mxu0  ;;  %s8397_s24 = sld [smem:[#allocation9_spill]] }
 0xbff   : > { %6384 = vmatprep.subr.msk.bf16.mxu0 %vm1070_vm0, %v7854_v37  ;;  %v4196_v7 = vadd.f32 %v5538_v48, %v4195_v8  ;;  %v6225_v37 = vpop.f32.mrb[62].mxu0  ;;  %v8382_v8 = vld [vmem:[#allocation23_spill] sm:$0xff] }
 0xc00   : > { %v4198_v30 = vpop.f32.mrb[63].mxu0 }
 0xc01   : > { %6483 = vset.pattern.permute.xlu0 %v8362_v0  ;;  %v4199_v38 = vadd.f32 %v5538_v48, %v4198_v30  ;;  %v8383_v30 = vld [vmem:[#allocation24_spill] sm:$0xff] }
 0xc02   : > { %4615 = vperm.xlu1 %6482, %v6270_v44  }
 0xc04   : > { %s5592_s21 = sshll.u32 %s8397_s24, 3 }
 0xc06   : > { %6259 = vmatpush3.bf16.xpose.msra.mxu0 %v7274_v11  ;;  %4619 = vperm.xlu1 %6482, %v4581_v47   ;;  %v4207_v11 = vadd.f32 %v6225_v37, %v5538_v48 }
 0xc07   : > { %6385 = vmatprep.subr.msk.bf16.mxu0 %vm1070_vm0, %v7863_v39  ;;  %v4226_v39 = vpack.c.bf16 %v4199_v38, %v4196_v7 }
 0xc08   : > { %v4227_v9 = vpack.c.bf16 %v4207_v11, %v4204_v1 }
 0xc0a   : > { %6484 = vset.pattern.permute.xlu1 %v8362_v0  ;;  %v6228_v0 = vpop.f32.mrb[64].mxu0 }
 0xc0b   : > { %v4211_v24 = vpop.f32.mrb[65].mxu0 }
 0xc0c   : > { %v4212_v57 = vadd.f32 %v5538_v48, %v4211_v24  ;;  %v6229_v4 = vpop.f32.mrb[66].mxu0 }
 0xc0d   : > { %v4223_v5 = vadd.f32 %v6229_v4, %v5538_v48  ;;  %v4214_v27 = vpop.f32.mrb[67].mxu0 }
 0xc0e   : > { %6261 = vmatpush3.bf16.xpose.msra.mxu0 %v8364_v45  ;;  %v4220_v45 = vadd.f32 %v6228_v0, %v5538_v48  ;;  %v4215_v21 = vadd.f32 %v5538_v48, %v4214_v27 }
 0xc0f   : > { %6286 = vmatprep.subr.bf16.mxu0 %v4226_v39 }
 0xc10   : > { %v4229_v63 = vpack.c.bf16 %v4223_v5, %v4220_v45  ;;  %v4228_v17 = vpack.c.bf16 %v4215_v21, %v4212_v57  ;;  %v8387_v5 = vld [vmem:[#allocation28_spill] sm:$0xff] }
 0xc15   : > { %6263 = vmatmul.mubr.msk.bf16.vlgmr.msra.gmra.mrb[68].mxu0 %vm1070_vm0, %v4359_v62 }
 0xc16   : > { %6287 = vmatpush3.bf16.msra.mxu0 %v4226_v39 }
 0xc17   : > { %6288 = vmatprep.subr.bf16.mxu0 %v4227_v9 }
 0xc1a   : > { %6289 = vmatpush3.bf16.msra.mxu0 %v4227_v9 }
 0xc1b   : > { %6290 = vmatprep.subr.bf16.mxu0 %v4228_v17 }
 0xc1e   : > { %6291 = vmatpush3.bf16.msra.mxu0 %v4228_v17 }
 0xc1f   : > { %6292 = vmatprep.subr.bf16.mxu0 %v4229_v63 }
 0xc22   : > { %6293 = vmatpush3.bf16.msra.mxu0 %v4229_v63 }
 0xc67   : > { %v4597_v52 = vpop.permute.xlu0 %4596 }
 0xc68   : > { %v4607_v22 = vsub.f32 %v6270_v44, %v4597_v52  ;;  %v4595_v3 = vpop.permute.xlu1 %4594 }
 0xc69   : > { %v4606_v51 = vsub.f32 %v4571_v28, %v4595_v3 }
 0xc6a   : > { %4708 = vperm.xlu0 %6483, %v4607_v22  }
 0xc6b   : > { %4703 = vperm.xlu1 %6484, %v4606_v51  }
 0xc6c   : > { %v4599_v15 = vpop.permute.xlu1 %4598 }
 0xc6d   : > { %v4608_v13 = vsub.f32 %v4581_v47, %v4599_v15 }
 0xc6f   : > { %4713 = vperm.xlu1 %6484, %v4608_v13  }
 0xc70   : > { %v4601_v53 = vpop.permute.xlu1 %4600 }
 0xc71   : > { %v4609_v10 = vsub.f32 %v6273_v46, %v4601_v53 }
 0xc73   : > { %4718 = vperm.xlu1 %6484, %v4609_v10  }
 0xc78   : > { %v4612_v14 = vpop.permute.xlu0 %4611 }
 0xc7c   : > { %v4624_v33 = vpop.permute.xlu0 %4623 }
 0xc81   : > { %v4616_v18 = vpop.permute.xlu1 %4615 }
 0xc85   : > { %v4620_v56 = vpop.permute.xlu1 %4619 }
 0xcc2   : > { %v6284_v2 = vpop.f32.mrb[80].mxu1 }
 0xcc3   : > { %v4686_v35 = vpop.f32.mrb[81].mxu1 }
 0xcc4   : > { %v6285_v60 = vpop.f32.mrb[82].mxu1 }
 0xcc5   : > { %v4689_v32 = vpop.f32.mrb[83].mxu1 }
 0xce8   : > { %v6264_v50 = vpop.f32.mrb[68].mxu0 }
 0xce9   : > { %v4628_v19 = vadd.f32 %v6264_v50, %v4620_v56  ;;  %v4461_v59 = vpop.f32.mrb[69].mxu0  ;;  %v4709_v25 = vpop.permute.xlu0 %4708 }
 0xcea   : > { %v4626_v20 = vadd.f32 %v4612_v14, %v4461_v59  ;;  %v6265_v23 = vpop.f32.mrb[70].mxu0  ;;  %v4704_v29 = vpop.permute.xlu1 %4703  ;;  %v8388_v59 = vld [vmem:[#allocation29_spill] sm:$0xff] }
 0xceb   : > { %v4632_v16 = vmul.f32 %v4628_v19, %v7333_v55  ;;  %v4629_v36 = vadd.f32 %v6265_v23, %v4624_v33  ;;  %v4464_v41 = vpop.f32.mrb[71].mxu0  ;;  %v4721_v46 = vmul.f32 %v4704_v29, %v7339_v61  ;;  %v4722_v55 = vmul.f32 %v4709_v25, %v8382_v8  ;;  %v8385_v61 = vld [vmem:[#allocation26_spill] sm:$0xff]  ;;  %v8391_v29 = vld [vmem:[#allocation31_spill] sm:$0xff] }
 0xcec   : > { %v4630_v62 = vmul.f32 %v4626_v20, %v7335_v58  ;;  %v4627_v42 = vadd.f32 %v4616_v18, %v4464_v41  ;;  %v8389_v20 = vld [vmem:[#allocation22_spill] sm:$0xff] }
 0xced   : > { %v4633_v43 = vmul.f32 %v4629_v36, %v7337_v54  ;;  %v4695_v44 = vadd.f32 %v6284_v2, %v4632_v16  ;;  %v8384_v54 = vld [vmem:[#allocation25_spill] sm:$0xff]  ;;  %v8390_v23 = vld [vmem:[#allocation30_spill] sm:$0xff] }
 0xcee   : > { %v4687_v28 = vadd.f32 %v4686_v35, %v4630_v62  ;;  %v4631_v47 = vmul.f32 %v4627_v42, %v7341_v6  ;;  %v4714_v48 = vpop.permute.xlu1 %4713  ;;  %v8386_v6 = vld [vmem:[#allocation27_spill] sm:$0xff] }
 0xcef   : > { %v4723_v49 = vmul.f32 %v4714_v48, %v7346_v12  ;;  %v4698_v1 = vadd.f32 %v6285_v60, %v4633_v43 }
 0xcf0   : > { %v4725_v7 = vadd.f32 %v4721_v46, %v4687_v28  ;;  %v4690_v37 = vadd.f32 %v4689_v32, %v4631_v47 }
 0xcf1   : > { %v4727_v11 = vadd.f32 %v4723_v49, %v4695_v44 }
 0xcf2   : > { %v4719_v58 = vpop.permute.xlu1 %4718  ;;  %v4729_v38 = vadd.f32 %v4725_v7, %v8383_v30  ;;  %v4726_v9 = vadd.f32 %v4722_v55, %v4690_v37  ;;  %v6569_v30 = vld [vmem:[%s8393_s3 + $0x10] sm:$0xff]  }
 0xcf3   : > { %v4724_v39 = vmul.f32 %v4719_v58, %v8384_v54  ;;  %v4731_v24 = vadd.f32 %v4727_v11, %v8386_v6  ;;  %v6567_v11 = vld [vmem:[%s8392_s6] sm:$0xff]   ;;  %v6568_v58 = vld [vmem:[%s8393_s3 + $0x8] sm:$0xff]   ;;  %s8399_s6 = sld [smem:[#allocation43_spill]] }
 0xcf4   : > { %v4733_v0 = vsel %vm1070_vm0, %v4729_v38, -inf  ;;  %v4730_v45 = vadd.f32 %v4726_v9, %v8385_v61  ;;  %6298 = vmatprep.subr.bf16.mxu1 %v6567_v11 }
 0xcf5   : > { %v4728_v57 = vadd.f32 %v4724_v39, %v4698_v1  ;;  %4734 = vmax.xlane.f32.xlu0 %v4733_v0  ;;  %v4739_v4 = vsel %vm1070_vm0, %v4731_v24, -inf  ;;  %6299 = vmatpush3.bf16.msra.mxu1 %v6567_v11 }
 0xcf6   : > { %v4736_v12 = vsel %vm1070_vm0, %v4730_v45, -inf  ;;  %6300 = vmatprep.subr.bf16.mxu1 %v6568_v58 }
 0xcf7   : > { %4737 = vmax.xlane.f32.xlu1 %v4736_v12  ;;  %v4732_v27 = vadd.f32 %v4728_v57, %v8387_v5 }
 0xcf9   : > { %4740 = vmax.xlane.f32.xlu0 %v4739_v4  ;;  %v4742_v21 = vsel %vm1070_vm0, %v4732_v27, -inf  ;;  %6301 = vmatpush3.bf16.msra.mxu1 %v6568_v58 }
 0xcfa   : > { %6302 = vmatprep.subr.bf16.mxu1 %v6569_v30 }
 0xcfd   : > { %4743 = vmax.xlane.f32.xlu0 %v4742_v21  ;;  %6303 = vmatpush3.bf16.msra.mxu1 %v6569_v30 }
 0xd82   : > { %v4735_v63 = vpop.xlane.xlu0 %4734 }
 0xd83   : > { %v4745_v17 = vsub.f32 %v4729_v38, %v4735_v63  ;;  %v6570_v38 = vld [vmem:[%s8393_s3 + $0x18] sm:$0xff]   ;;  %v5581_v63 = vld [vmem:[%s8395_s2] ss:$0 sm:$0xff] }
 0xd84   : > { %v4738_v52 = vpop.xlane.xlu1 %4737  ;;  %6304 = vmatprep.subr.bf16.mxu1 %v6570_v38 }
 0xd85   : > { %v4749_v22 = vmul.f32 1.442695, %v4745_v17  ;;  %v4746_v3 = vsub.f32 %v4730_v45, %v4738_v52  ;;  %6305 = vmatpush3.bf16.msra.mxu1 %v6570_v38  ;;  %v6665_v52 = vld [vmem:[%s8394_s30] sm:$0xff]  }
 0xd86   : > { %v4741_v51 = vpop.xlane.xlu0 %4740 }
 0xd87   : > { %6621 = vpow2.f32 %v4749_v22  ;;  %v4751_v15 = vmul.f32 1.442695, %v4746_v3  ;;  %v4747_v13 = vsub.f32 %v4731_v24, %v4741_v51  ;;  %v4955_v22 = vunpack.c.l.bf16 %v6665_v52 }
 0xd89   : > { %6623 = vpow2.f32 %v4751_v15  ;;  %v4753_v53 = vmul.f32 1.442695, %v4747_v13 }
 0xd8a   : > { %v4744_v10 = vpop.xlane.xlu0 %4743 }
 0xd8b   : > { %6625 = vpow2.f32 %v4753_v53  ;;  %v4748_v2 = vsub.f32 %v4732_v27, %v4744_v10  ;;  %v4956_v53 = vunpack.c.h.bf16 %v6665_v52  ;;  %v6666_v10 = vld [vmem:[%s8394_s30 + $0x8] sm:$0xff]  }
 0xd8d   : > { %v4755_v35 = vmul.f32 1.442695, %v4748_v2  ;;  %v4957_v2 = vunpack.c.l.bf16 %v6666_v10 }
 0xd8f   : > { %6627 = vpow2.f32 %v4755_v35 }
 0xd91   : > { %v6622_v60 = vpop.eup %6621 }
 0xd92   : > { %v4757_v32 = vsel %vm1070_vm0, %v6622_v60, 0.0 }
 0xd93   : > { %v6624_v18 = vpop.eup %6623  ;;  %4758 = vadd.xlane.f32.xlu1 %v4757_v32 }
 0xd94   : > { %v4760_v14 = vsel %vm1070_vm0, %v6624_v18, 0.0 }
 0xd95   : > { %v6626_v56 = vpop.eup %6625  ;;  %4761 = vadd.xlane.f32.xlu0 %v4760_v14 }
 0xd96   : > { %v4763_v50 = vsel %vm1070_vm0, %v6626_v56, 0.0 }
 0xd97   : > { %4764 = vadd.xlane.f32.xlu1 %v4763_v50 }
 0xd99   : > { %v6628_v33 = vpop.eup %6627 }
 0xd9a   : > { %v4766_v19 = vsel %vm1070_vm0, %v6628_v33, 0.0 }
 0xd9b   : > { %4767 = vadd.xlane.f32.xlu0 %v4766_v19 }
 0xda8   : > { %2984 = vrot.lane.b32.xlu1 %v8388_v59, %s6766_s23 }
 0xdac   : > { %2988 = vrot.lane.b32.xlu1 %v8389_v20, %s6766_s23 }
 0xdb0   : > { %2990 = vrot.lane.b32.xlu1 %v8390_v23, %s6766_s23 }
 0xdb1   : > { %2986 = vrot.lane.b32.xlu0 %v8391_v29, %s6766_s23  ;;  %s8398_s23 = sld [smem:[#allocation18_spill]] }
 0xdb4   : > { %3913 = vrot.lane.b32.xlu1 %v8053_v34, %s6767_s27 }
 0xdb5   : > { %3911 = vrot.lane.b32.xlu0 %v8049_v26, %s6767_s27 }
 0xdb7   : > { %s5055_s28 = sadd.s32 %s5592_s21, %s8398_s23  ;;  %s8402_s23 = sld [smem:[#allocation45_spill]] }
 0xdb8   : > { %3917 = vrot.lane.b32.xlu1 %v8051_v40, %s6767_s27  ;;  %s5593_s4 = sshll.u32 %s5055_s28, 7 }
 0xdb9   : > { %3915 = vrot.lane.b32.xlu0 %v8047_v31, %s6767_s27  ;;  %s884_s27 = sand.u32 1, %s8396_s7  }
 0xdba   : > { %s5247_s29 = sshll.u32 %s884_s27, 5  ;;  %s8190_s8 = scalar_lea.sflag [#allocation4], %s884_s27 }
 0xdbd   : > { %s8183_s25 = scalar_lea.hbm %s8402_s23, %s5593_s4 }
 0xe20   : > { %v4759_v16 = vpop.xlane.xlu1 %4758 }
 0xe21   : > { %6629 = vrcp.f32 %v4759_v16 }
 0xe22   : > { %v4762_v36 = vpop.xlane.xlu0 %4761 }
 0xe23   : > { %6631 = vrcp.f32 %v4762_v36 }
 0xe24   : > { %v4765_v41 = vpop.xlane.xlu1 %4764 }
 0xe25   : > { %6633 = vrcp.f32 %v4765_v41 }
 0xe28   : > { %v2985_v62 = vpop.permute.xlu1 %2984  ;;  %v4768_v42 = vpop.xlane.xlu0 %4767 }
 0xe29   : > { %2997 = vst.msk [vmem:[#allocation2] sm:$0xff] %vm2996_vm2, %v2985_v62  ;;  %6635 = vrcp.f32 %v4768_v42 }
 0xe2b   : > { %v6630_v25 = vpop.eup %6629 }
 0xe2c   : > { %v2989_v34 = vpop.permute.xlu1 %2988  ;;  %v2987_v43 = vpop.permute.xlu0 %2986  ;;  %v4773_v31 = vmul.f32 %v6630_v25, %v6622_v60 }
 0xe2d   : > { %v6632_v26 = vpop.eup %6631  ;;  %2999 = vst.msk [vmem:[#allocation2 + $0x10] sm:$0xff] %vm2996_vm2, %v2989_v34  ;;  %2998 = vst.msk [vmem:[#allocation2 + $0x8] sm:$0xff] %vm2996_vm2, %v2987_v43 }
 0xe2e   : > { %v4774_v40 = vmul.f32 %v6632_v26, %v6624_v18  ;;  %v4958_v18 = vunpack.c.h.bf16 %v6666_v10 }
 0xe2f   : > { %v6634_v47 = vpop.eup %6633 }
 0xe30   : > { %v2991_v44 = vpop.permute.xlu1 %2990  ;;  %v3912_v28 = vpop.permute.xlu0 %3911  ;;  %v4777_v46 = vpack.c.bf16 %v4774_v40, %v4773_v31  ;;  %v4775_v49 = vmul.f32 %v6634_v47, %v6626_v56 }
 0xe31   : > { %3000 = vst.msk [vmem:[#allocation2 + $0x18] sm:$0xff] %vm2996_vm2, %v2991_v44 }
 0xe32   : > { %3924 = vst.msk [vmem:[#allocation2] sm:$0xff] %vm3923_vm3, %v3912_v28  ;;  %6294 = vmatprep.mubr.msk.bf16.mxu0 %vm1070_vm0, %v4777_v46 }
 0xe33   : > { %v6636_v48 = vpop.eup %6635 }
 0xe34   : > { %v4776_v1 = vmul.f32 %v6636_v48, %v6628_v33  ;;  %v3914_v8 = vpop.permute.xlu1 %3913  ;;  %v3916_v55 = vpop.permute.xlu0 %3915 }
 0xe35   : > { %3925 = vst.msk [vmem:[#allocation2 + $0x8] sm:$0xff] %vm3923_vm3, %v3914_v8  ;;  %3926 = vst.msk [vmem:[#allocation2 + $0x10] sm:$0xff] %vm3923_vm3, %v3916_v55 }
 0xe36   : > { %v4778_v7 = vpack.c.bf16 %v4776_v1, %v4775_v49 }
 0xe38   : > { %v3918_v37 = vpop.permute.xlu1 %3917  ;;  %6295 = vmatmul.mubr.msk.bf16.vlgmr.msra.gmra.mrb[72].mxu0 %vm1070_vm0, %v4778_v7 }
 0xe39   : > { %3927 = vst.msk [vmem:[#allocation2 + $0x18] sm:$0xff] %vm3923_vm3, %v3918_v37 }
 0xf0b   : > { %v6296_v9 = vpop.f32.mrb[72].mxu0 }
 0xf0c   : > { %v4819_v54 = vpop.f32.mrb[73].mxu0 }
 0xf0d   : > { %4838 = vrot.lane.b32.xlu0 %v4819_v54, %s6768_s5  ;;  %v6297_v39 = vpop.f32.mrb[74].mxu0 }
 0xf0e   : > { %v4822_v0 = vpop.f32.mrb[75].mxu0 }
 0xf0f   : > { %4840 = vrot.lane.b32.xlu1 %v4822_v0, %s6768_s5 }
 0xf11   : > { %4842 = vrot.lane.b32.xlu0 %v6296_v9, %s6768_s5 }
 0xf13   : > { %4844 = vrot.lane.b32.xlu1 %v6297_v39, %s6768_s5  ;;  %s886_s5 = scalar_lea.vmem [#allocation3], %s5247_s29  ;;  %s6769_s29 = smov [#allocation3]  }
 0xf14   : > { %s5058_s22 = sshll.u32 %s886_s5, 4  ;;  %s6671_s0 = sshll.u32 %s6769_s29, 4  ;;  %s8185_s22 = int_to_ptr.vmem [resolvable:$true] %s5058_s22  ;;  %s6672_s0 = int_to_ptr.vmem [resolvable:$false] %s6671_s0 }
 0xf15   : > { %s6673_s26 = scalar_lea.vmem %s6672_s0, 1024  ;;  %p6674_p5 = scmp.lt.s32.totalorder %s8185_s22, %s6672_s0 }
 0xf7f   : > { %v4839_v61 = vpop.permute.xlu0 %4838 }
 0xf80   : > { %4851 = vst.msk [vmem:[#allocation2] sm:$0xff] %vm4850_vm4, %v4839_v61 }
 0xf81   : > { %v4841_v45 = vpop.permute.xlu1 %4840 }
 0xf82   : > { %4852 = vst.msk [vmem:[#allocation2 + $0x8] sm:$0xff] %vm4850_vm4, %v4841_v45 }
 0xf83   : > { %v4843_v6 = vpop.permute.xlu0 %4842 }
 0xf84   : > { %4853 = vst.msk [vmem:[#allocation2 + $0x10] sm:$0xff] %vm4850_vm4, %v4843_v6  ;;  %v5588_v6 = vld [vmem:[%s8399_s6] ss:$0 sm:$0xff]  ;;  %s6667_s6 = scalar_lea.vmem %s8185_s22, 512 }
 0xf85   : > { %v4845_v24 = vpop.permute.xlu1 %4844  ;;  %p6668_p1 = scmp.ne.s32.totalorder %s8185_s22, %s6667_s6  ;;  %p6675_p6 = scmp.lt.s32.totalorder %s6673_s26, %s6667_s6 }
 0xf86   : > { %4854 = vst.msk [vmem:[#allocation2 + $0x18] sm:$0xff] %vm4850_vm4, %v4845_v24 }
 0xf87   : > { %v4855_v57 = vld [vmem:[#allocation2] sm:$0xff]  ;;  %p6669_p2 = pnand %p6668_p1, %p6948_p3  ;;  %p6676_p7 = por %p6675_p6, %p6674_p5 }
 0xf89   : > { %v4856_v12 = vld [vmem:[#allocation2 + $0x8] sm:$0xff]  ;;  %p6670_p4 = pneg %p6669_p2 }
 0xf8a   : > { %v4859_v4 = vpack.c.bf16 %v4856_v12, %v4855_v57  ;;  %v5589_v12 = vld [vmem:[%s8400_s20] ss:$0 sm:$0xff] }
 0xf8b   : > { %v4857_v5 = vld [vmem:[#allocation2 + $0x10] sm:$0xff]  ;;  %p6677_p9 = pnand %p6676_p7, %p6670_p4 }
 0xf8c   : > { %6306 = vmatprep.mubr.msk.bf16.mxu1 %vm1070_vm0, %v4859_v4 }
 0xf8d   : > { %v4858_v27 = vld [vmem:[#allocation2 + $0x18] sm:$0xff] }
 0xf8e   : > { %v4860_v21 = vpack.c.bf16 %v4858_v27, %v4857_v5 }
 0xf90   : > { %6307 = vmatmul.mubr.msk.bf16.vlgmr.msra.gmra.mrb[84].mxu1 %vm1070_vm0, %v4860_v21 }
0x1063   : > { %v6308_v17 = vpop.f32.mrb[84].mxu1 }
0x1064   : > { %v4940_v3 = vpop.f32.mrb[85].mxu1  ;;  %v4949_v51 = vadd.f32 %v6308_v17, %v5581_v63 }
0x1065   : > { %v4941_v15 = vadd.f32 %v5581_v63, %v4940_v3  ;;  %v6309_v13 = vpop.f32.mrb[86].mxu1 }
0x1066   : > { %v4943_v35 = vpop.f32.mrb[87].mxu1  ;;  %v4952_v14 = vadd.f32 %v6309_v13, %v5581_v63  ;;  %v4961_v33 = vadd.f32 %v4957_v2, %v4949_v51 }
0x1067   : > { %v4944_v60 = vadd.f32 %v5581_v63, %v4943_v35  ;;  %v4959_v32 = vadd.f32 %v4955_v22, %v4941_v15 }
0x1068   : > { %v4969_v59 = vsel %vm1070_vm0, %v4961_v33, 0.0  ;;  %v4962_v20 = vadd.f32 %v4958_v18, %v4952_v14 }
0x1069   : > { %v4960_v56 = vadd.f32 %v4956_v53, %v4944_v60  ;;  %v4963_v50 = vsel %vm1070_vm0, %v4959_v32, 0.0 }
0x106a   : > { %4964 = vadd.xlane.f32.xlu0 %v4963_v50  ;;  %v4972_v23 = vsel %vm1070_vm0, %v4962_v20, 0.0 }
0x106b   : > { %v4966_v19 = vsel %vm1070_vm0, %v4960_v56, 0.0 }
0x106c   : > { %4967 = vadd.xlane.f32.xlu1 %v4966_v19 }
0x106e   : > { %4970 = vadd.xlane.f32.xlu0 %v4969_v59 }
0x1072   : > { %4973 = vadd.xlane.f32.xlu0 %v4972_v23 }
0x10f7   : > { %v4965_v29 = vpop.xlane.xlu0 %4964 }
0x10f8   : > { %v4976_v16 = vmul.f32 0.015625, %v4965_v29 }
0x10f9   : > { %v4968_v36 = vpop.xlane.xlu1 %4967 }
0x10fa   : > { %v4980_v41 = vsub.f32 %v4959_v32, %v4976_v16  ;;  %v4977_v62 = vmul.f32 0.015625, %v4968_v36 }
0x10fb   : > { %v4971_v42 = vpop.xlane.xlu0 %4970 }
0x10fc   : > { %v4981_v25 = vsub.f32 %v4960_v56, %v4977_v62  ;;  %v4978_v34 = vmul.f32 0.015625, %v4971_v42  ;;  %v4984_v43 = vmul.f32 %v4980_v41, %v4980_v41 }
0x10fe   : > { %v4982_v26 = vsub.f32 %v4961_v33, %v4978_v34  ;;  %v4988_v31 = vsel %vm1070_vm0, %v4984_v43, 0.0  ;;  %v4985_v40 = vmul.f32 %v4981_v25, %v4981_v25 }
0x10ff   : > { %4989 = vadd.xlane.f32.xlu1 %v4988_v31  ;;  %v4974_v44 = vpop.xlane.xlu0 %4973 }
0x1100   : > { %v4979_v28 = vmul.f32 0.015625, %v4974_v44  ;;  %v4991_v46 = vsel %vm1070_vm0, %v4985_v40, 0.0  ;;  %v4986_v47 = vmul.f32 %v4982_v26, %v4982_v26 }
0x1101   : > { %4992 = vadd.xlane.f32.xlu0 %v4991_v46 }
0x1102   : > { %v4983_v48 = vsub.f32 %v4962_v20, %v4979_v28  ;;  %v4994_v49 = vsel %vm1070_vm0, %v4986_v47, 0.0 }
0x1103   : > { %4995 = vadd.xlane.f32.xlu1 %v4994_v49 }
0x1104   : > { %v4987_v1 = vmul.f32 %v4983_v48, %v4983_v48 }
0x1106   : > { %v4997_v8 = vsel %vm1070_vm0, %v4987_v1, 0.0 }
0x1107   : > { %4998 = vadd.xlane.f32.xlu0 %v4997_v8 }
0x118c   : > { %v4990_v55 = vpop.xlane.xlu1 %4989 }
0x118d   : > { %v5000_v7 = vmul.f32 0.015625, %v4990_v55 }
0x118e   : > { %v4993_v37 = vpop.xlane.xlu0 %4992 }
0x118f   : > { %v5004_v11 = vadd.f32 1e-05, %v5000_v7  ;;  %v5001_v58 = vmul.f32 0.015625, %v4993_v37 }
0x1190   : > { %v4996_v30 = vpop.xlane.xlu1 %4995 }
0x1191   : > { %6637 = vrsqrt.f32 %v5004_v11  ;;  %v5005_v38 = vadd.f32 1e-05, %v5001_v58  ;;  %v5002_v9 = vmul.f32 0.015625, %v4996_v30 }
0x1193   : > { %6639 = vrsqrt.f32 %v5005_v38  ;;  %v5006_v54 = vadd.f32 1e-05, %v5002_v9 }
0x1194   : > { %v4999_v39 = vpop.xlane.xlu0 %4998 }
0x1195   : > { %6641 = vrsqrt.f32 %v5006_v54  ;;  %v5003_v0 = vmul.f32 0.015625, %v4999_v39 }
0x1197   : > { %v5007_v61 = vadd.f32 1e-05, %v5003_v0 }
0x1199   : > { %6643 = vrsqrt.f32 %v5007_v61 }
0x119b   : > { %v6638_v45 = vpop.eup %6637 }
0x119c   : > { %v5012_v24 = vmul.f32 %v6638_v45, %v4980_v41 }
0x119d   : > { %v6640_v57 = vpop.eup %6639 }
0x119e   : > { %v5023_v4 = vmul.f32 %v5588_v6, %v5012_v24  ;;  %v5013_v5 = vmul.f32 %v6640_v57, %v4981_v25 }
0x119f   : > { %v6642_v27 = vpop.eup %6641 }
0x11a0   : > { %v5034_v21 = vadd.f32 %v5589_v12, %v5023_v4  ;;  %v5024_v63 = vmul.f32 %v5588_v6, %v5013_v5  ;;  %v5014_v17 = vmul.f32 %v6642_v27, %v4982_v26 }
0x11a2   : > { %v5035_v52 = vadd.f32 %v5589_v12, %v5024_v63  ;;  %v5025_v22 = vmul.f32 %v5588_v6, %v5014_v17  ;;  %5038 = vst.msk [vmem:[%s886_s5] sm:$0xff] %vm1070_vm0, %v5034_v21 }
0x11a3   : > { %v6644_v3 = vpop.eup %6643 }
0x11a4   : > { %v5036_v51 = vadd.f32 %v5589_v12, %v5025_v22  ;;  %v5015_v15 = vmul.f32 %v6644_v3, %v4983_v48  ;;  %5039 = vst.msk [vmem:[%s886_s5 + $0x8] sm:$0xff] %vm1070_vm0, %v5035_v52 }
0x11a6   : > { %v5026_v13 = vmul.f32 %v5588_v6, %v5015_v15  ;;  %5040 = vst.msk [vmem:[%s886_s5 + $0x10] sm:$0xff] %vm1070_vm0, %v5036_v51 }
0x11a8   : > { %v5037_v53 = vadd.f32 %v5589_v12, %v5026_v13 }
0x11aa   : > { %5041 = vst.msk [vmem:[%s886_s5 + $0x18] sm:$0xff] %vm1070_vm0, %v5037_v53 }
0x11ab   : > { %6680 = shalt.err (!%p6677_p9)
}
0x11ac   : > { %s6681_s7 = scalar_lea.hbm %s8183_s25, 512  ;;  %s6685_s21 = scalar_lea.hbm %s8402_s23, 2048 }
0x11ad   : > { %p6682_p10 = scmp.ne.s32.totalorder %s8183_s25, %s6681_s7  ;;  %p6686_p13 = scmp.lt.u32.totalorder %s8183_s25, %s8402_s23 }
0x11ae   : > { %p6687_p0 = scmp.lt.u32.totalorder %s6685_s21, %s6681_s7  ;;  %p6689_p2 = scmp.lt.u32.totalorder %s6681_s7, %s8183_s25 }
0x11af   : > { %p6683_p11 = pnand %p6682_p10, %p6948_p3 }
0x11b0   : > { %p6688_p1 = por %p6687_p0, %p6686_p13 }
0x11b1   : > { %p6684_p12 = pneg %p6683_p11 }
0x11b2   : > { %p6690_p4 = por %p6689_p2, %p6688_p1 }
0x11b4   : > { %p6691_p5 = pnand %p6690_p4, %p6684_p12 }
0x11b6   : > { %6694 = shalt.err (!%p6691_p5)
}
0x11b7   : > { %s6770_s4 = smov 128   ;;  %s6771_s2 = smov 8  }
0x11b8   : > { %6390 = dma.vmem_to_hbm [thread:$0]  (%p6948_p3), %s8185_s22, 512, %s8183_s25, %s8190_s8, %s6770_s4, %s6770_s4, %s6771_s2  }
0x11b9 PF: > { %s8403_s24 = sld [smem:[#allocation12_spill]]  ;;  %s8404_s6 = sld [smem:[#allocation6_spill]] }
0x11bf   : > { %p6396_p6 = scmp.ge.s32.totalorder %s8403_s24, 2  ;;  %s5073_s0 = sand.u32 1, %s8404_s6  }
0x11c0   : > { %s5074_s26 = scalar_lea.sflag [#allocation4], %s5073_s0 }
0x11c1   : > { %p6393_p7 = pnand %p6396_p6, %p6957_p8 }
0x11c3   : > { %6728 = dma.done.wait (!%p6393_p7), %s5074_s26, 512  }
0x11c4   : > { %6730 = vsyncadd (!%p6393_p7), %s5074_s26, 4294966784  ;;  %s37_s0 = sadd.s32 1, %s8403_s24   ;;  %s8406_s5 = sld [smem:[#allocation7_spill]] }
0x11c5   : > { %p34_p9 = scmp.ge.s32.totalorder %s37_s0, 6   ;;  %s8407_s26 = sld [smem:[#allocation8_spill]] }
0x11c6   : > { %s8408_s27 = sld [smem:[#allocation17_spill]]  ;;  %s8409_s28 = sld [smem:[#allocation10_spill]] }
0x11c7   : > { %s8410_s6 = sld [smem:[#allocation11_spill]]  ;;  %s8411_s2 = sld [smem:[#allocation13_spill]] }
0x11c8   : > { %s8412_s29 = sld [smem:[#allocation15_spill]]  ;;  %36 = sbr.rel (!%p34_p9) target bundleno = 20 (0x14), region = 202 }
0x11cf   :  { %5079 = vsyncpa [#allocation4], 1 }
0x11d0   :  { %5081 = vsyncpa [#allocation4 + $0x1], 1 }

</bundles_post_ra>
